<compile_context>
chip_gen: v7x
topology: tpu7x:2x2x1
jax: 0.10.0
libtpu: 0.0.40
codegen_flags: <defaults>
</compile_context>

<pallas_src>
import jax
import jax.numpy as jnp
from jax import lax
from jax.experimental import pallas as pl
from jax.experimental.pallas import tpu as pltpu

# ---------------- model hyper-parameters (synthetic, from module __init__) ----
VOCAB = 50           # len(ws)
EMBED = 100          # embedding dim (fixed by module)
EMBED_PAD = 128      # zero-padded so layer-0 projection has K=128
HIDDEN = 32          # lib.hidden_size  -> 2H=64, 6H=192, 8H=256 (lane friendly)
NUM_LAYERS = 2       # lib.num_layers
BATCH = 2
MAX_LEN = 8
NUM_CLASSES = 2


# ------------------------------ fused forward kernel --------------------------
def _fused_forward_kernel(tok_ref,                      # SMEM (T*B,) int32 (scalar prefetch)
                          emb_ref,                      # (VOCAB, 1, EMBED_PAD) f32
                          wx0_ref, wh0_ref, b0_ref,     # layer 0 packed weights
                          wx1_ref, wh1_ref, b1_ref,     # layer 1 packed weights
                          wfc_ref, bfc_ref,             # fc head
                          out_ref,                      # (B, C) f32
                          x0_s, x1_s):                  # VMEM scratch
    H, B, T = HIDDEN, BATCH, MAX_LEN

    # ---- in-kernel embedding gather: dynamic leading-axis row loads ----------
    for r in range(T * B):                               # T*B = 16, unrolled
        tok = tok_ref[r]
        x0_s[r:r + 1, :] = emb_ref[tok]                  # (1, EMBED_PAD)

    # Forward-direction lane mask for the packed gate layout
    # [i_f,i_b | f_f,f_b | o_f,o_b | g_f,g_b] (each sub-block H wide).
    lane = lax.broadcasted_iota(jnp.int32, (1, 8 * H), 1)
    is_fw = (lane % (2 * H)) < H

    def run_layer(x_f32, wx_bf16, wh_bf16, b_f32, seq_out_ref=None):
        """One bidirectional LSTM layer, fw/bw fused per step.

        x_f32: (T*B, I) time-major (row t*B + b).  wx: (I, 8H) bf16 packed input
        weights, wh: (2H, 8H) bf16 block-diag hidden weights, b: (1, 8H) f32.
        """
        # Input projection hoisted out of the recurrence (one matmul for all T).
        gx = jnp.dot(x_f32.astype(jnp.bfloat16), wx_bf16,
                     preferred_element_type=jnp.float32) + b_f32    # (T*B, 8H)

        # fw/bw merge hoisted off the recurrence chain: at step s the forward
        # columns take time s, the backward columns take time T-1-s.
        gx_in = [jnp.where(is_fw,
                           gx[s * B:(s + 1) * B, :],
                           gx[(T - 1 - s) * B:(T - s) * B, :])
                 for s in range(T)]

        hcat = jnp.zeros((B, 2 * H), jnp.float32)        # [h_fw | h_bw]
        ccat = jnp.zeros((B, 2 * H), jnp.float32)        # [c_fw | c_bw]
        for s in range(T):                               # T = 8, fully unrolled
            gates = gx_in[s] + jnp.dot(hcat.astype(jnp.bfloat16), wh_bf16,
                                       preferred_element_type=jnp.float32)  # (B, 8H)
            # gate layout [i|f|o|g]: one 6H sigmoid + one 2H tanh per step
            sig = jax.nn.sigmoid(gates[:, :6 * H])
            g_cat = jnp.tanh(gates[:, 6 * H:])
            i_cat = sig[:, 0 * H:2 * H]
            f_cat = sig[:, 2 * H:4 * H]
            o_cat = sig[:, 4 * H:6 * H]

            ccat = f_cat * ccat + i_cat * g_cat
            hcat = o_cat * jnp.tanh(ccat)

            if seq_out_ref is not None:                  # layer-1 input, time-aligned
                tf, tb = s, T - 1 - s
                seq_out_ref[tf * B:(tf + 1) * B, 0:H] = hcat[:, 0:H]
                seq_out_ref[tb * B:(tb + 1) * B, H:2 * H] = hcat[:, H:2 * H]
        return hcat

    # ----- layer 0: input = gathered embeddings; sequence output -> x1_s -----
    run_layer(x0_s[...], wx0_ref[...], wh0_ref[...], b0_ref[...], seq_out_ref=x1_s)
    # ----- layer 1: input at time t = [h_fw^0(t) | h_bw^0(t)] -----
    hcat1 = run_layer(x1_s[...], wx1_ref[...], wh1_ref[...], b1_ref[...])

    # hcat1 == concat(h_n[-2], h_n[-1]).  Tiny fc + log_softmax (kept f32).
    logits = (jnp.dot(hcat1, wfc_ref[...], preferred_element_type=jnp.float32)
              + bfc_ref[...])                             # (B, C)
    m = jnp.max(logits, axis=-1, keepdims=True)
    shifted = logits - m
    lse = jnp.log(jnp.sum(jnp.exp(shifted), axis=-1, keepdims=True))
    out_ref[...] = (shifted - lse).astype(out_ref.dtype)


def fused_forward(tokens_tm, params):
    """tokens_tm: int32 (T*B,) time-major token ids."""
    args = (params["emb_pad"],
            params["wx0"], params["wh0"], params["b0"],
            params["wx1"], params["wh1"], params["b1"],
            params["fc_w"], params["fc_b"])
    in_specs = [pl.BlockSpec(a.shape, lambda i, tok, nd=a.ndim: (0,) * nd)
                for a in args]
    grid_spec = pltpu.PrefetchScalarGridSpec(
        num_scalar_prefetch=1,
        grid=(1,),
        in_specs=in_specs,
        out_specs=pl.BlockSpec((BATCH, NUM_CLASSES), lambda i, tok: (0, 0)),
        scratch_shapes=[
            pltpu.VMEM((MAX_LEN * BATCH, EMBED_PAD), jnp.float32),   # gathered x0
            pltpu.VMEM((MAX_LEN * BATCH, 2 * HIDDEN), jnp.float32),  # layer-1 input
        ])
    return pl.pallas_call(
        _fused_forward_kernel,
        out_shape=jax.ShapeDtypeStruct((BATCH, NUM_CLASSES), jnp.float32),
        grid_spec=grid_spec,
        compiler_params=pltpu.CompilerParams(
            dimension_semantics=("arbitrary",)),
    )(tokens_tm, *args)


# -------------------------------- parameters ----------------------------------
_GATE_PERM = jnp.array([0, 1, 3, 2])   # reorder i,f,g,o -> i,f,o,g (sigmoids first)


def _reorder_gates(m):
    """(..., 4H) -> (..., 4, H) with gate order i,f,o,g."""
    lead = m.shape[:-1]
    return jnp.take(m.reshape(*lead, 4, HIDDEN), _GATE_PERM, axis=-2)


def _pack_dir_cols(m_f, m_b):
    """Interleave fw/bw gate columns -> (..., 8H): [i_f,i_b|f_f,f_b|o_f,o_b|g_f,g_b]."""
    lead = m_f.shape[:-1]
    return jnp.stack([_reorder_gates(m_f), _reorder_gates(m_b)],
                     axis=-2).reshape(*lead, 8 * HIDDEN)


def _pack_hidden(whh_f, whh_b):
    """(H,4H) x2 -> (2H, 8H) block-diagonal hidden weights in the packed layout."""
    H = HIDDEN
    zeros = jnp.zeros((H, 4, H), jnp.float32)
    gf = _reorder_gates(whh_f)                       # (H, 4, H)
    gb = _reorder_gates(whh_b)
    top = jnp.stack([gf, zeros], axis=2).reshape(H, 8 * H)   # rows = h_fw
    bot = jnp.stack([zeros, gb], axis=2).reshape(H, 8 * H)   # rows = h_bw
    return jnp.concatenate([top, bot], axis=0)               # (2H, 8H)


def init_params(key):
    H = HIDDEN
    params = {}
    k_emb, key = jax.random.split(key)
    emb = jax.random.normal(k_emb, (VOCAB, EMBED), jnp.float32) * 0.1
    params["embedding"] = emb                               # for the reference
    params["emb_pad"] = jnp.pad(
        emb, ((0, 0), (0, EMBED_PAD - EMBED))).reshape(VOCAB, 1, EMBED_PAD)

    bound = 1.0 / (H ** 0.5)
    raw = []
    for layer in range(NUM_LAYERS):
        in_size = EMBED if layer == 0 else 2 * H
        dirs = []
        for _direction in range(2):                         # forward, backward
            key, k1, k2, k3, k4 = jax.random.split(key, 5)
            w_ih = jax.random.uniform(k1, (in_size, 4 * H), jnp.float32, -bound, bound)
            w_hh = jax.random.uniform(k2, (H, 4 * H), jnp.float32, -bound, bound)
            b_ih = jax.random.uniform(k3, (4 * H,), jnp.float32, -bound, bound)
            b_hh = jax.random.uniform(k4, (4 * H,), jnp.float32, -bound, bound)
            dirs.append((w_ih, w_hh, b_ih + b_hh))
        raw.append(dirs)
    params["raw_lstm"] = raw                                # for the reference

    # Pack weights for the fused kernel (stored bf16; biases stay f32).
    for layer, ((wih_f, whh_f, b_f), (wih_b, whh_b, b_b)) in enumerate(raw):
        wx = _pack_dir_cols(wih_f, wih_b)                   # (I, 8H)
        if layer == 0:
            wx = jnp.pad(wx, ((0, EMBED_PAD - EMBED), (0, 0)))   # K=100 -> 128
        wh = _pack_hidden(whh_f, whh_b)                     # (2H, 8H)
        b = _pack_dir_cols(b_f, b_b).reshape(1, 8 * H)      # (1, 8H)
        params[f"wx{layer}"] = wx.astype(jnp.bfloat16)
        params[f"wh{layer}"] = wh.astype(jnp.bfloat16)
        params[f"b{layer}"] = b

    key, kw, kb = jax.random.split(key, 3)
    fb = 1.0 / ((2 * H) ** 0.5)
    params["fc_w"] = jax.random.uniform(kw, (2 * H, NUM_CLASSES), jnp.float32, -fb, fb)
    params["fc_b"] = jax.random.uniform(kb, (1, NUM_CLASSES), jnp.float32, -fb, fb)
    return params


# -------------------------------- full model ----------------------------------
@jax.jit
def my_model_forward(params, tokens):
    """tokens: int32 [B, T]  ->  log-probs [B, NUM_CLASSES]."""
    tok_tm = tokens.T.reshape(-1).astype(jnp.int32)        # time-major (T*B,)
    return fused_forward(tok_tm, params)


# ------------------------- pure-JAX reference (for checking) ------------------
def reference_forward(params, tokens):
    hp = lax.Precision.HIGHEST
    H = HIDDEN
    x = jnp.take(params["embedding"], tokens, axis=0)      # (B, T, E)
    x = jnp.transpose(x, (1, 0, 2))                        # (T, B, E)
    T = x.shape[0]

    def run_dir(seq, w_ih, w_hh, b):
        h = jnp.zeros((seq.shape[1], H), jnp.float32)
        c = jnp.zeros((seq.shape[1], H), jnp.float32)
        hs = []
        for t in range(T):
            g = (jnp.dot(seq[t], w_ih, precision=hp)
                 + jnp.dot(h, w_hh, precision=hp) + b)
            i = jax.nn.sigmoid(g[:, 0 * H:1 * H])
            f = jax.nn.sigmoid(g[:, 1 * H:2 * H])
            gg = jnp.tanh(g[:, 2 * H:3 * H])
            o = jax.nn.sigmoid(g[:, 3 * H:4 * H])
            c = f * c + i * gg
            h = o * jnp.tanh(c)
            hs.append(h)
        return jnp.stack(hs, axis=0), h

    inp = x
    h_f = h_b = None
    for (wih_f, whh_f, b_f), (wih_b, whh_b, b_b) in params["raw_lstm"]:
        hseq_f, h_f = run_dir(inp, wih_f, whh_f, b_f)
        hseq_b_rev, h_b = run_dir(inp[::-1], wih_b, whh_b, b_b)
        inp = jnp.concatenate([hseq_f, hseq_b_rev[::-1]], axis=-1)
    concat = jnp.concatenate([h_f, h_b], axis=-1)
    logits = jnp.dot(concat, params["fc_w"], precision=hp) + params["fc_b"]
    return jax.nn.log_softmax(logits, axis=-1)


if __name__ == "__main__":
    key = jax.random.PRNGKey(0)
    k_param, k_tok = jax.random.split(key)
    params = init_params(k_param)
    tokens = jax.random.randint(k_tok, (BATCH, MAX_LEN), 0, VOCAB, dtype=jnp.int32)

    out = my_model_forward(params, tokens)
    jax.block_until_ready(out)

    assert out.shape == (BATCH, NUM_CLASSES)
    # rows of log_softmax must exp-sum to 1
    assert jnp.allclose(jnp.sum(jnp.exp(out), axis=-1), 1.0, atol=1e-5)
    # check against a pure-JAX biLSTM reference (same params; bf16 MXU tolerance)
    ref = reference_forward(params, tokens)
    assert jnp.allclose(out, ref, atol=3e-2), (out, ref)

    print("KERNEL_OK")
</pallas_src>

<mosaic_0001>
module attributes {stable_mosaic.version = 11 : i64} {
  func.func @_fused_forward_kernel(%arg0: i32, %arg1: memref<16xi32, #tpu.memory_space<smem>>, %arg2: memref<50x1x128xf32, #tpu.memory_space<vmem>>, %arg3: memref<128x256xbf16, #tpu.memory_space<vmem>>, %arg4: memref<64x256xbf16, #tpu.memory_space<vmem>>, %arg5: memref<1x256xf32, #tpu.memory_space<vmem>>, %arg6: memref<64x256xbf16, #tpu.memory_space<vmem>>, %arg7: memref<64x256xbf16, #tpu.memory_space<vmem>>, %arg8: memref<1x256xf32, #tpu.memory_space<vmem>>, %arg9: memref<64x2xf32, #tpu.memory_space<vmem>>, %arg10: memref<1x2xf32, #tpu.memory_space<vmem>>, %arg11: memref<2x2xf32, #tpu.memory_space<vmem>>, %arg12: memref<16x128xf32, #tpu.memory_space<vmem>>, %arg13: memref<16x64xf32, #tpu.memory_space<vmem>>) attributes {dimension_semantics = [#tpu.dimension_semantics<arbitrary>], iteration_bounds = array<i64: 1>, scalar_prefetch = 1 : i64, scratch_operands = 2 : i64, tpu.core_type = #tpu.core_type<tc>, window_params = [{pipeline_mode = #tpu.pipeline_mode<synchronous>, transform_indices = @transform_0, window_bounds = array<i64: 50, 1, 128>}, {pipeline_mode = #tpu.pipeline_mode<synchronous>, transform_indices = @transform_1, window_bounds = array<i64: 128, 256>}, {pipeline_mode = #tpu.pipeline_mode<synchronous>, transform_indices = @transform_2, window_bounds = array<i64: 64, 256>}, {pipeline_mode = #tpu.pipeline_mode<synchronous>, transform_indices = @transform_3, window_bounds = array<i64: 1, 256>}, {pipeline_mode = #tpu.pipeline_mode<synchronous>, transform_indices = @transform_4, window_bounds = array<i64: 64, 256>}, {pipeline_mode = #tpu.pipeline_mode<synchronous>, transform_indices = @transform_5, window_bounds = array<i64: 64, 256>}, {pipeline_mode = #tpu.pipeline_mode<synchronous>, transform_indices = @transform_6, window_bounds = array<i64: 1, 256>}, {pipeline_mode = #tpu.pipeline_mode<synchronous>, transform_indices = @transform_7, window_bounds = array<i64: 64, 2>}, {pipeline_mode = #tpu.pipeline_mode<synchronous>, transform_indices = @transform_8, window_bounds = array<i64: 1, 2>}, {pipeline_mode = #tpu.pipeline_mode<synchronous>, transform_indices = @transform_9, window_bounds = array<i64: 2, 2>}]} {
    %c0 = arith.constant 0 : index
    %0 = memref.load %arg1[%c0] : memref<16xi32, #tpu.memory_space<smem>>
    %1 = arith.index_cast %0 : i32 to index
    %c0_0 = arith.constant 0 : index
    %c0_1 = arith.constant 0 : index
    %2 = vector.load %arg2[%1, %c0_0, %c0_1] : memref<50x1x128xf32, #tpu.memory_space<vmem>>, vector<1x1x128xf32>
    %3 = vector.shape_cast %2 : vector<1x1x128xf32> to vector<1x128xf32>
    %c0_2 = arith.constant 0 : index
    %c0_3 = arith.constant 0 : index
    %4 = vector.load %arg12[%c0_2, %c0_3] : memref<16x128xf32, #tpu.memory_space<vmem>>, vector<1x128xf32>
    tpu.vector_store %arg12[%c0_2, %c0_3], %3 {strides = array<i32>} : memref<16x128xf32, #tpu.memory_space<vmem>>, vector<1x128xf32>,
    %c1 = arith.constant 1 : index
    %5 = memref.load %arg1[%c1] : memref<16xi32, #tpu.memory_space<smem>>
    %6 = arith.index_cast %5 : i32 to index
    %c0_4 = arith.constant 0 : index
    %c0_5 = arith.constant 0 : index
    %7 = vector.load %arg2[%6, %c0_4, %c0_5] : memref<50x1x128xf32, #tpu.memory_space<vmem>>, vector<1x1x128xf32>
    %8 = vector.shape_cast %7 : vector<1x1x128xf32> to vector<1x128xf32>
    %c1_6 = arith.constant 1 : index
    %c0_7 = arith.constant 0 : index
    %9 = vector.load %arg12[%c1_6, %c0_7] : memref<16x128xf32, #tpu.memory_space<vmem>>, vector<1x128xf32>
    tpu.vector_store %arg12[%c1_6, %c0_7], %8 {strides = array<i32>} : memref<16x128xf32, #tpu.memory_space<vmem>>, vector<1x128xf32>,
    %c2 = arith.constant 2 : index
    %10 = memref.load %arg1[%c2] : memref<16xi32, #tpu.memory_space<smem>>
    %11 = arith.index_cast %10 : i32 to index
    %c0_8 = arith.constant 0 : index
    %c0_9 = arith.constant 0 : index
    %12 = vector.load %arg2[%11, %c0_8, %c0_9] : memref<50x1x128xf32, #tpu.memory_space<vmem>>, vector<1x1x128xf32>
    %13 = vector.shape_cast %12 : vector<1x1x128xf32> to vector<1x128xf32>
    %c2_10 = arith.constant 2 : index
    %c0_11 = arith.constant 0 : index
    %14 = vector.load %arg12[%c2_10, %c0_11] : memref<16x128xf32, #tpu.memory_space<vmem>>, vector<1x128xf32>
    tpu.vector_store %arg12[%c2_10, %c0_11], %13 {strides = array<i32>} : memref<16x128xf32, #tpu.memory_space<vmem>>, vector<1x128xf32>,
    %c3 = arith.constant 3 : index
    %15 = memref.load %arg1[%c3] : memref<16xi32, #tpu.memory_space<smem>>
    %16 = arith.index_cast %15 : i32 to index
    %c0_12 = arith.constant 0 : index
    %c0_13 = arith.constant 0 : index
    %17 = vector.load %arg2[%16, %c0_12, %c0_13] : memref<50x1x128xf32, #tpu.memory_space<vmem>>, vector<1x1x128xf32>
    %18 = vector.shape_cast %17 : vector<1x1x128xf32> to vector<1x128xf32>
    %c3_14 = arith.constant 3 : index
    %c0_15 = arith.constant 0 : index
    %19 = vector.load %arg12[%c3_14, %c0_15] : memref<16x128xf32, #tpu.memory_space<vmem>>, vector<1x128xf32>
    tpu.vector_store %arg12[%c3_14, %c0_15], %18 {strides = array<i32>} : memref<16x128xf32, #tpu.memory_space<vmem>>, vector<1x128xf32>,
    %c4 = arith.constant 4 : index
    %20 = memref.load %arg1[%c4] : memref<16xi32, #tpu.memory_space<smem>>
    %21 = arith.index_cast %20 : i32 to index
    %c0_16 = arith.constant 0 : index
    %c0_17 = arith.constant 0 : index
    %22 = vector.load %arg2[%21, %c0_16, %c0_17] : memref<50x1x128xf32, #tpu.memory_space<vmem>>, vector<1x1x128xf32>
    %23 = vector.shape_cast %22 : vector<1x1x128xf32> to vector<1x128xf32>
    %c4_18 = arith.constant 4 : index
    %c0_19 = arith.constant 0 : index
    %24 = vector.load %arg12[%c4_18, %c0_19] : memref<16x128xf32, #tpu.memory_space<vmem>>, vector<1x128xf32>
    tpu.vector_store %arg12[%c4_18, %c0_19], %23 {strides = array<i32>} : memref<16x128xf32, #tpu.memory_space<vmem>>, vector<1x128xf32>,
    %c5 = arith.constant 5 : index
    %25 = memref.load %arg1[%c5] : memref<16xi32, #tpu.memory_space<smem>>
    %26 = arith.index_cast %25 : i32 to index
    %c0_20 = arith.constant 0 : index
    %c0_21 = arith.constant 0 : index
    %27 = vector.load %arg2[%26, %c0_20, %c0_21] : memref<50x1x128xf32, #tpu.memory_space<vmem>>, vector<1x1x128xf32>
    %28 = vector.shape_cast %27 : vector<1x1x128xf32> to vector<1x128xf32>
    %c5_22 = arith.constant 5 : index
    %c0_23 = arith.constant 0 : index
    %29 = vector.load %arg12[%c5_22, %c0_23] : memref<16x128xf32, #tpu.memory_space<vmem>>, vector<1x128xf32>
    tpu.vector_store %arg12[%c5_22, %c0_23], %28 {strides = array<i32>} : memref<16x128xf32, #tpu.memory_space<vmem>>, vector<1x128xf32>,
    %c6 = arith.constant 6 : index
    %30 = memref.load %arg1[%c6] : memref<16xi32, #tpu.memory_space<smem>>
    %31 = arith.index_cast %30 : i32 to index
    %c0_24 = arith.constant 0 : index
    %c0_25 = arith.constant 0 : index
    %32 = vector.load %arg2[%31, %c0_24, %c0_25] : memref<50x1x128xf32, #tpu.memory_space<vmem>>, vector<1x1x128xf32>
    %33 = vector.shape_cast %32 : vector<1x1x128xf32> to vector<1x128xf32>
    %c6_26 = arith.constant 6 : index
    %c0_27 = arith.constant 0 : index
    %34 = vector.load %arg12[%c6_26, %c0_27] : memref<16x128xf32, #tpu.memory_space<vmem>>, vector<1x128xf32>
    tpu.vector_store %arg12[%c6_26, %c0_27], %33 {strides = array<i32>} : memref<16x128xf32, #tpu.memory_space<vmem>>, vector<1x128xf32>,
    %c7 = arith.constant 7 : index
    %35 = memref.load %arg1[%c7] : memref<16xi32, #tpu.memory_space<smem>>
    %36 = arith.index_cast %35 : i32 to index
    %c0_28 = arith.constant 0 : index
    %c0_29 = arith.constant 0 : index
    %37 = vector.load %arg2[%36, %c0_28, %c0_29] : memref<50x1x128xf32, #tpu.memory_space<vmem>>, vector<1x1x128xf32>
    %38 = vector.shape_cast %37 : vector<1x1x128xf32> to vector<1x128xf32>
    %c7_30 = arith.constant 7 : index
    %c0_31 = arith.constant 0 : index
    %39 = vector.load %arg12[%c7_30, %c0_31] : memref<16x128xf32, #tpu.memory_space<vmem>>, vector<1x128xf32>
    tpu.vector_store %arg12[%c7_30, %c0_31], %38 {strides = array<i32>} : memref<16x128xf32, #tpu.memory_space<vmem>>, vector<1x128xf32>,
    %c8 = arith.constant 8 : index
    %40 = memref.load %arg1[%c8] : memref<16xi32, #tpu.memory_space<smem>>
    %41 = arith.index_cast %40 : i32 to index
    %c0_32 = arith.constant 0 : index
    %c0_33 = arith.constant 0 : index
    %42 = vector.load %arg2[%41, %c0_32, %c0_33] : memref<50x1x128xf32, #tpu.memory_space<vmem>>, vector<1x1x128xf32>
    %43 = vector.shape_cast %42 : vector<1x1x128xf32> to vector<1x128xf32>
    %c8_34 = arith.constant 8 : index
    %c0_35 = arith.constant 0 : index
    %44 = vector.load %arg12[%c8_34, %c0_35] : memref<16x128xf32, #tpu.memory_space<vmem>>, vector<1x128xf32>
    tpu.vector_store %arg12[%c8_34, %c0_35], %43 {strides = array<i32>} : memref<16x128xf32, #tpu.memory_space<vmem>>, vector<1x128xf32>,
    %c9 = arith.constant 9 : index
    %45 = memref.load %arg1[%c9] : memref<16xi32, #tpu.memory_space<smem>>
    %46 = arith.index_cast %45 : i32 to index
    %c0_36 = arith.constant 0 : index
    %c0_37 = arith.constant 0 : index
    %47 = vector.load %arg2[%46, %c0_36, %c0_37] : memref<50x1x128xf32, #tpu.memory_space<vmem>>, vector<1x1x128xf32>
    %48 = vector.shape_cast %47 : vector<1x1x128xf32> to vector<1x128xf32>
    %c9_38 = arith.constant 9 : index
    %c0_39 = arith.constant 0 : index
    %49 = vector.load %arg12[%c9_38, %c0_39] : memref<16x128xf32, #tpu.memory_space<vmem>>, vector<1x128xf32>
    tpu.vector_store %arg12[%c9_38, %c0_39], %48 {strides = array<i32>} : memref<16x128xf32, #tpu.memory_space<vmem>>, vector<1x128xf32>,
    %c10 = arith.constant 10 : index
    %50 = memref.load %arg1[%c10] : memref<16xi32, #tpu.memory_space<smem>>
    %51 = arith.index_cast %50 : i32 to index
    %c0_40 = arith.constant 0 : index
    %c0_41 = arith.constant 0 : index
    %52 = vector.load %arg2[%51, %c0_40, %c0_41] : memref<50x1x128xf32, #tpu.memory_space<vmem>>, vector<1x1x128xf32>
    %53 = vector.shape_cast %52 : vector<1x1x128xf32> to vector<1x128xf32>
    %c10_42 = arith.constant 10 : index
    %c0_43 = arith.constant 0 : index
    %54 = vector.load %arg12[%c10_42, %c0_43] : memref<16x128xf32, #tpu.memory_space<vmem>>, vector<1x128xf32>
    tpu.vector_store %arg12[%c10_42, %c0_43], %53 {strides = array<i32>} : memref<16x128xf32, #tpu.memory_space<vmem>>, vector<1x128xf32>,
    %c11 = arith.constant 11 : index
    %55 = memref.load %arg1[%c11] : memref<16xi32, #tpu.memory_space<smem>>
    %56 = arith.index_cast %55 : i32 to index
    %c0_44 = arith.constant 0 : index
    %c0_45 = arith.constant 0 : index
    %57 = vector.load %arg2[%56, %c0_44, %c0_45] : memref<50x1x128xf32, #tpu.memory_space<vmem>>, vector<1x1x128xf32>
    %58 = vector.shape_cast %57 : vector<1x1x128xf32> to vector<1x128xf32>
    %c11_46 = arith.constant 11 : index
    %c0_47 = arith.constant 0 : index
    %59 = vector.load %arg12[%c11_46, %c0_47] : memref<16x128xf32, #tpu.memory_space<vmem>>, vector<1x128xf32>
    tpu.vector_store %arg12[%c11_46, %c0_47], %58 {strides = array<i32>} : memref<16x128xf32, #tpu.memory_space<vmem>>, vector<1x128xf32>,
    %c12 = arith.constant 12 : index
    %60 = memref.load %arg1[%c12] : memref<16xi32, #tpu.memory_space<smem>>
    %61 = arith.index_cast %60 : i32 to index
    %c0_48 = arith.constant 0 : index
    %c0_49 = arith.constant 0 : index
    %62 = vector.load %arg2[%61, %c0_48, %c0_49] : memref<50x1x128xf32, #tpu.memory_space<vmem>>, vector<1x1x128xf32>
    %63 = vector.shape_cast %62 : vector<1x1x128xf32> to vector<1x128xf32>
    %c12_50 = arith.constant 12 : index
    %c0_51 = arith.constant 0 : index
    %64 = vector.load %arg12[%c12_50, %c0_51] : memref<16x128xf32, #tpu.memory_space<vmem>>, vector<1x128xf32>
    tpu.vector_store %arg12[%c12_50, %c0_51], %63 {strides = array<i32>} : memref<16x128xf32, #tpu.memory_space<vmem>>, vector<1x128xf32>,
    %c13 = arith.constant 13 : index
    %65 = memref.load %arg1[%c13] : memref<16xi32, #tpu.memory_space<smem>>
    %66 = arith.index_cast %65 : i32 to index
    %c0_52 = arith.constant 0 : index
    %c0_53 = arith.constant 0 : index
    %67 = vector.load %arg2[%66, %c0_52, %c0_53] : memref<50x1x128xf32, #tpu.memory_space<vmem>>, vector<1x1x128xf32>
    %68 = vector.shape_cast %67 : vector<1x1x128xf32> to vector<1x128xf32>
    %c13_54 = arith.constant 13 : index
    %c0_55 = arith.constant 0 : index
    %69 = vector.load %arg12[%c13_54, %c0_55] : memref<16x128xf32, #tpu.memory_space<vmem>>, vector<1x128xf32>
    tpu.vector_store %arg12[%c13_54, %c0_55], %68 {strides = array<i32>} : memref<16x128xf32, #tpu.memory_space<vmem>>, vector<1x128xf32>,
    %c14 = arith.constant 14 : index
    %70 = memref.load %arg1[%c14] : memref<16xi32, #tpu.memory_space<smem>>
    %71 = arith.index_cast %70 : i32 to index
    %c0_56 = arith.constant 0 : index
    %c0_57 = arith.constant 0 : index
    %72 = vector.load %arg2[%71, %c0_56, %c0_57] : memref<50x1x128xf32, #tpu.memory_space<vmem>>, vector<1x1x128xf32>
    %73 = vector.shape_cast %72 : vector<1x1x128xf32> to vector<1x128xf32>
    %c14_58 = arith.constant 14 : index
    %c0_59 = arith.constant 0 : index
    %74 = vector.load %arg12[%c14_58, %c0_59] : memref<16x128xf32, #tpu.memory_space<vmem>>, vector<1x128xf32>
    tpu.vector_store %arg12[%c14_58, %c0_59], %73 {strides = array<i32>} : memref<16x128xf32, #tpu.memory_space<vmem>>, vector<1x128xf32>,
    %c15 = arith.constant 15 : index
    %75 = memref.load %arg1[%c15] : memref<16xi32, #tpu.memory_space<smem>>
    %76 = arith.index_cast %75 : i32 to index
    %c0_60 = arith.constant 0 : index
    %c0_61 = arith.constant 0 : index
    %77 = vector.load %arg2[%76, %c0_60, %c0_61] : memref<50x1x128xf32, #tpu.memory_space<vmem>>, vector<1x1x128xf32>
    %78 = vector.shape_cast %77 : vector<1x1x128xf32> to vector<1x128xf32>
    %c15_62 = arith.constant 15 : index
    %c0_63 = arith.constant 0 : index
    %79 = vector.load %arg12[%c15_62, %c0_63] : memref<16x128xf32, #tpu.memory_space<vmem>>, vector<1x128xf32>
    tpu.vector_store %arg12[%c15_62, %c0_63], %78 {strides = array<i32>} : memref<16x128xf32, #tpu.memory_space<vmem>>, vector<1x128xf32>,
    %80 = tpu.iota {dimensions = array<i32: 1>} : vector<1x256xi32>
    %c64_i32 = arith.constant 64 : i32
    %c0_i32 = arith.constant 0 : i32
    %81 = arith.cmpi eq, %c64_i32, %c0_i32 : i32
    %c1_i32 = arith.constant 1 : i32
    %82 = arith.select %81, %c1_i32, %c64_i32 : i32
    %83 = vector.broadcast %82 : i32 to vector<1x256xi32>
    %84 = arith.remsi %80, %83 : vector<1x256xi32>
    %c0_i32_64 = arith.constant 0 : i32
    %85 = vector.broadcast %c0_i32_64 : i32 to vector<1x256xi32>
    %86 = arith.cmpi ne, %84, %85 : vector<1x256xi32>
    %c0_i32_65 = arith.constant 0 : i32
    %87 = vector.broadcast %c0_i32_65 : i32 to vector<1x256xi32>
    %88 = arith.cmpi slt, %84, %87 : vector<1x256xi32>
    %c0_i32_66 = arith.constant 0 : i32
    %89 = arith.cmpi slt, %82, %c0_i32_66 : i32
    %90 = vector.broadcast %89 : i1 to vector<1x256xi1>
    %91 = vector.broadcast %90 : vector<1x256xi1> to vector<1x256xi1>
    %92 = arith.xori %88, %91 : vector<1x256xi1>
    %93 = arith.andi %92, %86 : vector<1x256xi1>
    %94 = vector.broadcast %82 : i32 to vector<1x256xi32>
    %95 = arith.addi %84, %94 : vector<1x256xi32>
    %96 = arith.select %93, %95, %84 : vector<1x256xi1>, vector<1x256xi32>
    %c32_i32 = arith.constant 32 : i32
    %97 = vector.broadcast %c32_i32 : i32 to vector<1x256xi32>
    %98 = arith.cmpi slt, %96, %97 : vector<1x256xi32>
    %c0_67 = arith.constant 0 : index
    %c0_68 = arith.constant 0 : index
    %99 = vector.load %arg12[%c0_67, %c0_68] : memref<16x128xf32, #tpu.memory_space<vmem>>, vector<16x128xf32>
    %c0_69 = arith.constant 0 : index
    %c0_70 = arith.constant 0 : index
    %100 = vector.load %arg3[%c0_69, %c0_70] : memref<128x256xbf16, #tpu.memory_space<vmem>>, vector<128x256xbf16>
    %c0_71 = arith.constant 0 : index
    %c0_72 = arith.constant 0 : index
    %101 = vector.load %arg4[%c0_71, %c0_72] : memref<64x256xbf16, #tpu.memory_space<vmem>>, vector<64x256xbf16>
    %c0_73 = arith.constant 0 : index
    %c0_74 = arith.constant 0 : index
    %102 = vector.load %arg5[%c0_73, %c0_74] : memref<1x256xf32, #tpu.memory_space<vmem>>, vector<1x256xf32>
    %103 = arith.truncf %99 : vector<16x128xf32> to vector<16x128xbf16>
    %cst = arith.constant dense<0.000000e+00> : vector<16x256xf32>
    %104 = tpu.matmul %103, %100, %cst {dimension_numbers = #tpu.dot_dimension_numbers<[1], [0], [0], [1], [0, 0, 1, 1], [], []>} : vector<16x128xbf16>, vector<128x256xbf16>, vector<16x256xf32> -> vector<16x256xf32>
    %105 = vector.broadcast %102 : vector<1x256xf32> to vector<16x256xf32>
    %106 = arith.addf %104, %105 : vector<16x256xf32>
    %107 = vector.extract_strided_slice %106 {offsets = [0, 0], sizes = [2, 256], strides = [1, 1]} : vector<16x256xf32> to vector<2x256xf32>
    %108 = vector.extract_strided_slice %106 {offsets = [14, 0], sizes = [2, 256], strides = [1, 1]} : vector<16x256xf32> to vector<2x256xf32>
    %109 = vector.shape_cast %98 : vector<1x256xi1> to vector<1x256xi1>
    %110 = vector.broadcast %109 : vector<1x256xi1> to vector<2x256xi1>
    %111 = arith.select %110, %107, %108 : vector<2x256xi1>, vector<2x256xf32>
    %112 = vector.extract_strided_slice %106 {offsets = [2, 0], sizes = [2, 256], strides = [1, 1]} : vector<16x256xf32> to vector<2x256xf32>
    %113 = vector.extract_strided_slice %106 {offsets = [12, 0], sizes = [2, 256], strides = [1, 1]} : vector<16x256xf32> to vector<2x256xf32>
    %114 = vector.shape_cast %98 : vector<1x256xi1> to vector<1x256xi1>
    %115 = vector.broadcast %114 : vector<1x256xi1> to vector<2x256xi1>
    %116 = arith.select %115, %112, %113 : vector<2x256xi1>, vector<2x256xf32>
    %117 = vector.extract_strided_slice %106 {offsets = [4, 0], sizes = [2, 256], strides = [1, 1]} : vector<16x256xf32> to vector<2x256xf32>
    %118 = vector.extract_strided_slice %106 {offsets = [10, 0], sizes = [2, 256], strides = [1, 1]} : vector<16x256xf32> to vector<2x256xf32>
    %119 = vector.shape_cast %98 : vector<1x256xi1> to vector<1x256xi1>
    %120 = vector.broadcast %119 : vector<1x256xi1> to vector<2x256xi1>
    %121 = arith.select %120, %117, %118 : vector<2x256xi1>, vector<2x256xf32>
    %122 = vector.extract_strided_slice %106 {offsets = [6, 0], sizes = [2, 256], strides = [1, 1]} : vector<16x256xf32> to vector<2x256xf32>
    %123 = vector.extract_strided_slice %106 {offsets = [8, 0], sizes = [2, 256], strides = [1, 1]} : vector<16x256xf32> to vector<2x256xf32>
    %124 = vector.shape_cast %98 : vector<1x256xi1> to vector<1x256xi1>
    %125 = vector.broadcast %124 : vector<1x256xi1> to vector<2x256xi1>
    %126 = arith.select %125, %122, %123 : vector<2x256xi1>, vector<2x256xf32>
    %127 = vector.extract_strided_slice %106 {offsets = [8, 0], sizes = [2, 256], strides = [1, 1]} : vector<16x256xf32> to vector<2x256xf32>
    %128 = vector.extract_strided_slice %106 {offsets = [6, 0], sizes = [2, 256], strides = [1, 1]} : vector<16x256xf32> to vector<2x256xf32>
    %129 = vector.shape_cast %98 : vector<1x256xi1> to vector<1x256xi1>
    %130 = vector.broadcast %129 : vector<1x256xi1> to vector<2x256xi1>
    %131 = arith.select %130, %127, %128 : vector<2x256xi1>, vector<2x256xf32>
    %132 = vector.extract_strided_slice %106 {offsets = [10, 0], sizes = [2, 256], strides = [1, 1]} : vector<16x256xf32> to vector<2x256xf32>
    %133 = vector.extract_strided_slice %106 {offsets = [4, 0], sizes = [2, 256], strides = [1, 1]} : vector<16x256xf32> to vector<2x256xf32>
    %134 = vector.shape_cast %98 : vector<1x256xi1> to vector<1x256xi1>
    %135 = vector.broadcast %134 : vector<1x256xi1> to vector<2x256xi1>
    %136 = arith.select %135, %132, %133 : vector<2x256xi1>, vector<2x256xf32>
    %137 = vector.extract_strided_slice %106 {offsets = [12, 0], sizes = [2, 256], strides = [1, 1]} : vector<16x256xf32> to vector<2x256xf32>
    %138 = vector.extract_strided_slice %106 {offsets = [2, 0], sizes = [2, 256], strides = [1, 1]} : vector<16x256xf32> to vector<2x256xf32>
    %139 = vector.shape_cast %98 : vector<1x256xi1> to vector<1x256xi1>
    %140 = vector.broadcast %139 : vector<1x256xi1> to vector<2x256xi1>
    %141 = arith.select %140, %137, %138 : vector<2x256xi1>, vector<2x256xf32>
    %142 = vector.extract_strided_slice %106 {offsets = [14, 0], sizes = [2, 256], strides = [1, 1]} : vector<16x256xf32> to vector<2x256xf32>
    %143 = vector.extract_strided_slice %106 {offsets = [0, 0], sizes = [2, 256], strides = [1, 1]} : vector<16x256xf32> to vector<2x256xf32>
    %144 = vector.shape_cast %98 : vector<1x256xi1> to vector<1x256xi1>
    %145 = vector.broadcast %144 : vector<1x256xi1> to vector<2x256xi1>
    %146 = arith.select %145, %142, %143 : vector<2x256xi1>, vector<2x256xf32>
    %cst_75 = arith.constant 0.000000e+00 : f32
    %147 = vector.broadcast %cst_75 : f32 to vector<2x64xf32>
    %cst_76 = arith.constant 0.000000e+00 : f32
    %148 = vector.broadcast %cst_76 : f32 to vector<2x64xf32>
    %149 = arith.truncf %147 : vector<2x64xf32> to vector<2x64xbf16>
    %cst_77 = arith.constant dense<0.000000e+00> : vector<2x256xf32>
    %150 = tpu.matmul %149, %101, %cst_77 {dimension_numbers = #tpu.dot_dimension_numbers<[1], [0], [0], [1], [0, 0, 1, 1], [], []>} : vector<2x64xbf16>, vector<64x256xbf16>, vector<2x256xf32> -> vector<2x256xf32>
    %151 = arith.addf %111, %150 : vector<2x256xf32>
    %152 = vector.extract_strided_slice %151 {offsets = [0, 0], sizes = [2, 192], strides = [1, 1]} : vector<2x256xf32> to vector<2x192xf32>
    %153 = arith.negf %152 : vector<2x192xf32>
    %154 = math.exp %153 : vector<2x192xf32>
    %cst_78 = arith.constant 1.000000e+00 : f32
    %155 = vector.broadcast %cst_78 : f32 to vector<2x192xf32>
    %156 = arith.addf %155, %154 : vector<2x192xf32>
    %157 = arith.divf %155, %156 : vector<2x192xf32>
    %158 = vector.extract_strided_slice %151 {offsets = [0, 192], sizes = [2, 64], strides = [1, 1]} : vector<2x256xf32> to vector<2x64xf32>
    %159 = math.tanh %158 : vector<2x64xf32>
    %160 = vector.extract_strided_slice %157 {offsets = [0, 0], sizes = [2, 64], strides = [1, 1]} : vector<2x192xf32> to vector<2x64xf32>
    %161 = vector.extract_strided_slice %157 {offsets = [0, 64], sizes = [2, 64], strides = [1, 1]} : vector<2x192xf32> to vector<2x64xf32>
    %162 = vector.extract_strided_slice %157 {offsets = [0, 128], sizes = [2, 64], strides = [1, 1]} : vector<2x192xf32> to vector<2x64xf32>
    %163 = arith.mulf %161, %148 : vector<2x64xf32>
    %164 = arith.mulf %160, %159 : vector<2x64xf32>
    %165 = arith.addf %163, %164 : vector<2x64xf32>
    %166 = math.tanh %165 : vector<2x64xf32>
    %167 = arith.mulf %162, %166 : vector<2x64xf32>
    %168 = vector.extract_strided_slice %167 {offsets = [0, 0], sizes = [2, 32], strides = [1, 1]} : vector<2x64xf32> to vector<2x32xf32>
    %c0_79 = arith.constant 0 : index
    %c0_80 = arith.constant 0 : index
    %169 = vector.load %arg13[%c0_79, %c0_80] : memref<16x64xf32, #tpu.memory_space<vmem>>, vector<2x32xf32>
    tpu.vector_store %arg13[%c0_79, %c0_80], %168 {strides = array<i32>} : memref<16x64xf32, #tpu.memory_space<vmem>>, vector<2x32xf32>,
    %170 = vector.extract_strided_slice %167 {offsets = [0, 32], sizes = [2, 32], strides = [1, 1]} : vector<2x64xf32> to vector<2x32xf32>
    %c14_81 = arith.constant 14 : index
    %c32 = arith.constant 32 : index
    %171 = vector.load %arg13[%c14_81, %c32] : memref<16x64xf32, #tpu.memory_space<vmem>>, vector<2x32xf32>
    tpu.vector_store %arg13[%c14_81, %c32], %170 {strides = array<i32>} : memref<16x64xf32, #tpu.memory_space<vmem>>, vector<2x32xf32>,
    %172 = arith.truncf %167 : vector<2x64xf32> to vector<2x64xbf16>
    %cst_82 = arith.constant dense<0.000000e+00> : vector<2x256xf32>
    %173 = tpu.matmul %172, %101, %cst_82 {dimension_numbers = #tpu.dot_dimension_numbers<[1], [0], [0], [1], [0, 0, 1, 1], [], []>} : vector<2x64xbf16>, vector<64x256xbf16>, vector<2x256xf32> -> vector<2x256xf32>
    %174 = arith.addf %116, %173 : vector<2x256xf32>
    %175 = vector.extract_strided_slice %174 {offsets = [0, 0], sizes = [2, 192], strides = [1, 1]} : vector<2x256xf32> to vector<2x192xf32>
    %176 = arith.negf %175 : vector<2x192xf32>
    %177 = math.exp %176 : vector<2x192xf32>
    %cst_83 = arith.constant 1.000000e+00 : f32
    %178 = vector.broadcast %cst_83 : f32 to vector<2x192xf32>
    %179 = arith.addf %178, %177 : vector<2x192xf32>
    %180 = arith.divf %178, %179 : vector<2x192xf32>
    %181 = vector.extract_strided_slice %174 {offsets = [0, 192], sizes = [2, 64], strides = [1, 1]} : vector<2x256xf32> to vector<2x64xf32>
    %182 = math.tanh %181 : vector<2x64xf32>
    %183 = vector.extract_strided_slice %180 {offsets = [0, 0], sizes = [2, 64], strides = [1, 1]} : vector<2x192xf32> to vector<2x64xf32>
    %184 = vector.extract_strided_slice %180 {offsets = [0, 64], sizes = [2, 64], strides = [1, 1]} : vector<2x192xf32> to vector<2x64xf32>
    %185 = vector.extract_strided_slice %180 {offsets = [0, 128], sizes = [2, 64], strides = [1, 1]} : vector<2x192xf32> to vector<2x64xf32>
    %186 = arith.mulf %184, %165 : vector<2x64xf32>
    %187 = arith.mulf %183, %182 : vector<2x64xf32>
    %188 = arith.addf %186, %187 : vector<2x64xf32>
    %189 = math.tanh %188 : vector<2x64xf32>
    %190 = arith.mulf %185, %189 : vector<2x64xf32>
    %191 = vector.extract_strided_slice %190 {offsets = [0, 0], sizes = [2, 32], strides = [1, 1]} : vector<2x64xf32> to vector<2x32xf32>
    %c2_84 = arith.constant 2 : index
    %c0_85 = arith.constant 0 : index
    %192 = vector.load %arg13[%c2_84, %c0_85] : memref<16x64xf32, #tpu.memory_space<vmem>>, vector<2x32xf32>
    tpu.vector_store %arg13[%c2_84, %c0_85], %191 {strides = array<i32>} : memref<16x64xf32, #tpu.memory_space<vmem>>, vector<2x32xf32>,
    %193 = vector.extract_strided_slice %190 {offsets = [0, 32], sizes = [2, 32], strides = [1, 1]} : vector<2x64xf32> to vector<2x32xf32>
    %c12_86 = arith.constant 12 : index
    %c32_87 = arith.constant 32 : index
    %194 = vector.load %arg13[%c12_86, %c32_87] : memref<16x64xf32, #tpu.memory_space<vmem>>, vector<2x32xf32>
    tpu.vector_store %arg13[%c12_86, %c32_87], %193 {strides = array<i32>} : memref<16x64xf32, #tpu.memory_space<vmem>>, vector<2x32xf32>,
    %195 = arith.truncf %190 : vector<2x64xf32> to vector<2x64xbf16>
    %cst_88 = arith.constant dense<0.000000e+00> : vector<2x256xf32>
    %196 = tpu.matmul %195, %101, %cst_88 {dimension_numbers = #tpu.dot_dimension_numbers<[1], [0], [0], [1], [0, 0, 1, 1], [], []>} : vector<2x64xbf16>, vector<64x256xbf16>, vector<2x256xf32> -> vector<2x256xf32>
    %197 = arith.addf %121, %196 : vector<2x256xf32>
    %198 = vector.extract_strided_slice %197 {offsets = [0, 0], sizes = [2, 192], strides = [1, 1]} : vector<2x256xf32> to vector<2x192xf32>
    %199 = arith.negf %198 : vector<2x192xf32>
    %200 = math.exp %199 : vector<2x192xf32>
    %cst_89 = arith.constant 1.000000e+00 : f32
    %201 = vector.broadcast %cst_89 : f32 to vector<2x192xf32>
    %202 = arith.addf %201, %200 : vector<2x192xf32>
    %203 = arith.divf %201, %202 : vector<2x192xf32>
    %204 = vector.extract_strided_slice %197 {offsets = [0, 192], sizes = [2, 64], strides = [1, 1]} : vector<2x256xf32> to vector<2x64xf32>
    %205 = math.tanh %204 : vector<2x64xf32>
    %206 = vector.extract_strided_slice %203 {offsets = [0, 0], sizes = [2, 64], strides = [1, 1]} : vector<2x192xf32> to vector<2x64xf32>
    %207 = vector.extract_strided_slice %203 {offsets = [0, 64], sizes = [2, 64], strides = [1, 1]} : vector<2x192xf32> to vector<2x64xf32>
    %208 = vector.extract_strided_slice %203 {offsets = [0, 128], sizes = [2, 64], strides = [1, 1]} : vector<2x192xf32> to vector<2x64xf32>
    %209 = arith.mulf %207, %188 : vector<2x64xf32>
    %210 = arith.mulf %206, %205 : vector<2x64xf32>
    %211 = arith.addf %209, %210 : vector<2x64xf32>
    %212 = math.tanh %211 : vector<2x64xf32>
    %213 = arith.mulf %208, %212 : vector<2x64xf32>
    %214 = vector.extract_strided_slice %213 {offsets = [0, 0], sizes = [2, 32], strides = [1, 1]} : vector<2x64xf32> to vector<2x32xf32>
    %c4_90 = arith.constant 4 : index
    %c0_91 = arith.constant 0 : index
    %215 = vector.load %arg13[%c4_90, %c0_91] : memref<16x64xf32, #tpu.memory_space<vmem>>, vector<2x32xf32>
    tpu.vector_store %arg13[%c4_90, %c0_91], %214 {strides = array<i32>} : memref<16x64xf32, #tpu.memory_space<vmem>>, vector<2x32xf32>,
    %216 = vector.extract_strided_slice %213 {offsets = [0, 32], sizes = [2, 32], strides = [1, 1]} : vector<2x64xf32> to vector<2x32xf32>
    %c10_92 = arith.constant 10 : index
    %c32_93 = arith.constant 32 : index
    %217 = vector.load %arg13[%c10_92, %c32_93] : memref<16x64xf32, #tpu.memory_space<vmem>>, vector<2x32xf32>
    tpu.vector_store %arg13[%c10_92, %c32_93], %216 {strides = array<i32>} : memref<16x64xf32, #tpu.memory_space<vmem>>, vector<2x32xf32>,
    %218 = arith.truncf %213 : vector<2x64xf32> to vector<2x64xbf16>
    %cst_94 = arith.constant dense<0.000000e+00> : vector<2x256xf32>
    %219 = tpu.matmul %218, %101, %cst_94 {dimension_numbers = #tpu.dot_dimension_numbers<[1], [0], [0], [1], [0, 0, 1, 1], [], []>} : vector<2x64xbf16>, vector<64x256xbf16>, vector<2x256xf32> -> vector<2x256xf32>
    %220 = arith.addf %126, %219 : vector<2x256xf32>
    %221 = vector.extract_strided_slice %220 {offsets = [0, 0], sizes = [2, 192], strides = [1, 1]} : vector<2x256xf32> to vector<2x192xf32>
    %222 = arith.negf %221 : vector<2x192xf32>
    %223 = math.exp %222 : vector<2x192xf32>
    %cst_95 = arith.constant 1.000000e+00 : f32
    %224 = vector.broadcast %cst_95 : f32 to vector<2x192xf32>
    %225 = arith.addf %224, %223 : vector<2x192xf32>
    %226 = arith.divf %224, %225 : vector<2x192xf32>
    %227 = vector.extract_strided_slice %220 {offsets = [0, 192], sizes = [2, 64], strides = [1, 1]} : vector<2x256xf32> to vector<2x64xf32>
    %228 = math.tanh %227 : vector<2x64xf32>
    %229 = vector.extract_strided_slice %226 {offsets = [0, 0], sizes = [2, 64], strides = [1, 1]} : vector<2x192xf32> to vector<2x64xf32>
    %230 = vector.extract_strided_slice %226 {offsets = [0, 64], sizes = [2, 64], strides = [1, 1]} : vector<2x192xf32> to vector<2x64xf32>
    %231 = vector.extract_strided_slice %226 {offsets = [0, 128], sizes = [2, 64], strides = [1, 1]} : vector<2x192xf32> to vector<2x64xf32>
    %232 = arith.mulf %230, %211 : vector<2x64xf32>
    %233 = arith.mulf %229, %228 : vector<2x64xf32>
    %234 = arith.addf %232, %233 : vector<2x64xf32>
    %235 = math.tanh %234 : vector<2x64xf32>
    %236 = arith.mulf %231, %235 : vector<2x64xf32>
    %237 = vector.extract_strided_slice %236 {offsets = [0, 0], sizes = [2, 32], strides = [1, 1]} : vector<2x64xf32> to vector<2x32xf32>
    %c6_96 = arith.constant 6 : index
    %c0_97 = arith.constant 0 : index
    %238 = vector.load %arg13[%c6_96, %c0_97] : memref<16x64xf32, #tpu.memory_space<vmem>>, vector<2x32xf32>
    tpu.vector_store %arg13[%c6_96, %c0_97], %237 {strides = array<i32>} : memref<16x64xf32, #tpu.memory_space<vmem>>, vector<2x32xf32>,
    %239 = vector.extract_strided_slice %236 {offsets = [0, 32], sizes = [2, 32], strides = [1, 1]} : vector<2x64xf32> to vector<2x32xf32>
    %c8_98 = arith.constant 8 : index
    %c32_99 = arith.constant 32 : index
    %240 = vector.load %arg13[%c8_98, %c32_99] : memref<16x64xf32, #tpu.memory_space<vmem>>, vector<2x32xf32>
    tpu.vector_store %arg13[%c8_98, %c32_99], %239 {strides = array<i32>} : memref<16x64xf32, #tpu.memory_space<vmem>>, vector<2x32xf32>,
    %241 = arith.truncf %236 : vector<2x64xf32> to vector<2x64xbf16>
    %cst_100 = arith.constant dense<0.000000e+00> : vector<2x256xf32>
    %242 = tpu.matmul %241, %101, %cst_100 {dimension_numbers = #tpu.dot_dimension_numbers<[1], [0], [0], [1], [0, 0, 1, 1], [], []>} : vector<2x64xbf16>, vector<64x256xbf16>, vector<2x256xf32> -> vector<2x256xf32>
    %243 = arith.addf %131, %242 : vector<2x256xf32>
    %244 = vector.extract_strided_slice %243 {offsets = [0, 0], sizes = [2, 192], strides = [1, 1]} : vector<2x256xf32> to vector<2x192xf32>
    %245 = arith.negf %244 : vector<2x192xf32>
    %246 = math.exp %245 : vector<2x192xf32>
    %cst_101 = arith.constant 1.000000e+00 : f32
    %247 = vector.broadcast %cst_101 : f32 to vector<2x192xf32>
    %248 = arith.addf %247, %246 : vector<2x192xf32>
    %249 = arith.divf %247, %248 : vector<2x192xf32>
    %250 = vector.extract_strided_slice %243 {offsets = [0, 192], sizes = [2, 64], strides = [1, 1]} : vector<2x256xf32> to vector<2x64xf32>
    %251 = math.tanh %250 : vector<2x64xf32>
    %252 = vector.extract_strided_slice %249 {offsets = [0, 0], sizes = [2, 64], strides = [1, 1]} : vector<2x192xf32> to vector<2x64xf32>
    %253 = vector.extract_strided_slice %249 {offsets = [0, 64], sizes = [2, 64], strides = [1, 1]} : vector<2x192xf32> to vector<2x64xf32>
    %254 = vector.extract_strided_slice %249 {offsets = [0, 128], sizes = [2, 64], strides = [1, 1]} : vector<2x192xf32> to vector<2x64xf32>
    %255 = arith.mulf %253, %234 : vector<2x64xf32>
    %256 = arith.mulf %252, %251 : vector<2x64xf32>
    %257 = arith.addf %255, %256 : vector<2x64xf32>
    %258 = math.tanh %257 : vector<2x64xf32>
    %259 = arith.mulf %254, %258 : vector<2x64xf32>
    %260 = vector.extract_strided_slice %259 {offsets = [0, 0], sizes = [2, 32], strides = [1, 1]} : vector<2x64xf32> to vector<2x32xf32>
    %c8_102 = arith.constant 8 : index
    %c0_103 = arith.constant 0 : index
    %261 = vector.load %arg13[%c8_102, %c0_103] : memref<16x64xf32, #tpu.memory_space<vmem>>, vector<2x32xf32>
    tpu.vector_store %arg13[%c8_102, %c0_103], %260 {strides = array<i32>} : memref<16x64xf32, #tpu.memory_space<vmem>>, vector<2x32xf32>,
    %262 = vector.extract_strided_slice %259 {offsets = [0, 32], sizes = [2, 32], strides = [1, 1]} : vector<2x64xf32> to vector<2x32xf32>
    %c6_104 = arith.constant 6 : index
    %c32_105 = arith.constant 32 : index
    %263 = vector.load %arg13[%c6_104, %c32_105] : memref<16x64xf32, #tpu.memory_space<vmem>>, vector<2x32xf32>
    tpu.vector_store %arg13[%c6_104, %c32_105], %262 {strides = array<i32>} : memref<16x64xf32, #tpu.memory_space<vmem>>, vector<2x32xf32>,
    %264 = arith.truncf %259 : vector<2x64xf32> to vector<2x64xbf16>
    %cst_106 = arith.constant dense<0.000000e+00> : vector<2x256xf32>
    %265 = tpu.matmul %264, %101, %cst_106 {dimension_numbers = #tpu.dot_dimension_numbers<[1], [0], [0], [1], [0, 0, 1, 1], [], []>} : vector<2x64xbf16>, vector<64x256xbf16>, vector<2x256xf32> -> vector<2x256xf32>
    %266 = arith.addf %136, %265 : vector<2x256xf32>
    %267 = vector.extract_strided_slice %266 {offsets = [0, 0], sizes = [2, 192], strides = [1, 1]} : vector<2x256xf32> to vector<2x192xf32>
    %268 = arith.negf %267 : vector<2x192xf32>
    %269 = math.exp %268 : vector<2x192xf32>
    %cst_107 = arith.constant 1.000000e+00 : f32
    %270 = vector.broadcast %cst_107 : f32 to vector<2x192xf32>
    %271 = arith.addf %270, %269 : vector<2x192xf32>
    %272 = arith.divf %270, %271 : vector<2x192xf32>
    %273 = vector.extract_strided_slice %266 {offsets = [0, 192], sizes = [2, 64], strides = [1, 1]} : vector<2x256xf32> to vector<2x64xf32>
    %274 = math.tanh %273 : vector<2x64xf32>
    %275 = vector.extract_strided_slice %272 {offsets = [0, 0], sizes = [2, 64], strides = [1, 1]} : vector<2x192xf32> to vector<2x64xf32>
    %276 = vector.extract_strided_slice %272 {offsets = [0, 64], sizes = [2, 64], strides = [1, 1]} : vector<2x192xf32> to vector<2x64xf32>
    %277 = vector.extract_strided_slice %272 {offsets = [0, 128], sizes = [2, 64], strides = [1, 1]} : vector<2x192xf32> to vector<2x64xf32>
    %278 = arith.mulf %276, %257 : vector<2x64xf32>
    %279 = arith.mulf %275, %274 : vector<2x64xf32>
    %280 = arith.addf %278, %279 : vector<2x64xf32>
    %281 = math.tanh %280 : vector<2x64xf32>
    %282 = arith.mulf %277, %281 : vector<2x64xf32>
    %283 = vector.extract_strided_slice %282 {offsets = [0, 0], sizes = [2, 32], strides = [1, 1]} : vector<2x64xf32> to vector<2x32xf32>
    %c10_108 = arith.constant 10 : index
    %c0_109 = arith.constant 0 : index
    %284 = vector.load %arg13[%c10_108, %c0_109] : memref<16x64xf32, #tpu.memory_space<vmem>>, vector<2x32xf32>
    tpu.vector_store %arg13[%c10_108, %c0_109], %283 {strides = array<i32>} : memref<16x64xf32, #tpu.memory_space<vmem>>, vector<2x32xf32>,
    %285 = vector.extract_strided_slice %282 {offsets = [0, 32], sizes = [2, 32], strides = [1, 1]} : vector<2x64xf32> to vector<2x32xf32>
    %c4_110 = arith.constant 4 : index
    %c32_111 = arith.constant 32 : index
    %286 = vector.load %arg13[%c4_110, %c32_111] : memref<16x64xf32, #tpu.memory_space<vmem>>, vector<2x32xf32>
    tpu.vector_store %arg13[%c4_110, %c32_111], %285 {strides = array<i32>} : memref<16x64xf32, #tpu.memory_space<vmem>>, vector<2x32xf32>,
    %287 = arith.truncf %282 : vector<2x64xf32> to vector<2x64xbf16>
    %cst_112 = arith.constant dense<0.000000e+00> : vector<2x256xf32>
    %288 = tpu.matmul %287, %101, %cst_112 {dimension_numbers = #tpu.dot_dimension_numbers<[1], [0], [0], [1], [0, 0, 1, 1], [], []>} : vector<2x64xbf16>, vector<64x256xbf16>, vector<2x256xf32> -> vector<2x256xf32>
    %289 = arith.addf %141, %288 : vector<2x256xf32>
    %290 = vector.extract_strided_slice %289 {offsets = [0, 0], sizes = [2, 192], strides = [1, 1]} : vector<2x256xf32> to vector<2x192xf32>
    %291 = arith.negf %290 : vector<2x192xf32>
    %292 = math.exp %291 : vector<2x192xf32>
    %cst_113 = arith.constant 1.000000e+00 : f32
    %293 = vector.broadcast %cst_113 : f32 to vector<2x192xf32>
    %294 = arith.addf %293, %292 : vector<2x192xf32>
    %295 = arith.divf %293, %294 : vector<2x192xf32>
    %296 = vector.extract_strided_slice %289 {offsets = [0, 192], sizes = [2, 64], strides = [1, 1]} : vector<2x256xf32> to vector<2x64xf32>
    %297 = math.tanh %296 : vector<2x64xf32>
    %298 = vector.extract_strided_slice %295 {offsets = [0, 0], sizes = [2, 64], strides = [1, 1]} : vector<2x192xf32> to vector<2x64xf32>
    %299 = vector.extract_strided_slice %295 {offsets = [0, 64], sizes = [2, 64], strides = [1, 1]} : vector<2x192xf32> to vector<2x64xf32>
    %300 = vector.extract_strided_slice %295 {offsets = [0, 128], sizes = [2, 64], strides = [1, 1]} : vector<2x192xf32> to vector<2x64xf32>
    %301 = arith.mulf %299, %280 : vector<2x64xf32>
    %302 = arith.mulf %298, %297 : vector<2x64xf32>
    %303 = arith.addf %301, %302 : vector<2x64xf32>
    %304 = math.tanh %303 : vector<2x64xf32>
    %305 = arith.mulf %300, %304 : vector<2x64xf32>
    %306 = vector.extract_strided_slice %305 {offsets = [0, 0], sizes = [2, 32], strides = [1, 1]} : vector<2x64xf32> to vector<2x32xf32>
    %c12_114 = arith.constant 12 : index
    %c0_115 = arith.constant 0 : index
    %307 = vector.load %arg13[%c12_114, %c0_115] : memref<16x64xf32, #tpu.memory_space<vmem>>, vector<2x32xf32>
    tpu.vector_store %arg13[%c12_114, %c0_115], %306 {strides = array<i32>} : memref<16x64xf32, #tpu.memory_space<vmem>>, vector<2x32xf32>,
    %308 = vector.extract_strided_slice %305 {offsets = [0, 32], sizes = [2, 32], strides = [1, 1]} : vector<2x64xf32> to vector<2x32xf32>
    %c2_116 = arith.constant 2 : index
    %c32_117 = arith.constant 32 : index
    %309 = vector.load %arg13[%c2_116, %c32_117] : memref<16x64xf32, #tpu.memory_space<vmem>>, vector<2x32xf32>
    tpu.vector_store %arg13[%c2_116, %c32_117], %308 {strides = array<i32>} : memref<16x64xf32, #tpu.memory_space<vmem>>, vector<2x32xf32>,
    %310 = arith.truncf %305 : vector<2x64xf32> to vector<2x64xbf16>
    %cst_118 = arith.constant dense<0.000000e+00> : vector<2x256xf32>
    %311 = tpu.matmul %310, %101, %cst_118 {dimension_numbers = #tpu.dot_dimension_numbers<[1], [0], [0], [1], [0, 0, 1, 1], [], []>} : vector<2x64xbf16>, vector<64x256xbf16>, vector<2x256xf32> -> vector<2x256xf32>
    %312 = arith.addf %146, %311 : vector<2x256xf32>
    %313 = vector.extract_strided_slice %312 {offsets = [0, 0], sizes = [2, 192], strides = [1, 1]} : vector<2x256xf32> to vector<2x192xf32>
    %314 = arith.negf %313 : vector<2x192xf32>
    %315 = math.exp %314 : vector<2x192xf32>
    %cst_119 = arith.constant 1.000000e+00 : f32
    %316 = vector.broadcast %cst_119 : f32 to vector<2x192xf32>
    %317 = arith.addf %316, %315 : vector<2x192xf32>
    %318 = arith.divf %316, %317 : vector<2x192xf32>
    %319 = vector.extract_strided_slice %312 {offsets = [0, 192], sizes = [2, 64], strides = [1, 1]} : vector<2x256xf32> to vector<2x64xf32>
    %320 = math.tanh %319 : vector<2x64xf32>
    %321 = vector.extract_strided_slice %318 {offsets = [0, 0], sizes = [2, 64], strides = [1, 1]} : vector<2x192xf32> to vector<2x64xf32>
    %322 = vector.extract_strided_slice %318 {offsets = [0, 64], sizes = [2, 64], strides = [1, 1]} : vector<2x192xf32> to vector<2x64xf32>
    %323 = vector.extract_strided_slice %318 {offsets = [0, 128], sizes = [2, 64], strides = [1, 1]} : vector<2x192xf32> to vector<2x64xf32>
    %324 = arith.mulf %322, %303 : vector<2x64xf32>
    %325 = arith.mulf %321, %320 : vector<2x64xf32>
    %326 = arith.addf %324, %325 : vector<2x64xf32>
    %327 = math.tanh %326 : vector<2x64xf32>
    %328 = arith.mulf %323, %327 : vector<2x64xf32>
    %329 = vector.extract_strided_slice %328 {offsets = [0, 0], sizes = [2, 32], strides = [1, 1]} : vector<2x64xf32> to vector<2x32xf32>
    %c14_120 = arith.constant 14 : index
    %c0_121 = arith.constant 0 : index
    %330 = vector.load %arg13[%c14_120, %c0_121] : memref<16x64xf32, #tpu.memory_space<vmem>>, vector<2x32xf32>
    tpu.vector_store %arg13[%c14_120, %c0_121], %329 {strides = array<i32>} : memref<16x64xf32, #tpu.memory_space<vmem>>, vector<2x32xf32>,
    %331 = vector.extract_strided_slice %328 {offsets = [0, 32], sizes = [2, 32], strides = [1, 1]} : vector<2x64xf32> to vector<2x32xf32>
    %c0_122 = arith.constant 0 : index
    %c32_123 = arith.constant 32 : index
    %332 = vector.load %arg13[%c0_122, %c32_123] : memref<16x64xf32, #tpu.memory_space<vmem>>, vector<2x32xf32>
    tpu.vector_store %arg13[%c0_122, %c32_123], %331 {strides = array<i32>} : memref<16x64xf32, #tpu.memory_space<vmem>>, vector<2x32xf32>,
    %c0_124 = arith.constant 0 : index
    %c0_125 = arith.constant 0 : index
    %333 = vector.load %arg13[%c0_124, %c0_125] : memref<16x64xf32, #tpu.memory_space<vmem>>, vector<16x64xf32>
    %c0_126 = arith.constant 0 : index
    %c0_127 = arith.constant 0 : index
    %334 = vector.load %arg6[%c0_126, %c0_127] : memref<64x256xbf16, #tpu.memory_space<vmem>>, vector<64x256xbf16>
    %c0_128 = arith.constant 0 : index
    %c0_129 = arith.constant 0 : index
    %335 = vector.load %arg7[%c0_128, %c0_129] : memref<64x256xbf16, #tpu.memory_space<vmem>>, vector<64x256xbf16>
    %c0_130 = arith.constant 0 : index
    %c0_131 = arith.constant 0 : index
    %336 = vector.load %arg8[%c0_130, %c0_131] : memref<1x256xf32, #tpu.memory_space<vmem>>, vector<1x256xf32>
    %337 = arith.truncf %333 : vector<16x64xf32> to vector<16x64xbf16>
    %cst_132 = arith.constant dense<0.000000e+00> : vector<16x256xf32>
    %338 = tpu.matmul %337, %334, %cst_132 {dimension_numbers = #tpu.dot_dimension_numbers<[1], [0], [0], [1], [0, 0, 1, 1], [], []>} : vector<16x64xbf16>, vector<64x256xbf16>, vector<16x256xf32> -> vector<16x256xf32>
    %339 = vector.broadcast %336 : vector<1x256xf32> to vector<16x256xf32>
    %340 = arith.addf %338, %339 : vector<16x256xf32>
    %341 = vector.extract_strided_slice %340 {offsets = [0, 0], sizes = [2, 256], strides = [1, 1]} : vector<16x256xf32> to vector<2x256xf32>
    %342 = vector.extract_strided_slice %340 {offsets = [14, 0], sizes = [2, 256], strides = [1, 1]} : vector<16x256xf32> to vector<2x256xf32>
    %343 = vector.shape_cast %98 : vector<1x256xi1> to vector<1x256xi1>
    %344 = vector.broadcast %343 : vector<1x256xi1> to vector<2x256xi1>
    %345 = arith.select %344, %341, %342 : vector<2x256xi1>, vector<2x256xf32>
    %346 = vector.extract_strided_slice %340 {offsets = [2, 0], sizes = [2, 256], strides = [1, 1]} : vector<16x256xf32> to vector<2x256xf32>
    %347 = vector.extract_strided_slice %340 {offsets = [12, 0], sizes = [2, 256], strides = [1, 1]} : vector<16x256xf32> to vector<2x256xf32>
    %348 = vector.shape_cast %98 : vector<1x256xi1> to vector<1x256xi1>
    %349 = vector.broadcast %348 : vector<1x256xi1> to vector<2x256xi1>
    %350 = arith.select %349, %346, %347 : vector<2x256xi1>, vector<2x256xf32>
    %351 = vector.extract_strided_slice %340 {offsets = [4, 0], sizes = [2, 256], strides = [1, 1]} : vector<16x256xf32> to vector<2x256xf32>
    %352 = vector.extract_strided_slice %340 {offsets = [10, 0], sizes = [2, 256], strides = [1, 1]} : vector<16x256xf32> to vector<2x256xf32>
    %353 = vector.shape_cast %98 : vector<1x256xi1> to vector<1x256xi1>
    %354 = vector.broadcast %353 : vector<1x256xi1> to vector<2x256xi1>
    %355 = arith.select %354, %351, %352 : vector<2x256xi1>, vector<2x256xf32>
    %356 = vector.extract_strided_slice %340 {offsets = [6, 0], sizes = [2, 256], strides = [1, 1]} : vector<16x256xf32> to vector<2x256xf32>
    %357 = vector.extract_strided_slice %340 {offsets = [8, 0], sizes = [2, 256], strides = [1, 1]} : vector<16x256xf32> to vector<2x256xf32>
    %358 = vector.shape_cast %98 : vector<1x256xi1> to vector<1x256xi1>
    %359 = vector.broadcast %358 : vector<1x256xi1> to vector<2x256xi1>
    %360 = arith.select %359, %356, %357 : vector<2x256xi1>, vector<2x256xf32>
    %361 = vector.extract_strided_slice %340 {offsets = [8, 0], sizes = [2, 256], strides = [1, 1]} : vector<16x256xf32> to vector<2x256xf32>
    %362 = vector.extract_strided_slice %340 {offsets = [6, 0], sizes = [2, 256], strides = [1, 1]} : vector<16x256xf32> to vector<2x256xf32>
    %363 = vector.shape_cast %98 : vector<1x256xi1> to vector<1x256xi1>
    %364 = vector.broadcast %363 : vector<1x256xi1> to vector<2x256xi1>
    %365 = arith.select %364, %361, %362 : vector<2x256xi1>, vector<2x256xf32>
    %366 = vector.extract_strided_slice %340 {offsets = [10, 0], sizes = [2, 256], strides = [1, 1]} : vector<16x256xf32> to vector<2x256xf32>
    %367 = vector.extract_strided_slice %340 {offsets = [4, 0], sizes = [2, 256], strides = [1, 1]} : vector<16x256xf32> to vector<2x256xf32>
    %368 = vector.shape_cast %98 : vector<1x256xi1> to vector<1x256xi1>
    %369 = vector.broadcast %368 : vector<1x256xi1> to vector<2x256xi1>
    %370 = arith.select %369, %366, %367 : vector<2x256xi1>, vector<2x256xf32>
    %371 = vector.extract_strided_slice %340 {offsets = [12, 0], sizes = [2, 256], strides = [1, 1]} : vector<16x256xf32> to vector<2x256xf32>
    %372 = vector.extract_strided_slice %340 {offsets = [2, 0], sizes = [2, 256], strides = [1, 1]} : vector<16x256xf32> to vector<2x256xf32>
    %373 = vector.shape_cast %98 : vector<1x256xi1> to vector<1x256xi1>
    %374 = vector.broadcast %373 : vector<1x256xi1> to vector<2x256xi1>
    %375 = arith.select %374, %371, %372 : vector<2x256xi1>, vector<2x256xf32>
    %376 = vector.extract_strided_slice %340 {offsets = [14, 0], sizes = [2, 256], strides = [1, 1]} : vector<16x256xf32> to vector<2x256xf32>
    %377 = vector.extract_strided_slice %340 {offsets = [0, 0], sizes = [2, 256], strides = [1, 1]} : vector<16x256xf32> to vector<2x256xf32>
    %378 = vector.shape_cast %98 : vector<1x256xi1> to vector<1x256xi1>
    %379 = vector.broadcast %378 : vector<1x256xi1> to vector<2x256xi1>
    %380 = arith.select %379, %376, %377 : vector<2x256xi1>, vector<2x256xf32>
    %cst_133 = arith.constant 0.000000e+00 : f32
    %381 = vector.broadcast %cst_133 : f32 to vector<2x64xf32>
    %cst_134 = arith.constant 0.000000e+00 : f32
    %382 = vector.broadcast %cst_134 : f32 to vector<2x64xf32>
    %383 = arith.truncf %381 : vector<2x64xf32> to vector<2x64xbf16>
    %cst_135 = arith.constant dense<0.000000e+00> : vector<2x256xf32>
    %384 = tpu.matmul %383, %335, %cst_135 {dimension_numbers = #tpu.dot_dimension_numbers<[1], [0], [0], [1], [0, 0, 1, 1], [], []>} : vector<2x64xbf16>, vector<64x256xbf16>, vector<2x256xf32> -> vector<2x256xf32>
    %385 = arith.addf %345, %384 : vector<2x256xf32>
    %386 = vector.extract_strided_slice %385 {offsets = [0, 0], sizes = [2, 192], strides = [1, 1]} : vector<2x256xf32> to vector<2x192xf32>
    %387 = arith.negf %386 : vector<2x192xf32>
    %388 = math.exp %387 : vector<2x192xf32>
    %cst_136 = arith.constant 1.000000e+00 : f32
    %389 = vector.broadcast %cst_136 : f32 to vector<2x192xf32>
    %390 = arith.addf %389, %388 : vector<2x192xf32>
    %391 = arith.divf %389, %390 : vector<2x192xf32>
    %392 = vector.extract_strided_slice %385 {offsets = [0, 192], sizes = [2, 64], strides = [1, 1]} : vector<2x256xf32> to vector<2x64xf32>
    %393 = math.tanh %392 : vector<2x64xf32>
    %394 = vector.extract_strided_slice %391 {offsets = [0, 0], sizes = [2, 64], strides = [1, 1]} : vector<2x192xf32> to vector<2x64xf32>
    %395 = vector.extract_strided_slice %391 {offsets = [0, 64], sizes = [2, 64], strides = [1, 1]} : vector<2x192xf32> to vector<2x64xf32>
    %396 = vector.extract_strided_slice %391 {offsets = [0, 128], sizes = [2, 64], strides = [1, 1]} : vector<2x192xf32> to vector<2x64xf32>
    %397 = arith.mulf %395, %382 : vector<2x64xf32>
    %398 = arith.mulf %394, %393 : vector<2x64xf32>
    %399 = arith.addf %397, %398 : vector<2x64xf32>
    %400 = math.tanh %399 : vector<2x64xf32>
    %401 = arith.mulf %396, %400 : vector<2x64xf32>
    %402 = arith.truncf %401 : vector<2x64xf32> to vector<2x64xbf16>
    %cst_137 = arith.constant dense<0.000000e+00> : vector<2x256xf32>
    %403 = tpu.matmul %402, %335, %cst_137 {dimension_numbers = #tpu.dot_dimension_numbers<[1], [0], [0], [1], [0, 0, 1, 1], [], []>} : vector<2x64xbf16>, vector<64x256xbf16>, vector<2x256xf32> -> vector<2x256xf32>
    %404 = arith.addf %350, %403 : vector<2x256xf32>
    %405 = vector.extract_strided_slice %404 {offsets = [0, 0], sizes = [2, 192], strides = [1, 1]} : vector<2x256xf32> to vector<2x192xf32>
    %406 = arith.negf %405 : vector<2x192xf32>
    %407 = math.exp %406 : vector<2x192xf32>
    %cst_138 = arith.constant 1.000000e+00 : f32
    %408 = vector.broadcast %cst_138 : f32 to vector<2x192xf32>
    %409 = arith.addf %408, %407 : vector<2x192xf32>
    %410 = arith.divf %408, %409 : vector<2x192xf32>
    %411 = vector.extract_strided_slice %404 {offsets = [0, 192], sizes = [2, 64], strides = [1, 1]} : vector<2x256xf32> to vector<2x64xf32>
    %412 = math.tanh %411 : vector<2x64xf32>
    %413 = vector.extract_strided_slice %410 {offsets = [0, 0], sizes = [2, 64], strides = [1, 1]} : vector<2x192xf32> to vector<2x64xf32>
    %414 = vector.extract_strided_slice %410 {offsets = [0, 64], sizes = [2, 64], strides = [1, 1]} : vector<2x192xf32> to vector<2x64xf32>
    %415 = vector.extract_strided_slice %410 {offsets = [0, 128], sizes = [2, 64], strides = [1, 1]} : vector<2x192xf32> to vector<2x64xf32>
    %416 = arith.mulf %414, %399 : vector<2x64xf32>
    %417 = arith.mulf %413, %412 : vector<2x64xf32>
    %418 = arith.addf %416, %417 : vector<2x64xf32>
    %419 = math.tanh %418 : vector<2x64xf32>
    %420 = arith.mulf %415, %419 : vector<2x64xf32>
    %421 = arith.truncf %420 : vector<2x64xf32> to vector<2x64xbf16>
    %cst_139 = arith.constant dense<0.000000e+00> : vector<2x256xf32>
    %422 = tpu.matmul %421, %335, %cst_139 {dimension_numbers = #tpu.dot_dimension_numbers<[1], [0], [0], [1], [0, 0, 1, 1], [], []>} : vector<2x64xbf16>, vector<64x256xbf16>, vector<2x256xf32> -> vector<2x256xf32>
    %423 = arith.addf %355, %422 : vector<2x256xf32>
    %424 = vector.extract_strided_slice %423 {offsets = [0, 0], sizes = [2, 192], strides = [1, 1]} : vector<2x256xf32> to vector<2x192xf32>
    %425 = arith.negf %424 : vector<2x192xf32>
    %426 = math.exp %425 : vector<2x192xf32>
    %cst_140 = arith.constant 1.000000e+00 : f32
    %427 = vector.broadcast %cst_140 : f32 to vector<2x192xf32>
    %428 = arith.addf %427, %426 : vector<2x192xf32>
    %429 = arith.divf %427, %428 : vector<2x192xf32>
    %430 = vector.extract_strided_slice %423 {offsets = [0, 192], sizes = [2, 64], strides = [1, 1]} : vector<2x256xf32> to vector<2x64xf32>
    %431 = math.tanh %430 : vector<2x64xf32>
    %432 = vector.extract_strided_slice %429 {offsets = [0, 0], sizes = [2, 64], strides = [1, 1]} : vector<2x192xf32> to vector<2x64xf32>
    %433 = vector.extract_strided_slice %429 {offsets = [0, 64], sizes = [2, 64], strides = [1, 1]} : vector<2x192xf32> to vector<2x64xf32>
    %434 = vector.extract_strided_slice %429 {offsets = [0, 128], sizes = [2, 64], strides = [1, 1]} : vector<2x192xf32> to vector<2x64xf32>
    %435 = arith.mulf %433, %418 : vector<2x64xf32>
    %436 = arith.mulf %432, %431 : vector<2x64xf32>
    %437 = arith.addf %435, %436 : vector<2x64xf32>
    %438 = math.tanh %437 : vector<2x64xf32>
    %439 = arith.mulf %434, %438 : vector<2x64xf32>
    %440 = arith.truncf %439 : vector<2x64xf32> to vector<2x64xbf16>
    %cst_141 = arith.constant dense<0.000000e+00> : vector<2x256xf32>
    %441 = tpu.matmul %440, %335, %cst_141 {dimension_numbers = #tpu.dot_dimension_numbers<[1], [0], [0], [1], [0, 0, 1, 1], [], []>} : vector<2x64xbf16>, vector<64x256xbf16>, vector<2x256xf32> -> vector<2x256xf32>
    %442 = arith.addf %360, %441 : vector<2x256xf32>
    %443 = vector.extract_strided_slice %442 {offsets = [0, 0], sizes = [2, 192], strides = [1, 1]} : vector<2x256xf32> to vector<2x192xf32>
    %444 = arith.negf %443 : vector<2x192xf32>
    %445 = math.exp %444 : vector<2x192xf32>
    %cst_142 = arith.constant 1.000000e+00 : f32
    %446 = vector.broadcast %cst_142 : f32 to vector<2x192xf32>
    %447 = arith.addf %446, %445 : vector<2x192xf32>
    %448 = arith.divf %446, %447 : vector<2x192xf32>
    %449 = vector.extract_strided_slice %442 {offsets = [0, 192], sizes = [2, 64], strides = [1, 1]} : vector<2x256xf32> to vector<2x64xf32>
    %450 = math.tanh %449 : vector<2x64xf32>
    %451 = vector.extract_strided_slice %448 {offsets = [0, 0], sizes = [2, 64], strides = [1, 1]} : vector<2x192xf32> to vector<2x64xf32>
    %452 = vector.extract_strided_slice %448 {offsets = [0, 64], sizes = [2, 64], strides = [1, 1]} : vector<2x192xf32> to vector<2x64xf32>
    %453 = vector.extract_strided_slice %448 {offsets = [0, 128], sizes = [2, 64], strides = [1, 1]} : vector<2x192xf32> to vector<2x64xf32>
    %454 = arith.mulf %452, %437 : vector<2x64xf32>
    %455 = arith.mulf %451, %450 : vector<2x64xf32>
    %456 = arith.addf %454, %455 : vector<2x64xf32>
    %457 = math.tanh %456 : vector<2x64xf32>
    %458 = arith.mulf %453, %457 : vector<2x64xf32>
    %459 = arith.truncf %458 : vector<2x64xf32> to vector<2x64xbf16>
    %cst_143 = arith.constant dense<0.000000e+00> : vector<2x256xf32>
    %460 = tpu.matmul %459, %335, %cst_143 {dimension_numbers = #tpu.dot_dimension_numbers<[1], [0], [0], [1], [0, 0, 1, 1], [], []>} : vector<2x64xbf16>, vector<64x256xbf16>, vector<2x256xf32> -> vector<2x256xf32>
    %461 = arith.addf %365, %460 : vector<2x256xf32>
    %462 = vector.extract_strided_slice %461 {offsets = [0, 0], sizes = [2, 192], strides = [1, 1]} : vector<2x256xf32> to vector<2x192xf32>
    %463 = arith.negf %462 : vector<2x192xf32>
    %464 = math.exp %463 : vector<2x192xf32>
    %cst_144 = arith.constant 1.000000e+00 : f32
    %465 = vector.broadcast %cst_144 : f32 to vector<2x192xf32>
    %466 = arith.addf %465, %464 : vector<2x192xf32>
    %467 = arith.divf %465, %466 : vector<2x192xf32>
    %468 = vector.extract_strided_slice %461 {offsets = [0, 192], sizes = [2, 64], strides = [1, 1]} : vector<2x256xf32> to vector<2x64xf32>
    %469 = math.tanh %468 : vector<2x64xf32>
    %470 = vector.extract_strided_slice %467 {offsets = [0, 0], sizes = [2, 64], strides = [1, 1]} : vector<2x192xf32> to vector<2x64xf32>
    %471 = vector.extract_strided_slice %467 {offsets = [0, 64], sizes = [2, 64], strides = [1, 1]} : vector<2x192xf32> to vector<2x64xf32>
    %472 = vector.extract_strided_slice %467 {offsets = [0, 128], sizes = [2, 64], strides = [1, 1]} : vector<2x192xf32> to vector<2x64xf32>
    %473 = arith.mulf %471, %456 : vector<2x64xf32>
    %474 = arith.mulf %470, %469 : vector<2x64xf32>
    %475 = arith.addf %473, %474 : vector<2x64xf32>
    %476 = math.tanh %475 : vector<2x64xf32>
    %477 = arith.mulf %472, %476 : vector<2x64xf32>
    %478 = arith.truncf %477 : vector<2x64xf32> to vector<2x64xbf16>
    %cst_145 = arith.constant dense<0.000000e+00> : vector<2x256xf32>
    %479 = tpu.matmul %478, %335, %cst_145 {dimension_numbers = #tpu.dot_dimension_numbers<[1], [0], [0], [1], [0, 0, 1, 1], [], []>} : vector<2x64xbf16>, vector<64x256xbf16>, vector<2x256xf32> -> vector<2x256xf32>
    %480 = arith.addf %370, %479 : vector<2x256xf32>
    %481 = vector.extract_strided_slice %480 {offsets = [0, 0], sizes = [2, 192], strides = [1, 1]} : vector<2x256xf32> to vector<2x192xf32>
    %482 = arith.negf %481 : vector<2x192xf32>
    %483 = math.exp %482 : vector<2x192xf32>
    %cst_146 = arith.constant 1.000000e+00 : f32
    %484 = vector.broadcast %cst_146 : f32 to vector<2x192xf32>
    %485 = arith.addf %484, %483 : vector<2x192xf32>
    %486 = arith.divf %484, %485 : vector<2x192xf32>
    %487 = vector.extract_strided_slice %480 {offsets = [0, 192], sizes = [2, 64], strides = [1, 1]} : vector<2x256xf32> to vector<2x64xf32>
    %488 = math.tanh %487 : vector<2x64xf32>
    %489 = vector.extract_strided_slice %486 {offsets = [0, 0], sizes = [2, 64], strides = [1, 1]} : vector<2x192xf32> to vector<2x64xf32>
    %490 = vector.extract_strided_slice %486 {offsets = [0, 64], sizes = [2, 64], strides = [1, 1]} : vector<2x192xf32> to vector<2x64xf32>
    %491 = vector.extract_strided_slice %486 {offsets = [0, 128], sizes = [2, 64], strides = [1, 1]} : vector<2x192xf32> to vector<2x64xf32>
    %492 = arith.mulf %490, %475 : vector<2x64xf32>
    %493 = arith.mulf %489, %488 : vector<2x64xf32>
    %494 = arith.addf %492, %493 : vector<2x64xf32>
    %495 = math.tanh %494 : vector<2x64xf32>
    %496 = arith.mulf %491, %495 : vector<2x64xf32>
    %497 = arith.truncf %496 : vector<2x64xf32> to vector<2x64xbf16>
    %cst_147 = arith.constant dense<0.000000e+00> : vector<2x256xf32>
    %498 = tpu.matmul %497, %335, %cst_147 {dimension_numbers = #tpu.dot_dimension_numbers<[1], [0], [0], [1], [0, 0, 1, 1], [], []>} : vector<2x64xbf16>, vector<64x256xbf16>, vector<2x256xf32> -> vector<2x256xf32>
    %499 = arith.addf %375, %498 : vector<2x256xf32>
    %500 = vector.extract_strided_slice %499 {offsets = [0, 0], sizes = [2, 192], strides = [1, 1]} : vector<2x256xf32> to vector<2x192xf32>
    %501 = arith.negf %500 : vector<2x192xf32>
    %502 = math.exp %501 : vector<2x192xf32>
    %cst_148 = arith.constant 1.000000e+00 : f32
    %503 = vector.broadcast %cst_148 : f32 to vector<2x192xf32>
    %504 = arith.addf %503, %502 : vector<2x192xf32>
    %505 = arith.divf %503, %504 : vector<2x192xf32>
    %506 = vector.extract_strided_slice %499 {offsets = [0, 192], sizes = [2, 64], strides = [1, 1]} : vector<2x256xf32> to vector<2x64xf32>
    %507 = math.tanh %506 : vector<2x64xf32>
    %508 = vector.extract_strided_slice %505 {offsets = [0, 0], sizes = [2, 64], strides = [1, 1]} : vector<2x192xf32> to vector<2x64xf32>
    %509 = vector.extract_strided_slice %505 {offsets = [0, 64], sizes = [2, 64], strides = [1, 1]} : vector<2x192xf32> to vector<2x64xf32>
    %510 = vector.extract_strided_slice %505 {offsets = [0, 128], sizes = [2, 64], strides = [1, 1]} : vector<2x192xf32> to vector<2x64xf32>
    %511 = arith.mulf %509, %494 : vector<2x64xf32>
    %512 = arith.mulf %508, %507 : vector<2x64xf32>
    %513 = arith.addf %511, %512 : vector<2x64xf32>
    %514 = math.tanh %513 : vector<2x64xf32>
    %515 = arith.mulf %510, %514 : vector<2x64xf32>
    %516 = arith.truncf %515 : vector<2x64xf32> to vector<2x64xbf16>
    %cst_149 = arith.constant dense<0.000000e+00> : vector<2x256xf32>
    %517 = tpu.matmul %516, %335, %cst_149 {dimension_numbers = #tpu.dot_dimension_numbers<[1], [0], [0], [1], [0, 0, 1, 1], [], []>} : vector<2x64xbf16>, vector<64x256xbf16>, vector<2x256xf32> -> vector<2x256xf32>
    %518 = arith.addf %380, %517 : vector<2x256xf32>
    %519 = vector.extract_strided_slice %518 {offsets = [0, 0], sizes = [2, 192], strides = [1, 1]} : vector<2x256xf32> to vector<2x192xf32>
    %520 = arith.negf %519 : vector<2x192xf32>
    %521 = math.exp %520 : vector<2x192xf32>
    %cst_150 = arith.constant 1.000000e+00 : f32
    %522 = vector.broadcast %cst_150 : f32 to vector<2x192xf32>
    %523 = arith.addf %522, %521 : vector<2x192xf32>
    %524 = arith.divf %522, %523 : vector<2x192xf32>
    %525 = vector.extract_strided_slice %518 {offsets = [0, 192], sizes = [2, 64], strides = [1, 1]} : vector<2x256xf32> to vector<2x64xf32>
    %526 = math.tanh %525 : vector<2x64xf32>
    %527 = vector.extract_strided_slice %524 {offsets = [0, 0], sizes = [2, 64], strides = [1, 1]} : vector<2x192xf32> to vector<2x64xf32>
    %528 = vector.extract_strided_slice %524 {offsets = [0, 64], sizes = [2, 64], strides = [1, 1]} : vector<2x192xf32> to vector<2x64xf32>
    %529 = vector.extract_strided_slice %524 {offsets = [0, 128], sizes = [2, 64], strides = [1, 1]} : vector<2x192xf32> to vector<2x64xf32>
    %530 = arith.mulf %528, %513 : vector<2x64xf32>
    %531 = arith.mulf %527, %526 : vector<2x64xf32>
    %532 = arith.addf %530, %531 : vector<2x64xf32>
    %533 = math.tanh %532 : vector<2x64xf32>
    %534 = arith.mulf %529, %533 : vector<2x64xf32>
    %c0_151 = arith.constant 0 : index
    %c0_152 = arith.constant 0 : index
    %535 = vector.load %arg9[%c0_151, %c0_152] : memref<64x2xf32, #tpu.memory_space<vmem>>, vector<64x2xf32>
    %cst_153 = arith.constant dense<0.000000e+00> : vector<2x2xf32>
    %536 = tpu.matmul %534, %535, %cst_153 {dimension_numbers = #tpu.dot_dimension_numbers<[1], [0], [0], [1], [0, 0, 1, 1], [], []>} : vector<2x64xf32>, vector<64x2xf32>, vector<2x2xf32> -> vector<2x2xf32>
    %c0_154 = arith.constant 0 : index
    %c0_155 = arith.constant 0 : index
    %537 = vector.load %arg10[%c0_154, %c0_155] : memref<1x2xf32, #tpu.memory_space<vmem>>, vector<1x2xf32>
    %538 = vector.broadcast %537 : vector<1x2xf32> to vector<2x2xf32>
    %539 = arith.addf %536, %538 : vector<2x2xf32>
    %cst_156 = arith.constant dense<0xFF800000> : vector<2xf32>
    %540 = vector.multi_reduction <maximumf>, %539, %cst_156 [1] : vector<2x2xf32> to vector<2xf32>
    %541 = vector.shape_cast %540 : vector<2xf32> to vector<2x1xf32>
    %542 = vector.broadcast %541 : vector<2x1xf32> to vector<2x2xf32>
    %543 = arith.subf %539, %542 : vector<2x2xf32>
    %544 = math.exp %543 : vector<2x2xf32>
    %cst_157 = arith.constant dense<0.000000e+00> : vector<2xf32>
    %545 = vector.multi_reduction <add>, %544, %cst_157 [1] : vector<2x2xf32> to vector<2xf32>
    %546 = vector.shape_cast %545 : vector<2xf32> to vector<2x1xf32>
    %547 = math.log %546 : vector<2x1xf32>
    %548 = vector.broadcast %547 : vector<2x1xf32> to vector<2x2xf32>
    %549 = arith.subf %543, %548 : vector<2x2xf32>
    %c0_158 = arith.constant 0 : index
    %c0_159 = arith.constant 0 : index
    %550 = vector.load %arg11[%c0_158, %c0_159] : memref<2x2xf32, #tpu.memory_space<vmem>>, vector<2x2xf32>
    tpu.vector_store %arg11[%c0_158, %c0_159], %549 {strides = array<i32>} : memref<2x2xf32, #tpu.memory_space<vmem>>, vector<2x2xf32>,
    return
  }
  func.func @transform_0(%arg0: i32, %arg1: memref<16xi32, #tpu.memory_space<smem>>) -> (i32, i32, i32) {
    %c0_i32 = arith.constant 0 : i32
    %c0_i32_0 = arith.constant 0 : i32
    %c0_i32_1 = arith.constant 0 : i32
    %c0_i32_2 = arith.constant 0 : i32
    return %c0_i32, %c0_i32_0, %c0_i32_1 : i32, i32, i32
  }
  func.func @transform_1(%arg0: i32, %arg1: memref<16xi32, #tpu.memory_space<smem>>) -> (i32, i32) {
    %c0_i32 = arith.constant 0 : i32
    %c0_i32_0 = arith.constant 0 : i32
    %c0_i32_1 = arith.constant 0 : i32
    return %c0_i32, %c0_i32_0 : i32, i32
  }
  func.func @transform_2(%arg0: i32, %arg1: memref<16xi32, #tpu.memory_space<smem>>) -> (i32, i32) {
    %c0_i32 = arith.constant 0 : i32
    %c0_i32_0 = arith.constant 0 : i32
    %c0_i32_1 = arith.constant 0 : i32
    return %c0_i32, %c0_i32_0 : i32, i32
  }
  func.func @transform_3(%arg0: i32, %arg1: memref<16xi32, #tpu.memory_space<smem>>) -> (i32, i32) {
    %c0_i32 = arith.constant 0 : i32
    %c0_i32_0 = arith.constant 0 : i32
    %c0_i32_1 = arith.constant 0 : i32
    return %c0_i32, %c0_i32_0 : i32, i32
  }
  func.func @transform_4(%arg0: i32, %arg1: memref<16xi32, #tpu.memory_space<smem>>) -> (i32, i32) {
    %c0_i32 = arith.constant 0 : i32
    %c0_i32_0 = arith.constant 0 : i32
    %c0_i32_1 = arith.constant 0 : i32
    return %c0_i32, %c0_i32_0 : i32, i32
  }
  func.func @transform_5(%arg0: i32, %arg1: memref<16xi32, #tpu.memory_space<smem>>) -> (i32, i32) {
    %c0_i32 = arith.constant 0 : i32
    %c0_i32_0 = arith.constant 0 : i32
    %c0_i32_1 = arith.constant 0 : i32
    return %c0_i32, %c0_i32_0 : i32, i32
  }
  func.func @transform_6(%arg0: i32, %arg1: memref<16xi32, #tpu.memory_space<smem>>) -> (i32, i32) {
    %c0_i32 = arith.constant 0 : i32
    %c0_i32_0 = arith.constant 0 : i32
    %c0_i32_1 = arith.constant 0 : i32
    return %c0_i32, %c0_i32_0 : i32, i32
  }
  func.func @transform_7(%arg0: i32, %arg1: memref<16xi32, #tpu.memory_space<smem>>) -> (i32, i32) {
    %c0_i32 = arith.constant 0 : i32
    %c0_i32_0 = arith.constant 0 : i32
    %c0_i32_1 = arith.constant 0 : i32
    return %c0_i32, %c0_i32_0 : i32, i32
  }
  func.func @transform_8(%arg0: i32, %arg1: memref<16xi32, #tpu.memory_space<smem>>) -> (i32, i32) {
    %c0_i32 = arith.constant 0 : i32
    %c0_i32_0 = arith.constant 0 : i32
    %c0_i32_1 = arith.constant 0 : i32
    return %c0_i32, %c0_i32_0 : i32, i32
  }
  func.func @transform_9(%arg0: i32, %arg1: memref<16xi32, #tpu.memory_space<smem>>) -> (i32, i32) {
    %c0_i32 = arith.constant 0 : i32
    %c0_i32_0 = arith.constant 0 : i32
    %c0_i32_1 = arith.constant 0 : i32
    return %c0_i32, %c0_i32_0 : i32, i32
  }
}

</mosaic_0001>

<bundles_post_ra>
// kernel: my_model_forward.1
= control target key start
LH: loop header
LB: loop body
LE: loop exit
PB: predicated region body
PF: predicated region fallthrough
CT: control target
= control target key end

     0   :  { %s3314_s0 = inlined_call_operand.vmem [shape: s32[16], index: 0, kind: input, shape index: {}]   ;;  %s3315_s1 = inlined_call_operand.hbm [shape: f32[50,1,128], index: 1, kind: input, shape index: {}]   ;;  %s3316_s2 = inlined_call_operand.hbm [shape: bf16[128,256], index: 2, kind: input, shape index: {}]   ;;  %s3317_s3 = inlined_call_operand.vmem [shape: bf16[64,256], index: 3, kind: input, shape index: {}]   ;;  %s3318_s4 = inlined_call_operand.vmem [shape: f32[1,256], index: 4, kind: input, shape index: {}]   ;;  %s3319_s5 = inlined_call_operand.hbm [shape: bf16[64,256], index: 5, kind: input, shape index: {}]   ;;  %s3320_s6 = inlined_call_operand.hbm [shape: bf16[64,256], index: 6, kind: input, shape index: {}]   ;;  %s3321_s7 = inlined_call_operand.vmem [shape: f32[1,256], index: 7, kind: input, shape index: {}]   ;;  %s3322_s8 = inlined_call_operand.vmem [shape: f32[64,2], index: 8, kind: input, shape index: {}]   ;;  %s3323_s9 = inlined_call_operand.vmem [shape: f32[1,2], index: 9, kind: input, shape index: {}]   ;;  %s3324_s10 = inlined_call_operand.hbm [shape: f32[2,2], index: 10, kind: output, shape index: {}]  }
   0x1   :  { %s15_s15 = sshll.u32 %s3314_s0, 4  ;;  %s16_s15 = int_to_ptr.vmem [resolvable:$true] %s15_s15 }
   0x2   :  { %s2545_s16 = scalar_lea.vmem %s16_s15, 16  ;;  %p2550_p1 = scmp.lt.s32.totalorder %s16_s15, %s16_s15 }
   0x3   :  { %p2546_p0 = scmp.ne.s32.totalorder %s16_s15, %s2545_s16  ;;  %p2551_p2 = scmp.lt.s32.totalorder %s2545_s16, %s2545_s16 }
   0x5   :  { %p2552_p3 = por %p2551_p2, %p2550_p1 }
   0x7   :  { %p2553_p4 = pnand %p2552_p3, %p2546_p0 }
   0x9   :  { %2556 = shalt.err (!%p2553_p4)  }
   0xa   :  { %s2677_s17 = smov [#allocation5]  }
   0xb   :  { %18 = dma.vmem_to_smem %s16_s15, 16, %s2677_s17, [#allocation4] }
   0xc   :  { %2667 = dma.done.wait [#allocation4], 16 }
   0xd   :  { %2668 = vsyncadd [#allocation4], 4294967280 }
   0xe   :  { %20 = sfence }
   0xf   :  { %21 = vsyncpa [#allocation7], 0 }
  0x10   :  { %22 = vsyncpa [#allocation10], 0 }
  0x11   :  { %23 = vsyncpa [#allocation13], 0 }
  0x12   :  { %24 = vsyncpa [#allocation8], 0  ;;  %s2678_s18 = smov [#allocation9]   ;;  %s2557_s21 = scalar_lea.hbm %s3316_s2, 2048 }
  0x13   :  { %s42_s19 = sshll.u32 %s2678_s18, 4  ;;  %p2558_p5 = scmp.ne.s32.totalorder %s3316_s2, %s2557_s21  ;;  %s43_s19 = int_to_ptr.vmem [resolvable:$true] %s42_s19 }
  0x14   :  { %p2561_p6 = scmp.lt.u32.totalorder %s2557_s21, %s3316_s2 }
  0x16   :  { %p2563_p7 = pnand %p2561_p6, %p2558_p5 }
  0x18   :  { %2566 = shalt.err (!%p2563_p7)
}
  0x19   :  { %s2567_s26 = scalar_lea.vmem %s43_s19, 2048  ;;  %p2572_p9 = scmp.lt.s32.totalorder %s43_s19, %s43_s19 }
  0x1a   :  { %p2568_p8 = scmp.ne.s32.totalorder %s43_s19, %s2567_s26  ;;  %p2573_p10 = scmp.lt.s32.totalorder %s2567_s26, %s2567_s26 }
  0x1c   :  { %p2574_p11 = por %p2573_p10, %p2572_p9 }
  0x1e   :  { %p2575_p12 = pnand %p2574_p11, %p2568_p8 }
  0x20   :  { %2578 = shalt.err (!%p2575_p12)
}
  0x21   :  { %s2679_s27 = smov 128   ;;  %s2680_s28 = smov 8  }
  0x22   :  { %48 = dma.hbm_to_vmem [thread:$0]  %s3316_s2, 2048, %s43_s19, [#allocation10], %s2679_s27, %s2679_s27, %s2680_s28  }
  0x23   :  { %s2681_s11 = smov [#allocation6]   ;;  %s2579_s15 = scalar_lea.hbm %s3315_s1, 800 }
  0x24   :  { %s30_s12 = sshll.u32 %s2681_s11, 4  ;;  %p2580_p13 = scmp.ne.s32.totalorder %s3315_s1, %s2579_s15  ;;  %s31_s12 = int_to_ptr.vmem [resolvable:$true] %s30_s12 }
  0x25   :  { %p2583_p0 = scmp.lt.u32.totalorder %s2579_s15, %s3315_s1 }
  0x27   :  { %p2585_p1 = pnand %p2583_p0, %p2580_p13 }
  0x29   :  { %2588 = shalt.err (!%p2585_p1)
}
  0x2a   :  { %s2589_s20 = scalar_lea.vmem %s31_s12, 800  ;;  %p2594_p3 = scmp.lt.s32.totalorder %s31_s12, %s31_s12 }
  0x2b   :  { %p2590_p2 = scmp.ne.s32.totalorder %s31_s12, %s2589_s20  ;;  %p2595_p4 = scmp.lt.s32.totalorder %s2589_s20, %s2589_s20 }
  0x2d   :  { %p2596_p5 = por %p2595_p4, %p2594_p3 }
  0x2f   :  { %p2597_p6 = pnand %p2596_p5, %p2590_p2 }
  0x31   :  { %2600 = shalt.err (!%p2597_p6)
}
  0x32   :  { %s2682_s2 = smov 16   ;;  %s2683_s19 = smov 1  }
  0x33   :  { %36 = dma.hbm_to_vmem [thread:$0]  %s3315_s1, 800, %s31_s12, [#allocation7], %s2682_s2, %s2682_s2, %s2683_s19  }
  0x34   :  { %s2684_s23 = smov [#allocation11]   ;;  %s2685_s25 = smov [#allocation12]  }
  0x35   :  { %s58_s24 = sshll.u32 %s2684_s23, 4  ;;  %s70_s26 = sshll.u32 %s2685_s25, 4  ;;  %s59_s24 = int_to_ptr.vmem [resolvable:$true] %s58_s24  ;;  %s2777_s26 = int_to_ptr.vmem [resolvable:$true] %s70_s26 }
  0x36   :  { %s2601_s11 = scalar_lea.hbm %s3319_s5, 1024 }
  0x37   :  { %p2602_p7 = scmp.ne.s32.totalorder %s3319_s5, %s2601_s11  ;;  %p2605_p8 = scmp.lt.u32.totalorder %s2601_s11, %s3319_s5 }
  0x39   :  { %p2607_p9 = pnand %p2605_p8, %p2602_p7 }
  0x3b   :  { %2610 = shalt.err (!%p2607_p9)
}
  0x3c   :  { %s2611_s1 = scalar_lea.vmem %s59_s24, 1024  ;;  %p2616_p11 = scmp.lt.s32.totalorder %s59_s24, %s59_s24 }
  0x3d   :  { %p2612_p10 = scmp.ne.s32.totalorder %s59_s24, %s2611_s1  ;;  %p2617_p12 = scmp.lt.s32.totalorder %s2611_s1, %s2611_s1 }
  0x3f   :  { %p2618_p13 = por %p2617_p12, %p2616_p11 }
  0x41   :  { %p2619_p0 = pnand %p2618_p13, %p2612_p10 }
  0x43   :  { %2622 = shalt.err (!%p2619_p0)
}
  0x44   :  { %64 = dma.hbm_to_vmem [thread:$0]  %s3319_s5, 1024, %s59_s24, [#allocation10], %s2679_s27, %s2679_s27, %s2680_s28  }
  0x45   :  { %s2623_s20 = scalar_lea.hbm %s3320_s6, 1024 }
  0x46   :  { %p2624_p1 = scmp.ne.s32.totalorder %s3320_s6, %s2623_s20  ;;  %p2627_p2 = scmp.lt.u32.totalorder %s2623_s20, %s3320_s6 }
  0x48   :  { %p2629_p3 = pnand %p2627_p2, %p2624_p1 }
  0x4a   :  { %2632 = shalt.err (!%p2629_p3)
}
  0x4b   :  { %s2633_s23 = scalar_lea.vmem %s2777_s26, 1024  ;;  %p2638_p5 = scmp.lt.s32.totalorder %s2777_s26, %s2777_s26 }
  0x4c   :  { %p2634_p4 = scmp.ne.s32.totalorder %s2777_s26, %s2633_s23  ;;  %p2639_p6 = scmp.lt.s32.totalorder %s2633_s23, %s2633_s23 }
  0x4e   :  { %p2640_p7 = por %p2639_p6, %p2638_p5 }
  0x50   :  { %p2641_p8 = pnand %p2640_p7, %p2634_p4 }
  0x52   :  { %2644 = shalt.err (!%p2641_p8)
}
  0x53   :  { %76 = dma.hbm_to_vmem [thread:$0]  %s3320_s6, 1024, %s2777_s26, [#allocation13], %s2679_s27, %s2679_s27, %s2680_s28  }
  0x54   :  { %2669 = dma.done.wait [#allocation7], 800  }
  0x55   :  { %2670 = vsyncadd [#allocation7], 4294966496 }
  0x56   :  { %2671 = dma.done.wait [#allocation10], 3072  }
  0x57   :  { %2672 = vsyncadd [#allocation10], 4294964224 }
  0x58   :  { %2673 = dma.done.wait [#allocation13], 1024  }
  0x59   :  { %2674 = vsyncadd [#allocation13], 4294966272  ;;  %v2686_v0 = vmov 0   ;;  %s2816_s25 = sld [smem:[#allocation5]]  ;;  %s2818_s29 = sld [smem:[#allocation5 + $0x1]]  ;;  %v160_v44 = vlaneseq  ;;  %vm500_vm2 = vcmask 254976  }
  0x5a   :  { %340 = vmatprep.mubr.bf16.mxu0 %v2686_v0  ;;  %459 = vmatprep.mubr.bf16.mxu1 %v2686_v0  ;;  %s2820_s30 = sld [smem:[#allocation5 + $0x2]]  ;;  %s2822_s11 = sld [smem:[#allocation5 + $0x3]]  ;;  %v2289_v1 = vld [vmem:[#allocation9 + $0x4] ss:$8 sps:$4 sm:$0xff]   ;;  %v2291_v2 = vld [vmem:[#allocation9] ss:$8 sps:$4 sm:$0xff]  }
  0x5b   :  { %s2824_s6 = sld [smem:[#allocation5 + $0x4]]  ;;  %s2826_s27 = sld [smem:[#allocation5 + $0x5]]  ;;  %308 = vmatprep.subr.bf16.mxu0 %v2289_v1  ;;  %v2292_v3 = vld [vmem:[#allocation9 + $0x14] ss:$8 sps:$4 sm:$0xff]   ;;  %v2294_v4 = vld [vmem:[#allocation9 + $0x10] ss:$8 sps:$4 sm:$0xff]  }
  0x5c   :  { %s2828_s28 = sld [smem:[#allocation5 + $0x6]]  ;;  %s2830_s26 = sld [smem:[#allocation5 + $0x7]]  ;;  %309 = vmatpush1.bf16.msra.mxu0 %v2291_v2  ;;  %v2295_v5 = vld [vmem:[#allocation9 + $0x24] ss:$8 sps:$4 sm:$0xff]   ;;  %v2297_v6 = vld [vmem:[#allocation9 + $0x20] ss:$8 sps:$4 sm:$0xff]  }
  0x5d   :  { %s2832_s13 = sld [smem:[#allocation5 + $0x8]]  ;;  %s2834_s14 = sld [smem:[#allocation5 + $0x9]]  ;;  %310 = vmatprep.subr.bf16.mxu0 %v2292_v3  ;;  %v2298_v7 = vld [vmem:[#allocation9 + $0x34] ss:$8 sps:$4 sm:$0xff]   ;;  %v2300_v9 = vld [vmem:[#allocation9 + $0x30] ss:$8 sps:$4 sm:$0xff]  }
  0x5e   :  { %s2836_s15 = sld [smem:[#allocation5 + $0xa]]  ;;  %s2838_s16 = sld [smem:[#allocation5 + $0xb]]  ;;  %v2843_v8 = vld [vmem:[%s3317_s3 + $0x4] ss:$8 sps:$4 sm:$0xff]   ;;  %v2848_v10 = vld [vmem:[%s3317_s3] ss:$8 sps:$4 sm:$0xff]  }
  0x5f   :  { %427 = vmatprep.subr.bf16.mxu1 %v2843_v8  ;;  %s2851_s0 = sld [smem:[#allocation5 + $0xc]]  ;;  %s2853_s20 = sld [smem:[#allocation5 + $0xd]]  ;;  %v2859_v11 = vld [vmem:[%s3317_s3 + $0x14] ss:$8 sps:$4 sm:$0xff]   ;;  %v2864_v12 = vld [vmem:[%s3317_s3 + $0x10] ss:$8 sps:$4 sm:$0xff]  }
  0x60   :  { %311 = vmatpush1.bf16.msra.mxu0 %v2294_v4  ;;  %428 = vmatpush1.bf16.msra.mxu1 %v2848_v10  ;;  %v2301_v13 = vld [vmem:[#allocation9 + $0x44] ss:$8 sps:$4 sm:$0xff]   ;;  %s2866_s23 = sld [smem:[#allocation5 + $0xe]]  ;;  %v2303_v14 = vld [vmem:[#allocation9 + $0x40] ss:$8 sps:$4 sm:$0xff]   ;;  %s2874_s1 = sld [smem:[#allocation5 + $0xf]] }
  0x61   :  { %312 = vmatprep.subr.bf16.mxu0 %v2295_v5  ;;  %429 = vmatprep.subr.bf16.mxu1 %v2859_v11  ;;  %v2872_v15 = vld [vmem:[%s3317_s3 + $0x24] ss:$8 sps:$4 sm:$0xff]   ;;  %v2879_v17 = vld [vmem:[%s3317_s3 + $0x20] ss:$8 sps:$4 sm:$0xff]   ;;  %s97_s18 = scalar_lea.vmem [#allocation6], %s2816_s25  ;;  %s101_s2 = scalar_lea.vmem [#allocation6], %s2818_s29 }
  0x62   :  { %v2304_v16 = vld [vmem:[#allocation9 + $0x54] ss:$8 sps:$4 sm:$0xff]   ;;  %v98_v18 = vld [vmem:[%s97_s18] sm:$0x1]  ;;  %s105_s19 = scalar_lea.vmem [#allocation6], %s2820_s30  ;;  %s109_s21 = scalar_lea.vmem [#allocation6], %s2822_s11 }
  0x63   :  { %99 = vst [vmem:[#allocation2] sm:$0x1] %v98_v18  ;;  %v102_v19 = vld [vmem:[%s101_s2] sm:$0x1]  ;;  %s113_s25 = scalar_lea.vmem [#allocation6], %s2824_s6  ;;  %s117_s22 = scalar_lea.vmem [#allocation6], %s2826_s27 }
  0x64   :  { %313 = vmatpush1.bf16.msra.mxu0 %v2297_v6  ;;  %430 = vmatpush1.bf16.msra.mxu1 %v2864_v12  ;;  %v106_v20 = vld [vmem:[%s105_s19] sm:$0x1]  ;;  %103 = vst [vmem:[#allocation2 + $0x1] sm:$0x1] %v102_v19  ;;  %s121_s5 = scalar_lea.vmem [#allocation6], %s2828_s28  ;;  %s125_s29 = scalar_lea.vmem [#allocation6], %s2830_s26 }
  0x65   :  { %314 = vmatprep.subr.bf16.mxu0 %v2298_v7  ;;  %v110_v21 = vld [vmem:[%s109_s21] sm:$0x1]  ;;  %431 = vmatprep.subr.bf16.mxu1 %v2872_v15  ;;  %107 = vst [vmem:[#allocation2 + $0x2] sm:$0x1] %v106_v20  ;;  %v2308_v25 = vld [vmem:[#allocation9 + $0x50] ss:$8 sps:$4 sm:$0xff]  }
  0x66   :  { %111 = vst [vmem:[#allocation2 + $0x3] sm:$0x1] %v110_v21  ;;  %v114_v22 = vld [vmem:[%s113_s25] sm:$0x1]  ;;  %s129_s30 = scalar_lea.vmem [#allocation6], %s2832_s13  ;;  %s133_s11 = scalar_lea.vmem [#allocation6], %s2834_s14 }
  0x67   :  { %v118_v23 = vld [vmem:[%s117_s22] sm:$0x1]  ;;  %115 = vst [vmem:[#allocation2 + $0x4] sm:$0x1] %v114_v22  ;;  %s137_s6 = scalar_lea.vmem [#allocation6], %s2836_s15  ;;  %s141_s27 = scalar_lea.vmem [#allocation6], %s2838_s16 }
  0x68   :  { %315 = vmatpush1.bf16.msra.mxu0 %v2300_v9  ;;  %v122_v24 = vld [vmem:[%s121_s5] sm:$0x1]  ;;  %119 = vst [vmem:[#allocation2 + $0x5] sm:$0x1] %v118_v23  ;;  %432 = vmatpush1.bf16.msra.mxu1 %v2879_v17  ;;  %s145_s28 = scalar_lea.vmem [#allocation6], %s2851_s0  ;;  %s149_s26 = scalar_lea.vmem [#allocation6], %s2853_s20 }
  0x69   :  { %316 = vmatprep.subr.bf16.mxu0 %v2301_v13  ;;  %123 = vst [vmem:[#allocation2 + $0x6] sm:$0x1] %v122_v24  ;;  %v126_v26 = vld [vmem:[%s125_s29] sm:$0x1]  ;;  %s153_s13 = scalar_lea.vmem [#allocation6], %s2866_s23  ;;  %s157_s14 = scalar_lea.vmem [#allocation6], %s2874_s1 }
  0x6a   :  { %v130_v27 = vld [vmem:[%s129_s30] sm:$0x1]  ;;  %127 = vst [vmem:[#allocation2 + $0x7] sm:$0x1] %v126_v26  ;;  %v2314_v36 = vld [vmem:[#allocation9 + $0x60] ss:$8 sps:$4 sm:$0xff]  }
  0x6b   :  { %v134_v28 = vld [vmem:[%s133_s11] sm:$0x1]  ;;  %131 = vst [vmem:[#allocation2 + $0x8] sm:$0x1] %v130_v27  ;;  %v2903_v37 = vld [vmem:[%s3317_s3 + $0x34] ss:$8 sps:$4 sm:$0xff]  }
  0x6c   :  { %v2310_v29 = vld [vmem:[#allocation9 + $0x64] ss:$8 sps:$4 sm:$0xff]   ;;  %135 = vst [vmem:[#allocation2 + $0x9] sm:$0x1] %v134_v28  ;;  %317 = vmatpush1.bf16.msra.mxu0 %v2303_v14  ;;  %v2316_v39 = vld [vmem:[#allocation9 + $0x74] ss:$8 sps:$4 sm:$0xff]   ;;  %433 = vmatprep.subr.bf16.mxu1 %v2903_v37 }
  0x6d   :  { %v138_v30 = vld [vmem:[%s137_s6] sm:$0x1]  ;;  %318 = vmatprep.subr.bf16.mxu0 %v2304_v16  ;;  %v2908_v38 = vld [vmem:[%s3317_s3 + $0x30] ss:$8 sps:$4 sm:$0xff]   ;;  %v2320_v40 = vld [vmem:[#allocation9 + $0x70] ss:$8 sps:$4 sm:$0xff]  }
  0x6e   :  { %v142_v31 = vld [vmem:[%s141_s27] sm:$0x1]  ;;  %139 = vst [vmem:[#allocation2 + $0xa] sm:$0x1] %v138_v30  ;;  %434 = vmatpush1.bf16.msra.mxu1 %v2908_v38  ;;  %v2933_v45 = vshrl.u32 %v160_v44, 7  ;;  %v161_v46 = vand.u32 127, %v160_v44 }
  0x6f   :  { %143 = vst [vmem:[#allocation2 + $0xb] sm:$0x1] %v142_v31  ;;  %v146_v32 = vld [vmem:[%s145_s28] sm:$0x1]  ;;  %508 = vmatprep.subr.bf16.mxu1 %v2843_v8  ;;  %vm502_vm3 = vcmask 517376   ;;  %vm423_vm4 = vcmask 523264  }
  0x70   :  { %v150_v33 = vld [vmem:[%s149_s26] sm:$0x1]  ;;  %147 = vst [vmem:[#allocation2 + $0xc] sm:$0x1] %v146_v32  ;;  %319 = vmatpush1.bf16.msra.mxu0 %v2308_v25  ;;  %v220_v47 = vsub.s32 0, %v2933_v45  ;;  %v224_v50 = vsub.s32 1, %v2933_v45 }
  0x71   :  { %151 = vst [vmem:[#allocation2 + $0xd] sm:$0x1] %v150_v33  ;;  %v154_v34 = vld [vmem:[%s153_s13] sm:$0x1]  ;;  %320 = vmatprep.subr.bf16.mxu0 %v2310_v29  ;;  %460 = vmatmul.mubr.bf16.vlgmr.msra.gmra.mrb[0].mxu1 %v2686_v0  ;;  %v162_v52 = vadd.s32 128, %v161_v46  ;;  %v167_v56 = vand.u32 63, %v161_v46 }
  0x72   :  { %v158_v35 = vld [vmem:[%s157_s14] sm:$0x1]  ;;  %155 = vst [vmem:[#allocation2 + $0xe] sm:$0x1] %v154_v34  ;;  %509 = vmatpush1.bf16.msra.mxu1 %v2848_v10  ;;  %540 = vmatprep.mubr.bf16.mxu1 %v2686_v0  ;;  %vm590_vm5 = vcmask 257026   ;;  %vm592_vm6 = vcmask 519426  }
  0x73   :  { %159 = vst [vmem:[#allocation2 + $0xf] sm:$0x1] %v158_v35  ;;  %v189_v41 = vld [vmem:[#allocation2] sm:$0xff]  ;;  %510 = vmatprep.subr.bf16.mxu1 %v2859_v11  ;;  %v174_v58 = vand.u32 63, %v162_v52  ;;  %vm2944_vm0 = vcmp.lt.s32.totalorder %v167_v56, 32  ;;  %vm682_vm7 = vcmask 259076  }
  0x74   :  { %321 = vmatpush1.bf16.msra.mxu0 %v2314_v36  ;;  %v215_v49 = vld [vmem:[%s3318_s4] sm:$0x3]  ;;  %s2687_s4 = smov 64   ;;  %vm684_vm8 = vcmask 521476   ;;  %vm774_vm9 = vcmask 261126   ;;  %vm776_vm10 = vcmask 523526  }
  0x75   :  { %322 = vmatprep.subr.bf16.mxu0 %v2316_v39  ;;  %v221_v55 = vrot.slane %v215_v49, %v220_v47  ;;  %v225_v57 = vrot.slane %v215_v49, %v224_v50  ;;  %vm2948_vm1 = vcmp.lt.s32.totalorder %v174_v58, 32  ;;  %vm2689_vm11 = vmmov 0   ;;  %s2691_s13 = smov [#allocation14]  }
  0x76   :  { %511 = vmatpush1.bf16.msra.mxu1 %v2864_v12  ;;  %vm2083_vm12 = vcmask 9216  }
  0x77   :  { %512 = vmatprep.subr.bf16.mxu1 %v2872_v15 }
  0x78   :  { %323 = vmatpush1.bf16.msra.mxu0 %v2320_v40 }
  0x79   :  { %600 = vmatprep.subr.bf16.mxu0 %v2843_v8 }
  0x7a   :  { %v190_v42 = vld [vmem:[#allocation2 + $0x8] sm:$0xff]  ;;  %513 = vmatpush1.bf16.msra.mxu1 %v2879_v17 }
  0x7b   :  { %v216_v43 = vpack.c.bf16 %v190_v42, %v189_v41  ;;  %514 = vmatprep.subr.bf16.mxu1 %v2903_v37 }
  0x7d   :  { %341 = vmatmul.mubr.bf16.vlgmr.msra.gmra.mrb[0].mxu0 %v216_v43 }
  0x7e   :  { %601 = vmatpush1.bf16.msra.mxu0 %v2848_v10  ;;  %632 = vmatprep.mubr.bf16.mxu0 %v2686_v0 }
  0x7f   :  { %602 = vmatprep.subr.bf16.mxu0 %v2859_v11  ;;  %515 = vmatpush1.bf16.msra.mxu1 %v2908_v38 }
  0x80   :  { %692 = vmatprep.subr.bf16.mxu1 %v2843_v8 }
  0x82   :  { %603 = vmatpush1.bf16.msra.mxu0 %v2864_v12 }
  0x83   :  { %604 = vmatprep.subr.bf16.mxu0 %v2872_v15 }
  0x86   :  { %605 = vmatpush1.bf16.msra.mxu0 %v2879_v17 }
  0x87   :  { %606 = vmatprep.subr.bf16.mxu0 %v2903_v37 }
  0x8a   :  { %607 = vmatpush1.bf16.msra.mxu0 %v2908_v38 }
  0x8b   :  { %784 = vmatprep.subr.bf16.mxu0 %v2843_v8 }
 0x144   :  { %v461_v48 = vpop.f32.mrb[0].mxu1 }
 0x145   :  { %v463_v51 = vpop.f32.mrb[1].mxu1 }
 0x146   :  { %v465_v53 = vpop.f32.mrb[2].mxu1 }
 0x147   :  { %v466_v54 = vpop.f32.mrb[3].mxu1 }
 0x150   :  { %v342_v59 = vpop.f32.mrb[0].mxu0 }
 0x151   :  { %v343_v60 = vadd.f32 %v342_v59, %v221_v55  ;;  %v344_v61 = vpop.f32.mrb[1].mxu0 }
 0x152   :  { %v345_v63 = vadd.f32 %v344_v61, %v225_v57  ;;  %v346_v1 = vpop.f32.mrb[2].mxu0 }
 0x153   :  { %v347_v3 = vadd.f32 %v346_v1, %v221_v55  ;;  %v348_v4 = vpop.f32.mrb[3].mxu0  ;;  %v371_v5 = vrot.slane %v343_v60, 6  ;;  %v377_v6 = vrot.slane %v343_v60, 2 }
 0x154   :  { %v349_v7 = vadd.f32 %v348_v4, %v225_v57  ;;  %v372_v9 = vrot.slane %v345_v63, 6  ;;  %v378_v13 = vrot.slane %v345_v63, 2 }
 0x155   :  { %v357_v14 = vrot.slane %v347_v3, 6  ;;  %v363_v16 = vrot.slane %v347_v3, 2  ;;  %v2954_v18 = vsel %vm2944_vm0, %v347_v3, %v371_v5  ;;  %v2958_v19 = vsel %vm2944_vm0, %v347_v3, %v377_v6 }
 0x156   :  { %v358_v20 = vrot.slane %v349_v7, 6  ;;  %v364_v21 = vrot.slane %v349_v7, 2  ;;  %v2962_v22 = vsel %vm2948_vm1, %v349_v7, %v372_v9  ;;  %v2966_v23 = vsel %vm2948_vm1, %v349_v7, %v378_v13 }
 0x157   :  { %v2970_v24 = vsel %vm2944_vm0, %v343_v60, %v357_v14  ;;  %v2974_v25 = vsel %vm2944_vm0, %v343_v60, %v363_v16 }
 0x158   :  { %v2978_v26 = vsel %vm2948_vm1, %v345_v63, %v358_v20  ;;  %v2982_v27 = vsel %vm2948_vm1, %v345_v63, %v364_v21  ;;  %v468_v30 = vadd.f32 %v461_v48, %v2970_v24 }
 0x159   :  { %v469_v28 = vadd.f32 %v463_v51, %v2978_v26 }
 0x15a   :  { %v2169_v31 = vmul.f32 -1.442695, %v468_v30 }
 0x15b   :  { %2349 = vtanh.f32 %v469_v28  ;;  %v2170_v43 = vmul.f32 -1.442695, %v469_v28 }
 0x15c   :  { %2351 = vpow2.f32 %v2169_v31 }
 0x165   :  { %v2350_v29 = vpop.eup %2349 }
 0x166   :  { %485 = vrot.lane.b32.xlu0 %v2350_v29, %s2687_s4  ;;  %v2352_v32 = vpop.eup %2351 }
 0x167   :  { %v476_v33 = vadd.f32 1.0, %v2352_v32 }
 0x169   :  { %2353 = vrcp.f32 %v476_v33 }
 0x173   :  { %v2354_v34 = vpop.eup %2353 }
 0x174   :  { %v483_v39 = vmul.f32 0.0, %v2354_v34 }
 0x1d8   :  { %v486_v35 = vpop.permute.xlu0 %485 }
 0x1d9   :  { %v488_v36 = vmul.f32 %v2354_v34, %v486_v35 }
 0x1db   :  { %490 = vrot.lane.b32.xlu0 %v488_v36, %s2687_s4 }
 0x24d   :  { %v491_v40 = vpop.permute.xlu0 %490 }
 0x24e   :  { %v493_v41 = vadd.f32 %v491_v40, %v483_v39 }
 0x250   :  { %2355 = vtanh.f32 %v493_v41  ;;  %v571_v7 = vrot.slane %v493_v41, 6 }
 0x251   :  { %2357 = vpow2.f32 %v2170_v43 }
 0x25a   :  { %v2356_v42 = vpop.eup %2355 }
 0x25b   :  { %496 = vrot.lane.b32.xlu1 %v2356_v42, %s2687_s4  ;;  %v2358_v44 = vpop.eup %2357 }
 0x25c   :  { %v477_v46 = vadd.f32 1.0, %v2358_v44 }
 0x25e   :  { %2359 = vrcp.f32 %v477_v46 }
 0x268   :  { %v2360_v48 = vpop.eup %2359 }
 0x2cd   :  { %v497_v49 = vpop.permute.xlu1 %496 }
 0x2ce   :  { %v499_v51 = vmul.f32 %v2360_v48, %v497_v49 }
 0x2d0   :  { %501 = vst.msk [vmem:[#allocation3] sm:$0x3] %vm500_vm2, %v499_v51  ;;  %v504_v52 = vpack.c.bf16 %v499_v51, %v499_v51 }
 0x2d1   :  { %503 = vst.msk [vmem:[#allocation3 + $0xe] sm:$0x3] %vm502_vm3, %v499_v51 }
 0x2d2   :  { %2171 = vmatmul.mubr.msk.bf16.vlgmr.msra.gmra.mrb[4].mxu1 %vm423_vm4, %v504_v52 }
 0x2d3   :  { %693 = vmatpush1.bf16.msra.mxu1 %v2848_v10  ;;  %724 = vmatprep.mubr.bf16.mxu1 %v2686_v0 }
 0x2d4   :  { %694 = vmatprep.subr.bf16.mxu1 %v2859_v11 }
 0x2d7   :  { %695 = vmatpush1.bf16.msra.mxu1 %v2864_v12 }
 0x2d8   :  { %696 = vmatprep.subr.bf16.mxu1 %v2872_v15 }
 0x2db   :  { %697 = vmatpush1.bf16.msra.mxu1 %v2879_v17 }
 0x2dc   :  { %698 = vmatprep.subr.bf16.mxu1 %v2903_v37 }
 0x2df   :  { %699 = vmatpush1.bf16.msra.mxu1 %v2908_v38 }
 0x2e0   :  { %866 = vmatprep.subr.bf16.mxu1 %v2843_v8 }
 0x3a5   :  { %v542_v53 = vpop.f32.mrb[4].mxu1 }
 0x3a6   :  { %v544_v54 = vpop.f32.mrb[5].mxu1  ;;  %v551_v60 = vrot.slane %v542_v53, 6 }
 0x3a7   :  { %v552_v55 = vrot.slane %v544_v54, 6  ;;  %v546_v56 = vpop.f32.mrb[6].mxu1 }
 0x3a8   :  { %v547_v57 = vpop.f32.mrb[7].mxu1  ;;  %v555_v61 = vadd.f32 %v551_v60, %v2974_v25 }
 0x3a9   :  { %v556_v58 = vadd.f32 %v552_v55, %v2982_v27 }
 0x3aa   :  { %v2172_v63 = vmul.f32 -1.442695, %v555_v61 }
 0x3ab   :  { %2361 = vtanh.f32 %v556_v58  ;;  %v2173_v20 = vmul.f32 -1.442695, %v556_v58 }
 0x3ac   :  { %2363 = vpow2.f32 %v2172_v63 }
 0x3b5   :  { %v2362_v59 = vpop.eup %2361 }
 0x3b6   :  { %575 = vrot.lane.b32.xlu1 %v2362_v59, %s2687_s4  ;;  %v2364_v1 = vpop.eup %2363 }
 0x3b7   :  { %v563_v3 = vadd.f32 1.0, %v2364_v1 }
 0x3b9   :  { %2365 = vrcp.f32 %v563_v3 }
 0x3c3   :  { %v2366_v4 = vpop.eup %2365 }
 0x3c4   :  { %v573_v9 = vmul.f32 %v2366_v4, %v571_v7 }
 0x428   :  { %v576_v5 = vpop.permute.xlu1 %575 }
 0x429   :  { %v578_v6 = vmul.f32 %v2366_v4, %v576_v5 }
 0x42b   :  { %580 = vrot.lane.b32.xlu0 %v578_v6, %s2687_s4 }
 0x49d   :  { %v581_v13 = vpop.permute.xlu0 %580 }
 0x49e   :  { %v583_v14 = vadd.f32 %v581_v13, %v573_v9 }
 0x4a0   :  { %2367 = vtanh.f32 %v583_v14  ;;  %v663_v54 = vrot.slane %v583_v14, 6 }
 0x4a1   :  { %2369 = vpow2.f32 %v2173_v20 }
 0x4aa   :  { %v2368_v16 = vpop.eup %2367 }
 0x4ab   :  { %586 = vrot.lane.b32.xlu1 %v2368_v16, %s2687_s4  ;;  %v2370_v21 = vpop.eup %2369 }
 0x4ac   :  { %v564_v28 = vadd.f32 1.0, %v2370_v21 }
 0x4ae   :  { %2371 = vrcp.f32 %v564_v28 }
 0x4b8   :  { %v2372_v29 = vpop.eup %2371 }
 0x51d   :  { %v587_v30 = vpop.permute.xlu1 %586 }
 0x51e   :  { %v589_v31 = vmul.f32 %v2372_v29, %v587_v30 }
 0x520   :  { %591 = vst.msk [vmem:[#allocation3] sm:$0xc] %vm590_vm5, %v589_v31  ;;  %v594_v32 = vpack.c.bf16 %v589_v31, %v589_v31 }
 0x521   :  { %593 = vst.msk [vmem:[#allocation3 + $0xa] sm:$0xc] %vm592_vm6, %v589_v31 }
 0x522   :  { %v596_v33 = vrot.slane %v594_v32, 1 }
 0x524   :  { %2174 = vmatmul.mubr.msk.bf16.vlgmr.msra.gmra.mrb[4].mxu0 %vm423_vm4, %v596_v33 }
 0x525   :  { %785 = vmatpush1.bf16.msra.mxu0 %v2848_v10  ;;  %816 = vmatprep.mubr.bf16.mxu0 %v2686_v0 }
 0x526   :  { %786 = vmatprep.subr.bf16.mxu0 %v2859_v11 }
 0x529   :  { %787 = vmatpush1.bf16.msra.mxu0 %v2864_v12 }
 0x52a   :  { %788 = vmatprep.subr.bf16.mxu0 %v2872_v15 }
 0x52d   :  { %789 = vmatpush1.bf16.msra.mxu0 %v2879_v17 }
 0x52e   :  { %790 = vmatprep.subr.bf16.mxu0 %v2903_v37 }
 0x531   :  { %791 = vmatpush1.bf16.msra.mxu0 %v2908_v38 }
 0x532   :  { %956 = vmatprep.subr.bf16.mxu0 %v2843_v8 }
 0x5f7   :  { %v634_v34 = vpop.f32.mrb[4].mxu0 }
 0x5f8   :  { %v636_v35 = vpop.f32.mrb[5].mxu0  ;;  %v643_v43 = vrot.slane %v634_v34, 4 }
 0x5f9   :  { %v644_v36 = vrot.slane %v636_v35, 4  ;;  %v638_v39 = vpop.f32.mrb[6].mxu0 }
 0x5fa   :  { %v639_v40 = vpop.f32.mrb[7].mxu0  ;;  %v647_v44 = vadd.f32 %v643_v43, %v2970_v24 }
 0x5fb   :  { %v648_v41 = vadd.f32 %v644_v36, %v2978_v26 }
 0x5fc   :  { %v2175_v46 = vmul.f32 -1.442695, %v647_v44 }
 0x5fd   :  { %2373 = vtanh.f32 %v648_v41  ;;  %v2176_v58 = vmul.f32 -1.442695, %v648_v41 }
 0x5fe   :  { %2375 = vpow2.f32 %v2175_v46 }
 0x607   :  { %v2374_v42 = vpop.eup %2373 }
 0x608   :  { %667 = vrot.lane.b32.xlu0 %v2374_v42, %s2687_s4  ;;  %v2376_v48 = vpop.eup %2375 }
 0x609   :  { %v655_v49 = vadd.f32 1.0, %v2376_v48 }
 0x60b   :  { %2377 = vrcp.f32 %v655_v49 }
 0x615   :  { %v2378_v51 = vpop.eup %2377 }
 0x616   :  { %v665_v55 = vmul.f32 %v2378_v51, %v663_v54 }
 0x67a   :  { %v668_v52 = vpop.permute.xlu0 %667 }
 0x67b   :  { %v670_v53 = vmul.f32 %v2378_v51, %v668_v52 }
 0x67d   :  { %672 = vrot.lane.b32.xlu1 %v670_v53, %s2687_s4 }
 0x6ef   :  { %v673_v26 = vpop.permute.xlu1 %672 }
 0x6f0   :  { %v675_v56 = vadd.f32 %v673_v26, %v665_v55 }
 0x6f2   :  { %2379 = vtanh.f32 %v675_v56  ;;  %v755_v32 = vrot.slane %v675_v56, 6 }
 0x6f3   :  { %2381 = vpow2.f32 %v2176_v58 }
 0x6fc   :  { %v2380_v57 = vpop.eup %2379 }
 0x6fd   :  { %678 = vrot.lane.b32.xlu0 %v2380_v57, %s2687_s4  ;;  %v2382_v24 = vpop.eup %2381 }
 0x6fe   :  { %v656_v59 = vadd.f32 1.0, %v2382_v24 }
 0x700   :  { %2383 = vrcp.f32 %v656_v59 }
 0x70a   :  { %v2384_v60 = vpop.eup %2383 }
 0x76f   :  { %v679_v61 = vpop.permute.xlu0 %678 }
 0x770   :  { %v681_v63 = vmul.f32 %v2384_v60, %v679_v61 }
 0x772   :  { %683 = vst.msk [vmem:[#allocation3] sm:$0x30] %vm682_vm7, %v681_v63  ;;  %v686_v1 = vpack.c.bf16 %v681_v63, %v681_v63 }
 0x773   :  { %685 = vst.msk [vmem:[#allocation3 + $0x6] sm:$0x30] %vm684_vm8, %v681_v63 }
 0x774   :  { %v688_v3 = vrot.slane %v686_v1, 2 }
 0x776   :  { %2177 = vmatmul.mubr.msk.bf16.vlgmr.msra.gmra.mrb[8].mxu1 %vm423_vm4, %v688_v3 }
 0x777   :  { %867 = vmatpush1.bf16.msra.mxu1 %v2848_v10  ;;  %898 = vmatprep.mubr.bf16.mxu1 %v2686_v0 }
 0x778   :  { %868 = vmatprep.subr.bf16.mxu1 %v2859_v11 }
 0x77b   :  { %869 = vmatpush1.bf16.msra.mxu1 %v2864_v12 }
 0x77c   :  { %870 = vmatprep.subr.bf16.mxu1 %v2872_v15 }
 0x77f   :  { %871 = vmatpush1.bf16.msra.mxu1 %v2879_v17 }
 0x780   :  { %872 = vmatprep.subr.bf16.mxu1 %v2903_v37 }
 0x783   :  { %873 = vmatpush1.bf16.msra.mxu1 %v2908_v38 }
 0x784   :  { %1046 = vmatprep.subr.bf16.mxu1 %v2843_v8 }
 0x849   :  { %v726_v4 = vpop.f32.mrb[8].mxu1 }
 0x84a   :  { %v728_v5 = vpop.f32.mrb[9].mxu1  ;;  %v735_v16 = vrot.slane %v726_v4, 2 }
 0x84b   :  { %v736_v6 = vrot.slane %v728_v5, 2  ;;  %v730_v7 = vpop.f32.mrb[10].mxu1 }
 0x84c   :  { %v731_v9 = vpop.f32.mrb[11].mxu1  ;;  %v739_v20 = vadd.f32 %v735_v16, %v2974_v25 }
 0x84d   :  { %v740_v13 = vadd.f32 %v736_v6, %v2982_v27 }
 0x84e   :  { %v2178_v21 = vmul.f32 -1.442695, %v739_v20 }
 0x84f   :  { %2385 = vtanh.f32 %v740_v13  ;;  %v2179_v36 = vmul.f32 -1.442695, %v740_v13 }
 0x850   :  { %2387 = vpow2.f32 %v2178_v21 }
 0x859   :  { %v2386_v14 = vpop.eup %2385 }
 0x85a   :  { %759 = vrot.lane.b32.xlu1 %v2386_v14, %s2687_s4  ;;  %v2388_v28 = vpop.eup %2387 }
 0x85b   :  { %v747_v29 = vadd.f32 1.0, %v2388_v28 }
 0x85d   :  { %2389 = vrcp.f32 %v747_v29 }
 0x867   :  { %v2390_v8 = vpop.eup %2389 }
 0x868   :  { %v757_v33 = vmul.f32 %v2390_v8, %v755_v32 }
 0x8cc   :  { %v760_v30 = vpop.permute.xlu1 %759 }
 0x8cd   :  { %v762_v31 = vmul.f32 %v2390_v8, %v760_v30 }
 0x8cf   :  { %764 = vrot.lane.b32.xlu0 %v762_v31, %s2687_s4 }
 0x941   :  { %v765_v27 = vpop.permute.xlu0 %764 }
 0x942   :  { %v767_v34 = vadd.f32 %v765_v27, %v757_v33 }
 0x944   :  { %2391 = vtanh.f32 %v767_v34  ;;  %v841_v59 = vrot.slane %v767_v34, 6 }
 0x945   :  { %2393 = vpow2.f32 %v2179_v36 }
 0x94e   :  { %v2392_v35 = vpop.eup %2391 }
 0x94f   :  { %770 = vrot.lane.b32.xlu1 %v2392_v35, %s2687_s4  ;;  %v2394_v25 = vpop.eup %2393 }
 0x950   :  { %v748_v39 = vadd.f32 1.0, %v2394_v25 }
 0x952   :  { %2395 = vrcp.f32 %v748_v39 }
 0x95c   :  { %v2396_v40 = vpop.eup %2395 }
 0x9c1   :  { %v771_v41 = vpop.permute.xlu1 %770 }
 0x9c2   :  { %v773_v42 = vmul.f32 %v2396_v40, %v771_v41 }
 0x9c4   :  { %775 = vst.msk [vmem:[#allocation3] sm:$0xc0] %vm774_vm9, %v773_v42  ;;  %v778_v43 = vpack.c.bf16 %v773_v42, %v773_v42 }
 0x9c5   :  { %777 = vst.msk [vmem:[#allocation3 + $0x2] sm:$0xc0] %vm776_vm10, %v773_v42 }
 0x9c6   :  { %v780_v44 = vrot.slane %v778_v43, 3 }
 0x9c8   :  { %2180 = vmatmul.mubr.msk.bf16.vlgmr.msra.gmra.mrb[8].mxu0 %vm423_vm4, %v780_v44 }
 0x9c9   :  { %957 = vmatpush1.bf16.msra.mxu0 %v2848_v10  ;;  %988 = vmatprep.mubr.bf16.mxu0 %v2686_v0 }
 0x9ca   :  { %958 = vmatprep.subr.bf16.mxu0 %v2859_v11 }
 0x9cd   :  { %959 = vmatpush1.bf16.msra.mxu0 %v2864_v12 }
 0x9ce   :  { %960 = vmatprep.subr.bf16.mxu0 %v2872_v15 }
 0x9d1   :  { %961 = vmatpush1.bf16.msra.mxu0 %v2879_v17 }
 0x9d2   :  { %962 = vmatprep.subr.bf16.mxu0 %v2903_v37 }
 0x9d5   :  { %963 = vmatpush1.bf16.msra.mxu0 %v2908_v38 }
 0xa9b   :  { %v818_v46 = vpop.f32.mrb[8].mxu0 }
 0xa9c   :  { %v820_v48 = vpop.f32.mrb[9].mxu0  ;;  %v825_v54 = vadd.f32 %v818_v46, %v2954_v18 }
 0xa9d   :  { %v826_v49 = vadd.f32 %v820_v48, %v2962_v22  ;;  %v822_v51 = vpop.f32.mrb[10].mxu0 }
 0xa9e   :  { %v823_v52 = vpop.f32.mrb[11].mxu0  ;;  %v2181_v55 = vmul.f32 -1.442695, %v825_v54 }
 0xa9f   :  { %2397 = vtanh.f32 %v826_v49  ;;  %v2182_v3 = vmul.f32 -1.442695, %v826_v49 }
 0xaa0   :  { %2399 = vpow2.f32 %v2181_v55 }
 0xaa9   :  { %v2398_v53 = vpop.eup %2397 }
 0xaaa   :  { %845 = vrot.lane.b32.xlu0 %v2398_v53, %s2687_s4  ;;  %v2400_v26 = vpop.eup %2399 }
 0xaab   :  { %v833_v56 = vadd.f32 1.0, %v2400_v26 }
 0xaad   :  { %2401 = vrcp.f32 %v833_v56 }
 0xab7   :  { %v2402_v57 = vpop.eup %2401 }
 0xab8   :  { %v843_v60 = vmul.f32 %v2402_v57, %v841_v59 }
 0xb1c   :  { %v846_v58 = vpop.permute.xlu0 %845 }
 0xb1d   :  { %v848_v24 = vmul.f32 %v2402_v57, %v846_v58 }
 0xb1f   :  { %850 = vrot.lane.b32.xlu1 %v848_v24, %s2687_s4 }
 0xb91   :  { %v851_v61 = vpop.permute.xlu1 %850 }
 0xb92   :  { %v853_v63 = vadd.f32 %v851_v61, %v843_v60 }
 0xb94   :  { %2403 = vtanh.f32 %v853_v63  ;;  %v929_v31 = vrot.slane %v853_v63, 6 }
 0xb95   :  { %2405 = vpow2.f32 %v2182_v3 }
 0xb9e   :  { %v2404_v1 = vpop.eup %2403 }
 0xb9f   :  { %856 = vrot.lane.b32.xlu0 %v2404_v1, %s2687_s4  ;;  %v2406_v4 = vpop.eup %2405 }
 0xba0   :  { %v834_v5 = vadd.f32 1.0, %v2406_v4 }
 0xba2   :  { %2407 = vrcp.f32 %v834_v5 }
 0xbac   :  { %v2408_v6 = vpop.eup %2407 }
 0xc11   :  { %v857_v7 = vpop.permute.xlu0 %856 }
 0xc12   :  { %v859_v9 = vmul.f32 %v2408_v6, %v857_v7 }
 0xc14   :  { %860 = vst.msk [vmem:[#allocation3 + $0x8] sm:$0x3] %vm500_vm2, %v859_v9  ;;  %v862_v13 = vpack.c.bf16 %v859_v9, %v859_v9 }
 0xc15   :  { %861 = vst.msk [vmem:[#allocation3 + $0x6] sm:$0x3] %vm502_vm3, %v859_v9 }
 0xc16   :  { %2183 = vmatmul.mubr.msk.bf16.vlgmr.msra.gmra.mrb[12].mxu1 %vm423_vm4, %v862_v13 }
 0xc17   :  { %1047 = vmatpush1.bf16.msra.mxu1 %v2848_v10  ;;  %1078 = vmatprep.mubr.bf16.mxu1 %v2686_v0 }
 0xc18   :  { %1048 = vmatprep.subr.bf16.mxu1 %v2859_v11 }
 0xc1b   :  { %1049 = vmatpush1.bf16.msra.mxu1 %v2864_v12 }
 0xc1c   :  { %1050 = vmatprep.subr.bf16.mxu1 %v2872_v15 }
 0xc1f   :  { %1051 = vmatpush1.bf16.msra.mxu1 %v2879_v17 }
 0xc20   :  { %1052 = vmatprep.subr.bf16.mxu1 %v2903_v37 }
 0xc23   :  { %1053 = vmatpush1.bf16.msra.mxu1 %v2908_v38 }
 0xce9   :  { %v900_v14 = vpop.f32.mrb[12].mxu1 }
 0xcea   :  { %v902_v16 = vpop.f32.mrb[13].mxu1  ;;  %v909_v11 = vrot.slane %v900_v14, 6 }
 0xceb   :  { %v910_v20 = vrot.slane %v902_v16, 6  ;;  %v904_v21 = vpop.f32.mrb[14].mxu1 }
 0xcec   :  { %v905_v28 = vpop.f32.mrb[15].mxu1  ;;  %v913_v12 = vadd.f32 %v909_v11, %v2958_v19 }
 0xced   :  { %v914_v10 = vadd.f32 %v910_v20, %v2966_v23 }
 0xcee   :  { %v2184_v15 = vmul.f32 -1.442695, %v913_v12 }
 0xcef   :  { %2409 = vtanh.f32 %v914_v10  ;;  %v2185_v35 = vmul.f32 -1.442695, %v914_v10 }
 0xcf0   :  { %2411 = vpow2.f32 %v2184_v15 }
 0xcf9   :  { %v2410_v29 = vpop.eup %2409 }
 0xcfa   :  { %933 = vrot.lane.b32.xlu1 %v2410_v29, %s2687_s4  ;;  %v2412_v17 = vpop.eup %2411 }
 0xcfb   :  { %v921_v37 = vadd.f32 1.0, %v2412_v17 }
 0xcfd   :  { %2413 = vrcp.f32 %v921_v37 }
 0xd07   :  { %v2414_v38 = vpop.eup %2413 }
 0xd08   :  { %v931_v32 = vmul.f32 %v2414_v38, %v929_v31  ;;  %v2327_v31 = vld [vmem:[#allocation11 + $0x4] ss:$8 sps:$4 sm:$0xff]  }
 0xd09   :  { %1204 = vmatprep.subr.bf16.mxu0 %v2327_v31 }
 0xd6c   :  { %v934_v8 = vpop.permute.xlu1 %933 }
 0xd6d   :  { %v936_v30 = vmul.f32 %v2414_v38, %v934_v8 }
 0xd6f   :  { %938 = vrot.lane.b32.xlu0 %v936_v30, %s2687_s4 }
 0xde1   :  { %v939_v33 = vpop.permute.xlu0 %938 }
 0xde2   :  { %v941_v27 = vadd.f32 %v939_v33, %v931_v32 }
 0xde4   :  { %2415 = vtanh.f32 %v941_v27  ;;  %v1019_v60 = vrot.slane %v941_v27, 6  ;;  %v2330_v27 = vld [vmem:[#allocation11 + $0x14] ss:$8 sps:$4 sm:$0xff]  }
 0xde5   :  { %2417 = vpow2.f32 %v2185_v35  ;;  %v2328_v35 = vld [vmem:[#allocation11 + $0x10] ss:$8 sps:$4 sm:$0xff]  }
 0xdee   :  { %v2416_v34 = vpop.eup %2415 }
 0xdef   :  { %944 = vrot.lane.b32.xlu1 %v2416_v34, %s2687_s4  ;;  %v2418_v36 = vpop.eup %2417  ;;  %v3092_v34 = vld [vmem:[#allocation12 + $0x4] ss:$8 sps:$4 sm:$0xff]  }
 0xdf0   :  { %v922_v25 = vadd.f32 1.0, %v2418_v36  ;;  %v3094_v36 = vld [vmem:[#allocation12] ss:$8 sps:$4 sm:$0xff]   ;;  %1315 = vmatprep.subr.bf16.mxu1 %v3092_v34 }
 0xdf2   :  { %2419 = vrcp.f32 %v922_v25 }
 0xdfc   :  { %v2420_v39 = vpop.eup %2419 }
 0xe61   :  { %v945_v40 = vpop.permute.xlu1 %944 }
 0xe62   :  { %v947_v41 = vmul.f32 %v2420_v39, %v945_v40  ;;  %v2334_v39 = vld [vmem:[#allocation11 + $0x20] ss:$8 sps:$4 sm:$0xff]   ;;  %v2336_v40 = vld [vmem:[#allocation11 + $0x24] ss:$8 sps:$4 sm:$0xff]  }
 0xe64   :  { %948 = vst.msk [vmem:[#allocation3 + $0x8] sm:$0xc] %vm590_vm5, %v947_v41  ;;  %v950_v42 = vpack.c.bf16 %v947_v41, %v947_v41 }
 0xe65   :  { %949 = vst.msk [vmem:[#allocation3 + $0x2] sm:$0xc] %vm592_vm6, %v947_v41  ;;  %v3098_v41 = vld [vmem:[#allocation12 + $0x14] ss:$8 sps:$4 sm:$0xff]  }
 0xe66   :  { %v952_v43 = vrot.slane %v950_v42, 1  ;;  %v3100_v42 = vld [vmem:[#allocation12 + $0x10] ss:$8 sps:$4 sm:$0xff]  }
 0xe68   :  { %2186 = vmatmul.mubr.msk.bf16.vlgmr.msra.gmra.mrb[12].mxu0 %vm423_vm4, %v952_v43  ;;  %v2342_v43 = vld [vmem:[#allocation11 + $0x34] ss:$8 sps:$4 sm:$0xff]  }
 0xe69   :  { %1236 = vmatprep.mubr.bf16.mxu0 %v2686_v0 }
 0xf3b   :  { %v990_v44 = vpop.f32.mrb[12].mxu0 }
 0xf3c   :  { %v992_v46 = vpop.f32.mrb[13].mxu0  ;;  %v999_v54 = vrot.slane %v990_v44, 4  ;;  %v3103_v44 = vld [vmem:[#allocation12 + $0x24] ss:$8 sps:$4 sm:$0xff]  }
 0xf3d   :  { %v1000_v48 = vrot.slane %v992_v46, 4  ;;  %v994_v49 = vpop.f32.mrb[14].mxu0  ;;  %v2340_v46 = vld [vmem:[#allocation11 + $0x30] ss:$8 sps:$4 sm:$0xff]  }
 0xf3e   :  { %v995_v51 = vpop.f32.mrb[15].mxu0  ;;  %v1003_v55 = vadd.f32 %v999_v54, %v2954_v18  ;;  %v3110_v49 = vld [vmem:[#allocation12 + $0x34] ss:$8 sps:$4 sm:$0xff]  }
 0xf3f   :  { %v1004_v52 = vadd.f32 %v1000_v48, %v2962_v22  ;;  %v3106_v48 = vld [vmem:[#allocation12 + $0x20] ss:$8 sps:$4 sm:$0xff]   ;;  %v3113_v51 = vld [vmem:[#allocation12 + $0x30] ss:$8 sps:$4 sm:$0xff]  }
 0xf40   :  { %v2187_v26 = vmul.f32 -1.442695, %v1003_v55 }
 0xf41   :  { %2421 = vtanh.f32 %v1004_v52  ;;  %v2188_v3 = vmul.f32 -1.442695, %v1004_v52 }
 0xf42   :  { %2423 = vpow2.f32 %v2187_v26 }
 0xf4b   :  { %v2422_v53 = vpop.eup %2421 }
 0xf4c   :  { %1023 = vrot.lane.b32.xlu0 %v2422_v53, %s2687_s4  ;;  %v2424_v56 = vpop.eup %2423 }
 0xf4d   :  { %v1011_v57 = vadd.f32 1.0, %v2424_v56 }
 0xf4f   :  { %2425 = vrcp.f32 %v1011_v57 }
 0xf59   :  { %v2426_v58 = vpop.eup %2425 }
 0xf5a   :  { %v1021_v61 = vmul.f32 %v2426_v58, %v1019_v60 }
 0xfbe   :  { %v1024_v24 = vpop.permute.xlu0 %1023 }
 0xfbf   :  { %v1026_v59 = vmul.f32 %v2426_v58, %v1024_v24 }
 0xfc1   :  { %1028 = vrot.lane.b32.xlu1 %v1026_v59, %s2687_s4 }
0x1033   :  { %v1029_v22 = vpop.permute.xlu1 %1028 }
0x1034   :  { %v1031_v63 = vadd.f32 %v1029_v22, %v1021_v61 }
0x1036   :  { %2427 = vtanh.f32 %v1031_v63  ;;  %v1109_v32 = vrot.slane %v1031_v63, 6 }
0x1037   :  { %2429 = vpow2.f32 %v2188_v3 }
0x1040   :  { %v2428_v1 = vpop.eup %2427 }
0x1041   :  { %1034 = vrot.lane.b32.xlu0 %v2428_v1, %s2687_s4  ;;  %v2430_v18 = vpop.eup %2429  ;;  %v1148_v1 = vld [vmem:[%s3321_s7] sm:$0x3] }
0x1042   :  { %v1012_v4 = vadd.f32 1.0, %v2430_v18  ;;  %v1154_v3 = vrot.slane %v1148_v1, %v220_v47  ;;  %v1158_v18 = vrot.slane %v1148_v1, %v224_v50 }
0x1044   :  { %2431 = vrcp.f32 %v1012_v4 }
0x104e   :  { %v2432_v5 = vpop.eup %2431 }
0x10b3   :  { %v1035_v6 = vpop.permute.xlu0 %1034 }
0x10b4   :  { %v1037_v7 = vmul.f32 %v2432_v5, %v1035_v6 }
0x10b6   :  { %1038 = vst.msk [vmem:[#allocation3 + $0x8] sm:$0x30] %vm682_vm7, %v1037_v7  ;;  %v1040_v9 = vpack.c.bf16 %v1037_v7, %v1037_v7 }
0x10b7   :  { %1039 = vst.msk [vmem:[#allocation3 - $0x2] sm:$0x30] %vm684_vm8, %v1037_v7 }
0x10b8   :  { %v1042_v13 = vrot.slane %v1040_v9, 2 }
0x10ba   :  { %2189 = vmatmul.mubr.msk.bf16.vlgmr.msra.gmra.mrb[16].mxu1 %vm423_vm4, %v1042_v13 }
0x10bb   :  { %1347 = vmatprep.mubr.bf16.mxu1 %v2686_v0  ;;  %1316 = vmatpush1.bf16.msra.mxu1 %v3094_v36 }
0x10bc   :  { %1317 = vmatprep.subr.bf16.mxu1 %v3098_v41 }
0x10bf   :  { %1318 = vmatpush1.bf16.msra.mxu1 %v3100_v42 }
0x10c0   :  { %1319 = vmatprep.subr.bf16.mxu1 %v3103_v44 }
0x10c3   :  { %1320 = vmatpush1.bf16.msra.mxu1 %v3106_v48 }
0x10c4   :  { %1321 = vmatprep.subr.bf16.mxu1 %v3110_v49 }
0x10c7   :  { %1322 = vmatpush1.bf16.msra.mxu1 %v3113_v51 }
0x10c8   :  { %1480 = vmatprep.subr.bf16.mxu1 %v3092_v34 }
0x10ca   :  { %1348 = vmatmul.mubr.bf16.vlgmr.msra.gmra.mrb[20].mxu1 %v2686_v0 }
0x10cb   :  { %1481 = vmatpush1.bf16.msra.mxu1 %v3094_v36  ;;  %1512 = vmatprep.mubr.bf16.mxu1 %v2686_v0 }
0x10cc   :  { %1482 = vmatprep.subr.bf16.mxu1 %v3098_v41 }
0x10cf   :  { %1483 = vmatpush1.bf16.msra.mxu1 %v3100_v42 }
0x10d0   :  { %1484 = vmatprep.subr.bf16.mxu1 %v3103_v44 }
0x10d3   :  { %1485 = vmatpush1.bf16.msra.mxu1 %v3106_v48 }
0x10d4   :  { %1486 = vmatprep.subr.bf16.mxu1 %v3110_v49 }
0x10d7   :  { %1487 = vmatpush1.bf16.msra.mxu1 %v3113_v51 }
0x10d8   :  { %1656 = vmatprep.subr.bf16.mxu1 %v3092_v34 }
0x118d   :  { %v1080_v14 = vpop.f32.mrb[16].mxu1 }
0x118e   :  { %v1082_v16 = vpop.f32.mrb[17].mxu1  ;;  %v1089_v11 = vrot.slane %v1080_v14, 2 }
0x118f   :  { %v1090_v20 = vrot.slane %v1082_v16, 2  ;;  %v1084_v21 = vpop.f32.mrb[18].mxu1 }
0x1190   :  { %v1085_v28 = vpop.f32.mrb[19].mxu1  ;;  %v1093_v12 = vadd.f32 %v1089_v11, %v2958_v19 }
0x1191   :  { %v3086_v10 = vadd.f32 %v1090_v20, %v2966_v23  ;;  %v2325_v23 = vld [vmem:[#allocation11] ss:$8 sps:$4 sm:$0xff]  }
0x1192   :  { %v2190_v15 = vmul.f32 -1.442695, %v1093_v12  ;;  %1205 = vmatpush1.bf16.msra.mxu0 %v2325_v23 }
0x1193   :  { %2433 = vtanh.f32 %v3086_v10  ;;  %1206 = vmatprep.subr.bf16.mxu0 %v2330_v27  ;;  %v2191_v53 = vmul.f32 -1.442695, %v3086_v10 }
0x1194   :  { %2435 = vpow2.f32 %v2190_v15 }
0x1196   :  { %1207 = vmatpush1.bf16.msra.mxu0 %v2328_v35 }
0x1197   :  { %1208 = vmatprep.subr.bf16.mxu0 %v2336_v40 }
0x119a   :  { %1209 = vmatpush1.bf16.msra.mxu0 %v2334_v39 }
0x119b   :  { %1210 = vmatprep.subr.bf16.mxu0 %v2342_v43 }
0x119d   :  { %v2434_v29 = vpop.eup %2433  ;;  %v1349_v60 = vpop.f32.mrb[20].mxu1 }
0x119e   :  { %1113 = vrot.lane.b32.xlu1 %v2434_v29, %s2687_s4  ;;  %v2436_v17 = vpop.eup %2435  ;;  %1211 = vmatpush1.bf16.msra.mxu0 %v2340_v46  ;;  %v1351_v61 = vpop.f32.mrb[21].mxu1 }
0x119f   :  { %v1101_v37 = vadd.f32 1.0, %v2436_v17  ;;  %1392 = vmatprep.subr.bf16.mxu0 %v3092_v34  ;;  %v1353_v22 = vpop.f32.mrb[22].mxu1 }
0x11a0   :  { %v1354_v63 = vpop.f32.mrb[23].mxu1 }
0x11a1   :  { %2437 = vrcp.f32 %v1101_v37 }
0x11ab   :  { %v2438_v38 = vpop.eup %2437 }
0x11ac   :  { %v1111_v33 = vmul.f32 %v2438_v38, %v1109_v32 }
0x1210   :  { %v1114_v8 = vpop.permute.xlu1 %1113 }
0x1211   :  { %v1116_v30 = vmul.f32 %v2438_v38, %v1114_v8 }
0x1213   :  { %1118 = vrot.lane.b32.xlu0 %v1116_v30, %s2687_s4 }
0x1285   :  { %v1119_v19 = vpop.permute.xlu0 %1118 }
0x1286   :  { %v1121_v25 = vadd.f32 %v1119_v19, %v1111_v33 }
0x1288   :  { %2439 = vtanh.f32 %v1121_v25 }
0x1289   :  { %2441 = vpow2.f32 %v2191_v53 }
0x1292   :  { %v2440_v52 = vpop.eup %2439 }
0x1293   :  { %1124 = vrot.lane.b32.xlu1 %v2440_v52, %s2687_s4  ;;  %v2442_v54 = vpop.eup %2441 }
0x1294   :  { %v1102_v55 = vadd.f32 1.0, %v2442_v54 }
0x1296   :  { %2443 = vrcp.f32 %v1102_v55 }
0x12a0   :  { %v2444_v26 = vpop.eup %2443 }
0x1305   :  { %v1125_v56 = vpop.permute.xlu1 %1124 }
0x1306   :  { %v1127_v57 = vmul.f32 %v2444_v26, %v1125_v56 }
0x1308   :  { %1128 = vst.msk [vmem:[#allocation3 + $0x8] sm:$0xc0] %vm774_vm9, %v1127_v57 }
0x1309   :  { %1129 = vst.msk [vmem:[#allocation3 - $0x6] sm:$0xc0] %vm776_vm10, %v1127_v57 }
0x130f   :  { %v1131_v24 = vld [vmem:[#allocation3 + $0x8] sm:$0xff] }
0x1310   :  { %v1130_v58 = vld [vmem:[#allocation3] sm:$0xff] }
0x1311   :  { %v1149_v59 = vpack.c.bf16 %v1131_v24, %v1130_v58 }
0x1313   :  { %2200 = vmatmul.mubr.msk.bf16.vlgmr.msra.gmra.mrb[16].mxu0 %vm423_vm4, %v1149_v59 }
0x1314   :  { %1393 = vmatpush1.bf16.msra.mxu0 %v3094_v36  ;;  %1424 = vmatprep.mubr.bf16.mxu0 %v2686_v0 }
0x1315   :  { %1394 = vmatprep.subr.bf16.mxu0 %v3098_v41 }
0x1318   :  { %1395 = vmatpush1.bf16.msra.mxu0 %v3100_v42 }
0x1319   :  { %1396 = vmatprep.subr.bf16.mxu0 %v3103_v44 }
0x131c   :  { %1397 = vmatpush1.bf16.msra.mxu0 %v3106_v48 }
0x131d   :  { %1398 = vmatprep.subr.bf16.mxu0 %v3110_v49 }
0x1320   :  { %1399 = vmatpush1.bf16.msra.mxu0 %v3113_v51 }
0x1321   :  { %1568 = vmatprep.subr.bf16.mxu0 %v3092_v34 }
0x13e6   :  { %v1238_v4 = vpop.f32.mrb[16].mxu0 }
0x13e7   :  { %v1239_v5 = vadd.f32 %v1238_v4, %v1154_v3  ;;  %v1240_v6 = vpop.f32.mrb[17].mxu0 }
0x13e8   :  { %v1241_v7 = vadd.f32 %v1240_v6, %v1158_v18  ;;  %v1242_v9 = vpop.f32.mrb[18].mxu0 }
0x13e9   :  { %v1243_v13 = vadd.f32 %v1242_v9, %v1154_v3  ;;  %v1244_v14 = vpop.f32.mrb[19].mxu0  ;;  %v1263_v16 = vrot.slane %v1239_v5, 6  ;;  %v1269_v20 = vrot.slane %v1239_v5, 2 }
0x13ea   :  { %v1245_v21 = vadd.f32 %v1244_v14, %v1158_v18  ;;  %v1264_v28 = vrot.slane %v1241_v7, 6  ;;  %v1270_v10 = vrot.slane %v1241_v7, 2 }
0x13eb   :  { %v1249_v29 = vrot.slane %v1243_v13, 6  ;;  %v1255_v11 = vrot.slane %v1243_v13, 2  ;;  %v3151_v47 = vsel %vm2944_vm0, %v1243_v13, %v1263_v16  ;;  %v3155_v45 = vsel %vm2944_vm0, %v1243_v13, %v1269_v20 }
0x13ec   :  { %v1250_v50 = vrot.slane %v1245_v21, 6  ;;  %v1256_v12 = vrot.slane %v1245_v21, 2  ;;  %v3159_v15 = vsel %vm2948_vm1, %v1245_v21, %v1264_v28  ;;  %v3163_v17 = vsel %vm2948_vm1, %v1245_v21, %v1270_v10 }
0x13ed   :  { %v3167_v37 = vsel %vm2944_vm0, %v1239_v5, %v1249_v29  ;;  %v3171_v38 = vsel %vm2944_vm0, %v1239_v5, %v1255_v11 }
0x13ee   :  { %v3175_v8 = vsel %vm2948_vm1, %v1241_v7, %v1250_v50  ;;  %v3179_v30 = vsel %vm2948_vm1, %v1241_v7, %v1256_v12  ;;  %v1356_v32 = vadd.f32 %v1349_v60, %v3167_v37 }
0x13ef   :  { %v1357_v23 = vadd.f32 %v1351_v61, %v3175_v8 }
0x13f0   :  { %v2209_v33 = vmul.f32 -1.442695, %v1356_v32 }
0x13f1   :  { %2445 = vtanh.f32 %v1357_v23  ;;  %v2210_v46 = vmul.f32 -1.442695, %v1357_v23 }
0x13f2   :  { %2447 = vpow2.f32 %v2209_v33 }
0x13fb   :  { %v2446_v31 = vpop.eup %2445 }
0x13fc   :  { %1373 = vrot.lane.b32.xlu0 %v2446_v31, %s2687_s4  ;;  %v2448_v62 = vpop.eup %2447 }
0x13fd   :  { %v1364_v27 = vadd.f32 1.0, %v2448_v62 }
0x13ff   :  { %2449 = vrcp.f32 %v1364_v27 }
0x1409   :  { %v2450_v19 = vpop.eup %2449 }
0x140a   :  { %v1371_v2 = vmul.f32 0.0, %v2450_v19 }
0x146e   :  { %v1374_v35 = vpop.permute.xlu0 %1373 }
0x146f   :  { %v1376_v25 = vmul.f32 %v2450_v19, %v1374_v35 }
0x1471   :  { %1378 = vrot.lane.b32.xlu1 %v1376_v25, %s2687_s4 }
0x14e3   :  { %v1379_v39 = vpop.permute.xlu1 %1378 }
0x14e4   :  { %v1381_v40 = vadd.f32 %v1379_v39, %v1371_v2 }
0x14e6   :  { %2451 = vtanh.f32 %v1381_v40  ;;  %v1455_v9 = vrot.slane %v1381_v40, 6 }
0x14e7   :  { %2453 = vpow2.f32 %v2210_v46 }
0x14f0   :  { %v2452_v43 = vpop.eup %2451 }
0x14f1   :  { %1384 = vrot.lane.b32.xlu0 %v2452_v43, %s2687_s4  ;;  %v2454_v52 = vpop.eup %2453 }
0x14f2   :  { %v1365_v53 = vadd.f32 1.0, %v2454_v52 }
0x14f4   :  { %2455 = vrcp.f32 %v1365_v53 }
0x14fe   :  { %v2456_v54 = vpop.eup %2455 }
0x1563   :  { %v1385_v55 = vpop.permute.xlu0 %1384 }
0x1564   :  { %v1387_v26 = vmul.f32 %v2456_v54, %v1385_v55 }
0x1566   :  { %v1388_v56 = vpack.c.bf16 %v1387_v26, %v1387_v26 }
0x1568   :  { %2211 = vmatmul.mubr.msk.bf16.vlgmr.msra.gmra.mrb[20].mxu0 %vm423_vm4, %v1388_v56 }
0x1569   :  { %1569 = vmatpush1.bf16.msra.mxu0 %v3094_v36  ;;  %1600 = vmatprep.mubr.bf16.mxu0 %v2686_v0 }
0x156a   :  { %1570 = vmatprep.subr.bf16.mxu0 %v3098_v41 }
0x156d   :  { %1571 = vmatpush1.bf16.msra.mxu0 %v3100_v42 }
0x156e   :  { %1572 = vmatprep.subr.bf16.mxu0 %v3103_v44 }
0x1571   :  { %1573 = vmatpush1.bf16.msra.mxu0 %v3106_v48 }
0x1572   :  { %1574 = vmatprep.subr.bf16.mxu0 %v3110_v49 }
0x1575   :  { %1575 = vmatpush1.bf16.msra.mxu0 %v3113_v51 }
0x1576   :  { %1736 = vmatprep.subr.bf16.mxu0 %v3092_v34 }
0x163b   :  { %v1426_v57 = vpop.f32.mrb[20].mxu0 }
0x163c   :  { %v1428_v58 = vpop.f32.mrb[21].mxu0  ;;  %v1435_v63 = vrot.slane %v1426_v57, 6 }
0x163d   :  { %v1436_v24 = vrot.slane %v1428_v58, 6  ;;  %v1430_v59 = vpop.f32.mrb[22].mxu0 }
0x163e   :  { %v1431_v60 = vpop.f32.mrb[23].mxu0  ;;  %v1439_v1 = vadd.f32 %v1435_v63, %v3171_v38 }
0x163f   :  { %v1440_v61 = vadd.f32 %v1436_v24, %v3179_v30 }
0x1640   :  { %v2212_v3 = vmul.f32 -1.442695, %v1439_v1 }
0x1641   :  { %2457 = vtanh.f32 %v1440_v61  ;;  %v2213_v21 = vmul.f32 -1.442695, %v1440_v61 }
0x1642   :  { %2459 = vpow2.f32 %v2212_v3 }
0x164b   :  { %v2458_v22 = vpop.eup %2457 }
0x164c   :  { %1459 = vrot.lane.b32.xlu1 %v2458_v22, %s2687_s4  ;;  %v2460_v18 = vpop.eup %2459 }
0x164d   :  { %v1447_v4 = vadd.f32 1.0, %v2460_v18 }
0x164f   :  { %2461 = vrcp.f32 %v1447_v4 }
0x1659   :  { %v2462_v5 = vpop.eup %2461 }
0x165a   :  { %v1457_v13 = vmul.f32 %v2462_v5, %v1455_v9 }
0x16be   :  { %v1460_v6 = vpop.permute.xlu1 %1459 }
0x16bf   :  { %v1462_v7 = vmul.f32 %v2462_v5, %v1460_v6 }
0x16c1   :  { %1464 = vrot.lane.b32.xlu0 %v1462_v7, %s2687_s4 }
0x1733   :  { %v1465_v14 = vpop.permute.xlu0 %1464 }
0x1734   :  { %v1467_v16 = vadd.f32 %v1465_v14, %v1457_v13 }
0x1736   :  { %2463 = vtanh.f32 %v1467_v16  ;;  %v1543_v54 = vrot.slane %v1467_v16, 6 }
0x1737   :  { %2465 = vpow2.f32 %v2213_v21 }
0x1740   :  { %v2464_v20 = vpop.eup %2463 }
0x1741   :  { %1470 = vrot.lane.b32.xlu1 %v2464_v20, %s2687_s4  ;;  %v2466_v28 = vpop.eup %2465 }
0x1742   :  { %v1448_v10 = vadd.f32 1.0, %v2466_v28 }
0x1744   :  { %2467 = vrcp.f32 %v1448_v10 }
0x174e   :  { %v2468_v29 = vpop.eup %2467 }
0x17b3   :  { %v1471_v11 = vpop.permute.xlu1 %1470 }
0x17b4   :  { %v1473_v50 = vmul.f32 %v2468_v29, %v1471_v11 }
0x17b6   :  { %v1474_v12 = vpack.c.bf16 %v1473_v50, %v1473_v50 }
0x17b8   :  { %v1476_v23 = vrot.slane %v1474_v12, 1 }
0x17ba   :  { %2214 = vmatmul.mubr.msk.bf16.vlgmr.msra.gmra.mrb[24].mxu1 %vm423_vm4, %v1476_v23 }
0x17bb   :  { %1657 = vmatpush1.bf16.msra.mxu1 %v3094_v36  ;;  %1688 = vmatprep.mubr.bf16.mxu1 %v2686_v0 }
0x17bc   :  { %1658 = vmatprep.subr.bf16.mxu1 %v3098_v41 }
0x17bf   :  { %1659 = vmatpush1.bf16.msra.mxu1 %v3100_v42 }
0x17c0   :  { %1660 = vmatprep.subr.bf16.mxu1 %v3103_v44 }
0x17c3   :  { %1661 = vmatpush1.bf16.msra.mxu1 %v3106_v48 }
0x17c4   :  { %1662 = vmatprep.subr.bf16.mxu1 %v3110_v49 }
0x17c7   :  { %1663 = vmatpush1.bf16.msra.mxu1 %v3113_v51 }
0x17c8   :  { %1824 = vmatprep.subr.bf16.mxu1 %v3092_v34 }
0x188d   :  { %v1514_v31 = vpop.f32.mrb[24].mxu1 }
0x188e   :  { %v1516_v32 = vpop.f32.mrb[25].mxu1  ;;  %v1523_v25 = vrot.slane %v1514_v31, 4 }
0x188f   :  { %v1524_v33 = vrot.slane %v1516_v32, 4  ;;  %v1518_v62 = vpop.f32.mrb[26].mxu1 }
0x1890   :  { %v1519_v27 = vpop.f32.mrb[27].mxu1  ;;  %v1527_v2 = vadd.f32 %v1523_v25, %v3167_v37 }
0x1891   :  { %v1528_v19 = vadd.f32 %v1524_v33, %v3175_v8 }
0x1892   :  { %v2215_v39 = vmul.f32 -1.442695, %v1527_v2 }
0x1893   :  { %2469 = vtanh.f32 %v1528_v19  ;;  %v2216_v57 = vmul.f32 -1.442695, %v1528_v19 }
0x1894   :  { %2471 = vpow2.f32 %v2215_v39 }
0x189d   :  { %v2470_v35 = vpop.eup %2469 }
0x189e   :  { %1547 = vrot.lane.b32.xlu0 %v2470_v35, %s2687_s4  ;;  %v2472_v40 = vpop.eup %2471 }
0x189f   :  { %v1535_v43 = vadd.f32 1.0, %v2472_v40 }
0x18a1   :  { %2473 = vrcp.f32 %v1535_v43 }
0x18ab   :  { %v2474_v46 = vpop.eup %2473 }
0x18ac   :  { %v1545_v55 = vmul.f32 %v2474_v46, %v1543_v54 }
0x1910   :  { %v1548_v52 = vpop.permute.xlu0 %1547 }
0x1911   :  { %v1550_v53 = vmul.f32 %v2474_v46, %v1548_v52 }
0x1913   :  { %1552 = vrot.lane.b32.xlu1 %v1550_v53, %s2687_s4 }
0x1985   :  { %v1553_v8 = vpop.permute.xlu1 %1552 }
0x1986   :  { %v1555_v26 = vadd.f32 %v1553_v8, %v1545_v55 }
0x1988   :  { %2475 = vtanh.f32 %v1555_v26  ;;  %v1631_v28 = vrot.slane %v1555_v26, 6 }
0x1989   :  { %2477 = vpow2.f32 %v2216_v57 }
0x1992   :  { %v2476_v56 = vpop.eup %2475 }
0x1993   :  { %1558 = vrot.lane.b32.xlu0 %v2476_v56, %s2687_s4  ;;  %v2478_v37 = vpop.eup %2477 }
0x1994   :  { %v1536_v58 = vadd.f32 1.0, %v2478_v37 }
0x1996   :  { %2479 = vrcp.f32 %v1536_v58 }
0x19a0   :  { %v2480_v24 = vpop.eup %2479 }
0x1a05   :  { %v1559_v59 = vpop.permute.xlu0 %1558 }
0x1a06   :  { %v1561_v60 = vmul.f32 %v2480_v24, %v1559_v59 }
0x1a08   :  { %v1562_v61 = vpack.c.bf16 %v1561_v60, %v1561_v60 }
0x1a0a   :  { %v1564_v22 = vrot.slane %v1562_v61, 2 }
0x1a0c   :  { %2217 = vmatmul.mubr.msk.bf16.vlgmr.msra.gmra.mrb[24].mxu0 %vm423_vm4, %v1564_v22 }
0x1a0d   :  { %1737 = vmatpush1.bf16.msra.mxu0 %v3094_v36  ;;  %1768 = vmatprep.mubr.bf16.mxu0 %v2686_v0 }
0x1a0e   :  { %1738 = vmatprep.subr.bf16.mxu0 %v3098_v41 }
0x1a11   :  { %1739 = vmatpush1.bf16.msra.mxu0 %v3100_v42 }
0x1a12   :  { %1740 = vmatprep.subr.bf16.mxu0 %v3103_v44 }
0x1a15   :  { %1741 = vmatpush1.bf16.msra.mxu0 %v3106_v48 }
0x1a16   :  { %1742 = vmatprep.subr.bf16.mxu0 %v3110_v49 }
0x1a19   :  { %1743 = vmatpush1.bf16.msra.mxu0 %v3113_v51 }
0x1a1a   :  { %1912 = vmatprep.subr.bf16.mxu0 %v3092_v34 }
0x1adf   :  { %v1602_v63 = vpop.f32.mrb[24].mxu0 }
0x1ae0   :  { %v1604_v1 = vpop.f32.mrb[25].mxu0  ;;  %v1611_v7 = vrot.slane %v1602_v63, 2 }
0x1ae1   :  { %v1612_v3 = vrot.slane %v1604_v1, 2  ;;  %v1606_v18 = vpop.f32.mrb[26].mxu0 }
0x1ae2   :  { %v1607_v4 = vpop.f32.mrb[27].mxu0  ;;  %v1615_v9 = vadd.f32 %v1611_v7, %v3171_v38 }
0x1ae3   :  { %v1616_v5 = vadd.f32 %v1612_v3, %v3179_v30 }
0x1ae4   :  { %v2218_v13 = vmul.f32 -1.442695, %v1615_v9 }
0x1ae5   :  { %2481 = vtanh.f32 %v1616_v5  ;;  %v2219_v50 = vmul.f32 -1.442695, %v1616_v5 }
0x1ae6   :  { %2483 = vpow2.f32 %v2218_v13 }
0x1aef   :  { %v2482_v6 = vpop.eup %2481 }
0x1af0   :  { %1635 = vrot.lane.b32.xlu1 %v2482_v6, %s2687_s4  ;;  %v2484_v14 = vpop.eup %2483 }
0x1af1   :  { %v1623_v16 = vadd.f32 1.0, %v2484_v14 }
0x1af3   :  { %2485 = vrcp.f32 %v1623_v16 }
0x1afd   :  { %v2486_v34 = vpop.eup %2485 }
0x1afe   :  { %v1633_v10 = vmul.f32 %v2486_v34, %v1631_v28 }
0x1b62   :  { %v1636_v20 = vpop.permute.xlu1 %1635 }
0x1b63   :  { %v1638_v21 = vmul.f32 %v2486_v34, %v1636_v20 }
0x1b65   :  { %1640 = vrot.lane.b32.xlu0 %v1638_v21, %s2687_s4 }
0x1bd7   :  { %v1641_v30 = vpop.permute.xlu0 %1640 }
0x1bd8   :  { %v1643_v29 = vadd.f32 %v1641_v30, %v1633_v10 }
0x1bda   :  { %2487 = vtanh.f32 %v1643_v29  ;;  %v1713_v8 = vrot.slane %v1643_v29, 6 }
0x1bdb   :  { %2489 = vpow2.f32 %v2219_v50 }
0x1be4   :  { %v2488_v11 = vpop.eup %2487 }
0x1be5   :  { %1646 = vrot.lane.b32.xlu1 %v2488_v11, %s2687_s4  ;;  %v2490_v38 = vpop.eup %2489 }
0x1be6   :  { %v1624_v12 = vadd.f32 1.0, %v2490_v38 }
0x1be8   :  { %2491 = vrcp.f32 %v1624_v12 }
0x1bf2   :  { %v2492_v23 = vpop.eup %2491 }
0x1c57   :  { %v1647_v31 = vpop.permute.xlu1 %1646 }
0x1c58   :  { %v1649_v32 = vmul.f32 %v2492_v23, %v1647_v31 }
0x1c5a   :  { %v1650_v33 = vpack.c.bf16 %v1649_v32, %v1649_v32 }
0x1c5c   :  { %v1652_v62 = vrot.slane %v1650_v33, 3 }
0x1c5e   :  { %2220 = vmatmul.mubr.msk.bf16.vlgmr.msra.gmra.mrb[28].mxu1 %vm423_vm4, %v1652_v62 }
0x1c5f   :  { %1825 = vmatpush1.bf16.msra.mxu1 %v3094_v36  ;;  %1856 = vmatprep.mubr.bf16.mxu1 %v2686_v0 }
0x1c60   :  { %1826 = vmatprep.subr.bf16.mxu1 %v3098_v41 }
0x1c63   :  { %1827 = vmatpush1.bf16.msra.mxu1 %v3100_v42 }
0x1c64   :  { %1828 = vmatprep.subr.bf16.mxu1 %v3103_v44 }
0x1c67   :  { %1829 = vmatpush1.bf16.msra.mxu1 %v3106_v48 }
0x1c68   :  { %1830 = vmatprep.subr.bf16.mxu1 %v3110_v49 }
0x1c6b   :  { %1831 = vmatpush1.bf16.msra.mxu1 %v3113_v51 }
0x1d31   :  { %v1690_v27 = vpop.f32.mrb[28].mxu1 }
0x1d32   :  { %v1692_v19 = vpop.f32.mrb[29].mxu1  ;;  %v1697_v40 = vadd.f32 %v1690_v27, %v3151_v47 }
0x1d33   :  { %v1698_v35 = vadd.f32 %v1692_v19, %v3159_v15  ;;  %v1694_v25 = vpop.f32.mrb[30].mxu1 }
0x1d34   :  { %v1695_v2 = vpop.f32.mrb[31].mxu1  ;;  %v2221_v43 = vmul.f32 -1.442695, %v1697_v40 }
0x1d35   :  { %2493 = vtanh.f32 %v1698_v35  ;;  %v2222_v58 = vmul.f32 -1.442695, %v1698_v35 }
0x1d36   :  { %2495 = vpow2.f32 %v2221_v43 }
0x1d3f   :  { %v2494_v39 = vpop.eup %2493 }
0x1d40   :  { %1717 = vrot.lane.b32.xlu0 %v2494_v39, %s2687_s4  ;;  %v2496_v46 = vpop.eup %2495 }
0x1d41   :  { %v1705_v52 = vadd.f32 1.0, %v2496_v46 }
0x1d43   :  { %2497 = vrcp.f32 %v1705_v52 }
0x1d4d   :  { %v2498_v53 = vpop.eup %2497 }
0x1d4e   :  { %v1715_v26 = vmul.f32 %v2498_v53, %v1713_v8 }
0x1db2   :  { %v1718_v54 = vpop.permute.xlu0 %1717 }
0x1db3   :  { %v1720_v55 = vmul.f32 %v2498_v53, %v1718_v54 }
0x1db5   :  { %1722 = vrot.lane.b32.xlu1 %v1720_v55, %s2687_s4 }
0x1e27   :  { %v1723_v56 = vpop.permute.xlu1 %1722 }
0x1e28   :  { %v1725_v57 = vadd.f32 %v1723_v56, %v1715_v26 }
0x1e2a   :  { %2499 = vtanh.f32 %v1725_v57  ;;  %v1799_v9 = vrot.slane %v1725_v57, 6 }
0x1e2b   :  { %2501 = vpow2.f32 %v2222_v58 }
0x1e34   :  { %v2500_v37 = vpop.eup %2499 }
0x1e35   :  { %1728 = vrot.lane.b32.xlu0 %v2500_v37, %s2687_s4  ;;  %v2502_v24 = vpop.eup %2501 }
0x1e36   :  { %v1706_v59 = vadd.f32 1.0, %v2502_v24 }
0x1e38   :  { %2503 = vrcp.f32 %v1706_v59 }
0x1e42   :  { %v2504_v60 = vpop.eup %2503 }
0x1ea7   :  { %v1729_v61 = vpop.permute.xlu0 %1728 }
0x1ea8   :  { %v1731_v22 = vmul.f32 %v2504_v60, %v1729_v61 }
0x1eaa   :  { %v1732_v63 = vpack.c.bf16 %v1731_v22, %v1731_v22 }
0x1eac   :  { %2223 = vmatmul.mubr.msk.bf16.vlgmr.msra.gmra.mrb[28].mxu0 %vm423_vm4, %v1732_v63 }
0x1ead   :  { %1913 = vmatpush1.bf16.msra.mxu0 %v3094_v36  ;;  %1944 = vmatprep.mubr.bf16.mxu0 %v2686_v0 }
0x1eae   :  { %1914 = vmatprep.subr.bf16.mxu0 %v3098_v41 }
0x1eb1   :  { %1915 = vmatpush1.bf16.msra.mxu0 %v3100_v42 }
0x1eb2   :  { %1916 = vmatprep.subr.bf16.mxu0 %v3103_v44 }
0x1eb5   :  { %1917 = vmatpush1.bf16.msra.mxu0 %v3106_v48 }
0x1eb6   :  { %1918 = vmatprep.subr.bf16.mxu0 %v3110_v49 }
0x1eb9   :  { %1919 = vmatpush1.bf16.msra.mxu0 %v3113_v51 }
0x1f7f   :  { %v1770_v1 = vpop.f32.mrb[28].mxu0 }
0x1f80   :  { %v1772_v3 = vpop.f32.mrb[29].mxu0  ;;  %v1779_v41 = vrot.slane %v1770_v1, 6 }
0x1f81   :  { %v1780_v18 = vrot.slane %v1772_v3, 6  ;;  %v1774_v4 = vpop.f32.mrb[30].mxu0 }
0x1f82   :  { %v1775_v5 = vpop.f32.mrb[31].mxu0  ;;  %v1783_v42 = vadd.f32 %v1779_v41, %v3155_v45 }
0x1f83   :  { %v1784_v36 = vadd.f32 %v1780_v18, %v3163_v17 }
0x1f84   :  { %v2224_v44 = vmul.f32 -1.442695, %v1783_v42 }
0x1f85   :  { %2505 = vtanh.f32 %v1784_v36  ;;  %v2225_v20 = vmul.f32 -1.442695, %v1784_v36 }
0x1f86   :  { %2507 = vpow2.f32 %v2224_v44  ;;  %v1995_v44 = vld [vmem:[%s3322_s8 + $0x8] sm:$0xff] }
0x1f8f   :  { %v2506_v0 = vpop.eup %2505 }
0x1f90   :  { %1803 = vrot.lane.b32.xlu1 %v2506_v0, %s2687_s4  ;;  %v2508_v48 = vpop.eup %2507 }
0x1f91   :  { %v1791_v49 = vadd.f32 1.0, %v2508_v48  ;;  %v2688_v48 = vmov 0.0|0.0  }
0x1f92   :  { %2262 = vmatprep.subr.bf16.mxu1 %v2688_v48 }
0x1f93   :  { %2509 = vrcp.f32 %v1791_v49 }
0x1f9d   :  { %v2510_v51 = vpop.eup %2509 }
0x1f9e   :  { %v1801_v13 = vmul.f32 %v2510_v51, %v1799_v9  ;;  %v1999_v9 = vld [vmem:[%s3322_s8 + $0x28] sm:$0xff] }
0x2002   :  { %v1804_v6 = vpop.permute.xlu1 %1803 }
0x2003   :  { %v1806_v7 = vmul.f32 %v2510_v51, %v1804_v6  ;;  %v1997_v51 = vld [vmem:[%s3322_s8 + $0x18] sm:$0xff] }
0x2005   :  { %1808 = vrot.lane.b32.xlu0 %v1806_v7, %s2687_s4  ;;  %v1998_v7 = vld [vmem:[%s3322_s8 + $0x20] sm:$0xff] }
0x2077   :  { %v1809_v14 = vpop.permute.xlu0 %1808 }
0x2078   :  { %v1811_v16 = vadd.f32 %v1809_v14, %v1801_v13  ;;  %v2269_v13 = vpack.c.bf16 %v1999_v9, %v1998_v7 }
0x207a   :  { %2511 = vtanh.f32 %v1811_v16  ;;  %v1887_v46 = vrot.slane %v1811_v16, 6 }
0x207b   :  { %2513 = vpow2.f32 %v2225_v20  ;;  %v2001_v20 = vld [vmem:[%s3322_s8 + $0x38] sm:$0xff] }
0x2084   :  { %v2512_v34 = vpop.eup %2511 }
0x2085   :  { %1814 = vrot.lane.b32.xlu1 %v2512_v34, %s2687_s4  ;;  %v2514_v21 = vpop.eup %2513  ;;  %v2000_v34 = vld [vmem:[%s3322_s8 + $0x30] sm:$0xff] }
0x2086   :  { %v1792_v28 = vadd.f32 1.0, %v2514_v21 }
0x2088   :  { %2515 = vrcp.f32 %v1792_v28  ;;  %v2272_v28 = vpack.c.bf16 %v2001_v20, %v2000_v34 }
0x2092   :  { %v2516_v10 = vpop.eup %2515 }
0x20f7   :  { %v1815_v30 = vpop.permute.xlu1 %1814 }
0x20f8   :  { %v1817_v29 = vmul.f32 %v2516_v10, %v1815_v30  ;;  %v2690_v30 = vmov 0.0  }
0x20fa   :  { %v1818_v11 = vpack.c.bf16 %v1817_v29, %v1817_v29 }
0x20fc   :  { %v1820_v50 = vrot.slane %v1818_v11, 1 }
0x20fe   :  { %2226 = vmatmul.mubr.msk.bf16.vlgmr.msra.gmra.mrb[32].mxu1 %vm423_vm4, %v1820_v50 }
0x20ff   :  { %2259 = vmatprep.mubr.msk.f32.mxu1 %vm2689_vm11, %v2690_v30 }
0x21d1   :  { %v1858_v38 = vpop.f32.mrb[32].mxu1 }
0x21d2   :  { %v1860_v12 = vpop.f32.mrb[33].mxu1  ;;  %v1867_v27 = vrot.slane %v1858_v38, 4 }
0x21d3   :  { %v1868_v23 = vrot.slane %v1860_v12, 4  ;;  %v1862_v31 = vpop.f32.mrb[34].mxu1 }
0x21d4   :  { %v1863_v32 = vpop.f32.mrb[35].mxu1  ;;  %v1871_v19 = vadd.f32 %v1867_v27, %v3151_v47 }
0x21d5   :  { %v1872_v33 = vadd.f32 %v1868_v23, %v3159_v15 }
0x21d6   :  { %v2227_v35 = vmul.f32 -1.442695, %v1871_v19 }
0x21d7   :  { %2517 = vtanh.f32 %v1872_v33  ;;  %v2228_v55 = vmul.f32 -1.442695, %v1872_v33  ;;  %v2232_v33 = vld [vmem:[%s3323_s9] ss:$0 sm:$0xff]  ;;  %s2103_s9 = sshll.u32 %s2691_s13, 4  ;;  %s2104_s9 = int_to_ptr.vmem [resolvable:$true] %s2103_s9 }
0x21d8   :  { %2519 = vpow2.f32 %v2227_v35  ;;  %s2645_s14 = scalar_lea.vmem %s2104_s9, 32  ;;  %p2650_p10 = scmp.lt.s32.totalorder %s2104_s9, %s2104_s9 }
0x21d9   :  { %p2646_p9 = scmp.ne.s32.totalorder %s2104_s9, %s2645_s14  ;;  %p2651_p11 = scmp.lt.s32.totalorder %s2645_s14, %s2645_s14 }
0x21db   :  { %p2652_p12 = por %p2651_p11, %p2650_p10 }
0x21dd   :  { %p2653_p13 = pnand %p2652_p12, %p2646_p9 }
0x21e1   :  { %v2518_v62 = vpop.eup %2517 }
0x21e2   :  { %1891 = vrot.lane.b32.xlu0 %v2518_v62, %s2687_s4  ;;  %v2520_v25 = vpop.eup %2519 }
0x21e3   :  { %v1879_v2 = vadd.f32 1.0, %v2520_v25 }
0x21e5   :  { %2521 = vrcp.f32 %v1879_v2 }
0x21ef   :  { %v2522_v39 = vpop.eup %2521 }
0x21f0   :  { %v1889_v52 = vmul.f32 %v2522_v39, %v1887_v46 }
0x2254   :  { %v1892_v40 = vpop.permute.xlu0 %1891 }
0x2255   :  { %v1894_v43 = vmul.f32 %v2522_v39, %v1892_v40 }
0x2257   :  { %1896 = vrot.lane.b32.xlu1 %v1894_v43, %s2687_s4 }
0x22c9   :  { %v1897_v15 = vpop.permute.xlu1 %1896 }
0x22ca   :  { %v1899_v53 = vadd.f32 %v1897_v15, %v1889_v52 }
0x22cc   :  { %2523 = vtanh.f32 %v1899_v53  ;;  %v1975_v14 = vrot.slane %v1899_v53, 6 }
0x22cd   :  { %2525 = vpow2.f32 %v2228_v55 }
0x22d6   :  { %v2524_v54 = vpop.eup %2523 }
0x22d7   :  { %1902 = vrot.lane.b32.xlu0 %v2524_v54, %s2687_s4  ;;  %v2526_v47 = vpop.eup %2525 }
0x22d8   :  { %v1880_v8 = vadd.f32 1.0, %v2526_v47 }
0x22da   :  { %2527 = vrcp.f32 %v1880_v8 }
0x22e4   :  { %v2528_v26 = vpop.eup %2527 }
0x2349   :  { %v1903_v56 = vpop.permute.xlu0 %1902 }
0x234a   :  { %v1905_v57 = vmul.f32 %v2528_v26, %v1903_v56 }
0x234c   :  { %v1906_v37 = vpack.c.bf16 %v1905_v57, %v1905_v57 }
0x234e   :  { %v1908_v58 = vrot.slane %v1906_v37, 2 }
0x2350   :  { %2229 = vmatmul.mubr.msk.bf16.vlgmr.msra.gmra.mrb[32].mxu0 %vm423_vm4, %v1908_v58 }
0x2423   :  { %v1946_v24 = vpop.f32.mrb[32].mxu0 }
0x2424   :  { %v1948_v59 = vpop.f32.mrb[33].mxu0  ;;  %v1955_v3 = vrot.slane %v1946_v24, 2 }
0x2425   :  { %v1956_v60 = vrot.slane %v1948_v59, 2  ;;  %v1950_v61 = vpop.f32.mrb[34].mxu0 }
0x2426   :  { %v1951_v22 = vpop.f32.mrb[35].mxu0  ;;  %v1959_v18 = vadd.f32 %v1955_v3, %v3155_v45  ;;  %v1996_v45 = vld [vmem:[%s3322_s8 + $0x10] sm:$0xff] }
0x2427   :  { %v1960_v63 = vadd.f32 %v1956_v60, %v3163_v17  ;;  %v1994_v17 = vld [vmem:[%s3322_s8] sm:$0xff]  ;;  %v2266_v6 = vpack.c.bf16 %v1997_v51, %v1996_v45 }
0x2428   :  { %v2230_v4 = vmul.f32 -1.442695, %v1959_v18  ;;  %v2263_v49 = vpack.c.bf16 %v1995_v44, %v1994_v17 }
0x2429   :  { %2529 = vtanh.f32 %v1960_v63  ;;  %v2231_v11 = vmul.f32 -1.442695, %v1960_v63 }
0x242a   :  { %2531 = vpow2.f32 %v2230_v4  ;;  %2264 = vmatpush3.bf16.msra.mxu1 %v2263_v49 }
0x242b   :  { %2265 = vmatprep.subr.bf16.mxu1 %v2688_v48 }
0x242e   :  { %2267 = vmatpush3.bf16.msra.mxu1 %v2266_v6 }
0x242f   :  { %2268 = vmatprep.subr.bf16.mxu1 %v2688_v48 }
0x2432   :  { %2270 = vmatpush3.bf16.msra.mxu1 %v2269_v13 }
0x2433   :  { %v2530_v1 = vpop.eup %2529  ;;  %2271 = vmatprep.subr.bf16.mxu1 %v2688_v48 }
0x2434   :  { %1979 = vrot.lane.b32.xlu1 %v2530_v1, %s2687_s4  ;;  %v2532_v5 = vpop.eup %2531 }
0x2435   :  { %v1967_v36 = vadd.f32 1.0, %v2532_v5 }
0x2436   :  { %2273 = vmatpush3.bf16.msra.mxu1 %v2272_v28 }
0x2437   :  { %2533 = vrcp.f32 %v1967_v36 }
0x2441   :  { %v2534_v0 = vpop.eup %2533 }
0x2442   :  { %v1977_v16 = vmul.f32 %v2534_v0, %v1975_v14 }
0x24a6   :  { %v1980_v41 = vpop.permute.xlu1 %1979 }
0x24a7   :  { %v1982_v42 = vmul.f32 %v2534_v0, %v1980_v41 }
0x24a9   :  { %1984 = vrot.lane.b32.xlu0 %v1982_v42, %s2687_s4 }
0x251b   :  { %v1985_v21 = vpop.permute.xlu0 %1984 }
0x251c   :  { %v1987_v10 = vadd.f32 %v1985_v21, %v1977_v16 }
0x251e   :  { %2535 = vtanh.f32 %v1987_v10 }
0x251f   :  { %2537 = vpow2.f32 %v2231_v11 }
0x2528   :  { %v2536_v29 = vpop.eup %2535 }
0x2529   :  { %1990 = vrot.lane.b32.xlu1 %v2536_v29, %s2687_s4  ;;  %v2538_v50 = vpop.eup %2537 }
0x252a   :  { %v1968_v38 = vadd.f32 1.0, %v2538_v50 }
0x252c   :  { %2539 = vrcp.f32 %v1968_v38 }
0x2536   :  { %v2540_v12 = vpop.eup %2539 }
0x259b   :  { %v1991_v23 = vpop.permute.xlu1 %1990 }
0x259c   :  { %v1993_v31 = vmul.f32 %v2540_v12, %v1991_v23 }
0x259e   :  { %v2010_v32 = vrot.slane %v1993_v31, 6 }
0x25a0   :  { %2260 = vmatmul.mubr.msk.f32.vlgmr.msra.gmra.mrb[36].mxu1 %vm423_vm4, %v2010_v32 }
0x2673   :  { %v2079_v62 = vpop.f32.mrb[36].mxu1 }
0x2674   :  { %v2080_v27 = vadd.f32 %v2232_v33, %v2079_v62  ;;  %v2261_v19 = vpop.f32.mrb[37].mxu1 }
0x2676   :  { %v2084_v35 = vsel %vm2083_vm12, %v2080_v27, -inf }
0x2677   :  { %2085 = vmax.xlane.f32.xlu0 %v2084_v35 }
0x2704   :  { %v2086_v25 = vpop.xlane.xlu0 %2085 }
0x2705   :  { %v2087_v2 = vsub.f32 %v2080_v27, %v2086_v25 }
0x2707   :  { %v2088_v39 = vmul.f32 1.442695, %v2087_v2 }
0x2709   :  { %2541 = vpow2.f32 %v2088_v39 }
0x2713   :  { %v2542_v40 = vpop.eup %2541 }
0x2714   :  { %v2090_v43 = vsel %vm2083_vm12, %v2542_v40, 0.0 }
0x2715   :  { %2091 = vadd.xlane.f32.xlu1 %v2090_v43 }
0x27a2   :  { %v2092_v46 = vpop.xlane.xlu1 %2091 }
0x27a3   :  { %2543 = vlog2.f32 %v2092_v46 }
0x27ad   :  { %v2544_v52 = vpop.eup %2543 }
0x27ae   :  { %v2094_v15 = vmul.f32 0.6931472, %v2544_v52 }
0x27b0   :  { %v2095_v53 = vsub.f32 %v2087_v2, %v2094_v15 }
0x27b2   :  { %2096 = vst.msk [vmem:[#allocation14] sm:$0x3] %vm2083_vm12, %v2095_v53 }
0x27b3   :  { %2656 = shalt.err (!%p2653_p13)
}
0x27b4   :  { %s2657_s24 = scalar_lea.hbm %s3324_s10, 32 }
0x27b5   :  { %p2658_p0 = scmp.ne.s32.totalorder %s3324_s10, %s2657_s24  ;;  %p2661_p1 = scmp.lt.u32.totalorder %s2657_s24, %s3324_s10 }
0x27b7   :  { %p2663_p2 = pnand %p2661_p1, %p2658_p0 }
0x27b9   :  { %2666 = shalt.err (!%p2663_p2)
}
0x27ba   :  { %2106 = dma.vmem_to_hbm [thread:$0]  %s2104_s9, 32, %s3324_s10, [#allocation8]  }
0x27bb   :  { %2675 = dma.done.wait [#allocation8], 32  }
0x27bc   :  { %2676 = vsyncadd [#allocation8], 4294967264 }
0x27bd   :  { %2110 = vsyncpa [#allocation7], 1 }
0x27be   :  { %2111 = vsyncpa [#allocation10], 1 }
0x27bf   :  { %2112 = vsyncpa [#allocation13], 1 }
0x27c0   :  { %2113 = vsyncpa [#allocation8], 1 }

</bundles_post_ra>
